<compile_context>
chip_gen: v7x
topology: tpu7x:2x2x1
jax: 0.10.0
libtpu: 0.0.40
codegen_flags: <defaults>
</compile_context>

<pallas_src>
import math

import jax
import jax.numpy as jnp
from jax import lax
from jax.experimental import pallas as pl
from jax.experimental.pallas import tpu as pltpu

IN_DIM = 147
HIDDEN_DIMS = [256, 128, 64]
OUT_DIM = 1
NEG_SLOPE = 0.2
LN_EPS = 1e-5

# Kernel omits residual adds; valid because consecutive hidden dims never match.
assert all(HIDDEN_DIMS[i] != HIDDEN_DIMS[i + 1] for i in range(len(HIDDEN_DIMS) - 1))


def _fused_mlp_kernel(x_ref,
                      w1_ref, b1_ref, g1_ref, be1_ref,
                      w2_ref, b2_ref, g2_ref, be2_ref,
                      w3_ref, b3_ref, g3_ref, be3_ref,
                      w4_ref, b4_ref,
                      o_ref):
    """One batch tile of the full MLP: bf16 MXU matmuls, f32 LayerNorm/LeakyReLU, head."""

    def block(h_bf16, w_ref, b_ref, g_ref, be_ref):
        # Linear on the MXU: bf16 operands, f32 accumulation.
        y = jnp.dot(h_bf16, w_ref[...], preferred_element_type=jnp.float32) + b_ref[...]
        # LayerNorm over the feature axis, single-pass stats (biased variance), f32.
        mu = jnp.mean(y, axis=-1, keepdims=True)
        var = jnp.mean(y * y, axis=-1, keepdims=True) - mu * mu
        var = jnp.maximum(var, 0.0)          # guard tiny negative values from cancellation
        yn = (y - mu) * lax.rsqrt(var + LN_EPS)
        yn = yn * g_ref[...] + be_ref[...]
        # TODO(synk): Dropout is identity (eval mode); training parity needs the PRNG path.
        # LeakyReLU(0.2)
        return jnp.where(yn > 0, yn, NEG_SLOPE * yn)

    h = block(x_ref[...].astype(jnp.bfloat16), w1_ref, b1_ref, g1_ref, be1_ref)
    h = block(h.astype(jnp.bfloat16), w2_ref, b2_ref, g2_ref, be2_ref)
    h = block(h.astype(jnp.bfloat16), w3_ref, b3_ref, g3_ref, be3_ref)
    # Output head: Linear 64 -> 1 on the MXU (MXU has slack; only 4 B/row reach HBM).
    o_ref[...] = (jnp.dot(h.astype(jnp.bfloat16), w4_ref[...],
                          preferred_element_type=jnp.float32) + b4_ref[...])


def _round_up(n, m):
    return ((n + m - 1) // m) * m


def _choose_tiling(B, bm_max=1024):
    """Pick (rows-per-tile, grid-steps, padded-B).

    Fewest grid steps such that each tile has <= bm_max rows, but at least 2 steps
    when there is enough work (so both v7x TensorCores get a 'parallel' step).
    Tiles are sublane-aligned (multiple of 8), so batch padding stays <8 rows/tile.
    """
    min_steps = 2 if B >= 16 else 1
    steps = max(min_steps, -(-B // bm_max))
    bm = _round_up(-(-B // steps), 8)
    return bm, steps, steps * bm


def prepare_params(params):
    """One-time conversion to kernel-ready layout: weight matrices -> bf16,
    biases / LayerNorm affine stay f32.  Weights are (in, out)."""
    (w1, b1, g1, be1, w2, b2, g2, be2, w3, b3, g3, be3, w4, b4) = params
    bf = lambda w: w.astype(jnp.bfloat16)
    return (bf(w1), b1, g1, be1,
            bf(w2), b2, g2, be2,
            bf(w3), b3, g3, be3,
            bf(w4), b4)


def spectral_fcnn_forward(x, kparams, *, bm_max=1024):
    """x: (B, IN_DIM) float32.  kparams: output of prepare_params.
    Returns logits (B, OUT_DIM) float32."""
    B, D = x.shape
    assert D == IN_DIM

    bm, steps, B_pad = _choose_tiling(B, bm_max)
    x_p = x if B_pad == B else jnp.pad(x, ((0, B_pad - B), (0, 0)))

    def const_spec(arr):
        # Whole parameter resident in VMEM; constant index map -> fetched once.
        return pl.BlockSpec(arr.shape, lambda i: (0, 0))

    in_specs = [pl.BlockSpec((bm, IN_DIM), lambda i: (i, 0))]
    in_specs += [const_spec(p) for p in kparams]

    flops_per_row = 2 * (IN_DIM * HIDDEN_DIMS[0]
                         + HIDDEN_DIMS[0] * HIDDEN_DIMS[1]
                         + HIDDEN_DIMS[1] * HIDDEN_DIMS[2]
                         + HIDDEN_DIMS[2] * OUT_DIM)
    param_bytes = sum(int(p.size) * p.dtype.itemsize for p in kparams)
    cost = pl.CostEstimate(
        flops=flops_per_row * B_pad,
        transcendentals=3 * B_pad,                        # one rsqrt per row per LN layer
        bytes_accessed=B_pad * (IN_DIM + OUT_DIM) * 4 + param_bytes)

    out = pl.pallas_call(
        _fused_mlp_kernel,
        out_shape=jax.ShapeDtypeStruct((B_pad, OUT_DIM), jnp.float32),
        grid_spec=pltpu.PrefetchScalarGridSpec(
            num_scalar_prefetch=0,
            grid=(steps,),
            in_specs=in_specs,
            out_specs=pl.BlockSpec((bm, OUT_DIM), lambda i: (i, 0)),
        ),
        compiler_params=pltpu.CompilerParams(
            dimension_semantics=("parallel",)),
        cost_estimate=cost,
    )(x_p, *kparams)

    return out[:B]


def init_params(key):
    """Deterministic init matching nn.init.kaiming_normal_(fan_out, leaky_relu),
    zero biases, LayerNorm gamma=1 / beta=0.  Weights stored as (in, out), f32."""
    dims = [IN_DIM] + HIDDEN_DIMS + [OUT_DIM]
    gain = math.sqrt(2.0 / (1.0 + NEG_SLOPE ** 2))
    params = []
    keys = jax.random.split(key, len(dims) - 1)
    for li in range(len(dims) - 1):
        fan_in, fan_out = dims[li], dims[li + 1]
        std = gain / math.sqrt(fan_out)  # mode='fan_out'
        w = std * jax.random.normal(keys[li], (fan_in, fan_out), dtype=jnp.float32)
        b = jnp.zeros((1, fan_out), dtype=jnp.float32)
        params.append(w)
        params.append(b)
        if li < len(dims) - 2:  # hidden blocks have LayerNorm
            params.append(jnp.ones((1, fan_out), dtype=jnp.float32))   # gamma
            params.append(jnp.zeros((1, fan_out), dtype=jnp.float32))  # beta
    return tuple(params)


def reference_forward(x, params):
    """Pure-JAX f32 reference for correctness checking (matches the PyTorch forward)."""
    (w1, b1, g1, be1, w2, b2, g2, be2, w3, b3, g3, be3, w4, b4) = params

    def block(h, w, b, g, be):
        y = h @ w + b
        mu = jnp.mean(y, axis=-1, keepdims=True)
        var = jnp.mean((y - mu) ** 2, axis=-1, keepdims=True)
        yn = (y - mu) / jnp.sqrt(var + LN_EPS)
        yn = yn * g + be
        return jnp.where(yn > 0, yn, NEG_SLOPE * yn)

    h = block(x, w1, b1, g1, be1)
    h = block(h, w2, b2, g2, be2)
    h = block(h, w3, b3, g3, be3)
    return h @ w4 + b4


if __name__ == "__main__":
    key = jax.random.PRNGKey(0)
    k_param, k_x = jax.random.split(key)

    B = 300  # not a multiple of 8: exercises minimal-padding path (2 tiles x 152 rows = 304)
    x = jax.random.normal(k_x, (B, IN_DIM), dtype=jnp.float32)
    params = init_params(k_param)
    kparams = prepare_params(params)   # one-time bf16 weight cast, not on the per-call path

    out = spectral_fcnn_forward(x, kparams)
    out = jax.block_until_ready(out)

    ref = reference_forward(x, params)
    assert out.shape == (B, OUT_DIM)
    # bf16 matmul operands (f32 accumulation) vs f32 reference -> loosened tolerance.
    max_err = float(jnp.max(jnp.abs(out - ref)))
    assert jnp.allclose(out, ref, atol=2e-1, rtol=5e-2), max_err

    print("KERNEL_OK")
</pallas_src>

<mosaic_0001>
module attributes {stable_mosaic.version = 11 : i64} {
  func.func @_fused_mlp_kernel(%arg0: i32, %arg1: memref<152x147xf32, #tpu.memory_space<vmem>>, %arg2: memref<147x256xbf16, #tpu.memory_space<vmem>>, %arg3: memref<1x256xf32, #tpu.memory_space<vmem>>, %arg4: memref<1x256xf32, #tpu.memory_space<vmem>>, %arg5: memref<1x256xf32, #tpu.memory_space<vmem>>, %arg6: memref<256x128xbf16, #tpu.memory_space<vmem>>, %arg7: memref<1x128xf32, #tpu.memory_space<vmem>>, %arg8: memref<1x128xf32, #tpu.memory_space<vmem>>, %arg9: memref<1x128xf32, #tpu.memory_space<vmem>>, %arg10: memref<128x64xbf16, #tpu.memory_space<vmem>>, %arg11: memref<1x64xf32, #tpu.memory_space<vmem>>, %arg12: memref<1x64xf32, #tpu.memory_space<vmem>>, %arg13: memref<1x64xf32, #tpu.memory_space<vmem>>, %arg14: memref<64x1xbf16, #tpu.memory_space<vmem>>, %arg15: memref<1x1xf32, #tpu.memory_space<vmem>>, %arg16: memref<152x1xf32, #tpu.memory_space<vmem>>) attributes {dimension_semantics = [#tpu.dimension_semantics<parallel>], iteration_bounds = array<i64: 2>, scalar_prefetch = 0 : i64, scratch_operands = 0 : i64, tpu.core_type = #tpu.core_type<tc>, window_params = [{transform_indices = @transform_0, window_bounds = array<i64: 152, 147>}, {pipeline_mode = #tpu.pipeline_mode<synchronous>, transform_indices = @transform_1, window_bounds = array<i64: 147, 256>}, {pipeline_mode = #tpu.pipeline_mode<synchronous>, transform_indices = @transform_2, window_bounds = array<i64: 1, 256>}, {pipeline_mode = #tpu.pipeline_mode<synchronous>, transform_indices = @transform_3, window_bounds = array<i64: 1, 256>}, {pipeline_mode = #tpu.pipeline_mode<synchronous>, transform_indices = @transform_4, window_bounds = array<i64: 1, 256>}, {pipeline_mode = #tpu.pipeline_mode<synchronous>, transform_indices = @transform_5, window_bounds = array<i64: 256, 128>}, {pipeline_mode = #tpu.pipeline_mode<synchronous>, transform_indices = @transform_6, window_bounds = array<i64: 1, 128>}, {pipeline_mode = #tpu.pipeline_mode<synchronous>, transform_indices = @transform_7, window_bounds = array<i64: 1, 128>}, {pipeline_mode = #tpu.pipeline_mode<synchronous>, transform_indices = @transform_8, window_bounds = array<i64: 1, 128>}, {pipeline_mode = #tpu.pipeline_mode<synchronous>, transform_indices = @transform_9, window_bounds = array<i64: 128, 64>}, {pipeline_mode = #tpu.pipeline_mode<synchronous>, transform_indices = @transform_10, window_bounds = array<i64: 1, 64>}, {pipeline_mode = #tpu.pipeline_mode<synchronous>, transform_indices = @transform_11, window_bounds = array<i64: 1, 64>}, {pipeline_mode = #tpu.pipeline_mode<synchronous>, transform_indices = @transform_12, window_bounds = array<i64: 1, 64>}, {pipeline_mode = #tpu.pipeline_mode<synchronous>, transform_indices = @transform_13, window_bounds = array<i64: 64, 1>}, {pipeline_mode = #tpu.pipeline_mode<synchronous>, transform_indices = @transform_14, window_bounds = array<i64: 1, 1>}, {transform_indices = @transform_15, window_bounds = array<i64: 152, 1>}]} {
    %c0 = arith.constant 0 : index
    %c0_0 = arith.constant 0 : index
    %0 = vector.load %arg1[%c0, %c0_0] : memref<152x147xf32, #tpu.memory_space<vmem>>, vector<152x147xf32>
    %1 = arith.truncf %0 : vector<152x147xf32> to vector<152x147xbf16>
    %c0_1 = arith.constant 0 : index
    %c0_2 = arith.constant 0 : index
    %2 = vector.load %arg2[%c0_1, %c0_2] : memref<147x256xbf16, #tpu.memory_space<vmem>>, vector<147x256xbf16>
    %cst = arith.constant dense<0.000000e+00> : vector<152x256xf32>
    %3 = tpu.matmul %1, %2, %cst {dimension_numbers = #tpu.dot_dimension_numbers<[1], [0], [0], [1], [0, 0, 1, 1], [], []>} : vector<152x147xbf16>, vector<147x256xbf16>, vector<152x256xf32> -> vector<152x256xf32>
    %c0_3 = arith.constant 0 : index
    %c0_4 = arith.constant 0 : index
    %4 = vector.load %arg3[%c0_3, %c0_4] : memref<1x256xf32, #tpu.memory_space<vmem>>, vector<1x256xf32>
    %5 = vector.broadcast %4 : vector<1x256xf32> to vector<152x256xf32>
    %6 = arith.addf %3, %5 : vector<152x256xf32>
    %cst_5 = arith.constant dense<0.000000e+00> : vector<152xf32>
    %7 = vector.multi_reduction <add>, %6, %cst_5 [1] : vector<152x256xf32> to vector<152xf32>
    %8 = vector.shape_cast %7 : vector<152xf32> to vector<152x1xf32>
    %cst_6 = arith.constant 2.560000e+02 : f32
    %9 = vector.broadcast %cst_6 : f32 to vector<152x1xf32>
    %10 = arith.divf %8, %9 : vector<152x1xf32>
    %11 = arith.mulf %6, %6 : vector<152x256xf32>
    %cst_7 = arith.constant dense<0.000000e+00> : vector<152xf32>
    %12 = vector.multi_reduction <add>, %11, %cst_7 [1] : vector<152x256xf32> to vector<152xf32>
    %13 = vector.shape_cast %12 : vector<152xf32> to vector<152x1xf32>
    %cst_8 = arith.constant 2.560000e+02 : f32
    %14 = vector.broadcast %cst_8 : f32 to vector<152x1xf32>
    %15 = arith.divf %13, %14 : vector<152x1xf32>
    %16 = arith.mulf %10, %10 : vector<152x1xf32>
    %17 = arith.subf %15, %16 : vector<152x1xf32>
    %cst_9 = arith.constant 0.000000e+00 : f32
    %18 = vector.broadcast %cst_9 : f32 to vector<152x1xf32>
    %19 = arith.maximumf %17, %18 : vector<152x1xf32>
    %20 = vector.broadcast %10 : vector<152x1xf32> to vector<152x256xf32>
    %21 = arith.subf %6, %20 : vector<152x256xf32>
    %cst_10 = arith.constant 9.99999974E-6 : f32
    %22 = vector.broadcast %cst_10 : f32 to vector<152x1xf32>
    %23 = arith.addf %19, %22 : vector<152x1xf32>
    %24 = math.rsqrt %23 : vector<152x1xf32>
    %25 = vector.broadcast %24 : vector<152x1xf32> to vector<152x256xf32>
    %26 = arith.mulf %21, %25 : vector<152x256xf32>
    %c0_11 = arith.constant 0 : index
    %c0_12 = arith.constant 0 : index
    %27 = vector.load %arg4[%c0_11, %c0_12] : memref<1x256xf32, #tpu.memory_space<vmem>>, vector<1x256xf32>
    %28 = vector.broadcast %27 : vector<1x256xf32> to vector<152x256xf32>
    %29 = arith.mulf %26, %28 : vector<152x256xf32>
    %c0_13 = arith.constant 0 : index
    %c0_14 = arith.constant 0 : index
    %30 = vector.load %arg5[%c0_13, %c0_14] : memref<1x256xf32, #tpu.memory_space<vmem>>, vector<1x256xf32>
    %31 = vector.broadcast %30 : vector<1x256xf32> to vector<152x256xf32>
    %32 = arith.addf %29, %31 : vector<152x256xf32>
    %cst_15 = arith.constant 0.000000e+00 : f32
    %33 = vector.broadcast %cst_15 : f32 to vector<152x256xf32>
    %34 = arith.cmpf ogt, %32, %33 : vector<152x256xf32>
    %cst_16 = arith.constant 2.000000e-01 : f32
    %35 = vector.broadcast %cst_16 : f32 to vector<152x256xf32>
    %36 = arith.mulf %35, %32 : vector<152x256xf32>
    %37 = arith.select %34, %32, %36 : vector<152x256xi1>, vector<152x256xf32>
    %38 = arith.truncf %37 : vector<152x256xf32> to vector<152x256xbf16>
    %c0_17 = arith.constant 0 : index
    %c0_18 = arith.constant 0 : index
    %39 = vector.load %arg6[%c0_17, %c0_18] : memref<256x128xbf16, #tpu.memory_space<vmem>>, vector<256x128xbf16>
    %cst_19 = arith.constant dense<0.000000e+00> : vector<152x128xf32>
    %40 = tpu.matmul %38, %39, %cst_19 {dimension_numbers = #tpu.dot_dimension_numbers<[1], [0], [0], [1], [0, 0, 1, 1], [], []>} : vector<152x256xbf16>, vector<256x128xbf16>, vector<152x128xf32> -> vector<152x128xf32>
    %c0_20 = arith.constant 0 : index
    %c0_21 = arith.constant 0 : index
    %41 = vector.load %arg7[%c0_20, %c0_21] : memref<1x128xf32, #tpu.memory_space<vmem>>, vector<1x128xf32>
    %42 = vector.broadcast %41 : vector<1x128xf32> to vector<152x128xf32>
    %43 = arith.addf %40, %42 : vector<152x128xf32>
    %cst_22 = arith.constant dense<0.000000e+00> : vector<152xf32>
    %44 = vector.multi_reduction <add>, %43, %cst_22 [1] : vector<152x128xf32> to vector<152xf32>
    %45 = vector.shape_cast %44 : vector<152xf32> to vector<152x1xf32>
    %cst_23 = arith.constant 1.280000e+02 : f32
    %46 = vector.broadcast %cst_23 : f32 to vector<152x1xf32>
    %47 = arith.divf %45, %46 : vector<152x1xf32>
    %48 = arith.mulf %43, %43 : vector<152x128xf32>
    %cst_24 = arith.constant dense<0.000000e+00> : vector<152xf32>
    %49 = vector.multi_reduction <add>, %48, %cst_24 [1] : vector<152x128xf32> to vector<152xf32>
    %50 = vector.shape_cast %49 : vector<152xf32> to vector<152x1xf32>
    %cst_25 = arith.constant 1.280000e+02 : f32
    %51 = vector.broadcast %cst_25 : f32 to vector<152x1xf32>
    %52 = arith.divf %50, %51 : vector<152x1xf32>
    %53 = arith.mulf %47, %47 : vector<152x1xf32>
    %54 = arith.subf %52, %53 : vector<152x1xf32>
    %cst_26 = arith.constant 0.000000e+00 : f32
    %55 = vector.broadcast %cst_26 : f32 to vector<152x1xf32>
    %56 = arith.maximumf %54, %55 : vector<152x1xf32>
    %57 = vector.broadcast %47 : vector<152x1xf32> to vector<152x128xf32>
    %58 = arith.subf %43, %57 : vector<152x128xf32>
    %cst_27 = arith.constant 9.99999974E-6 : f32
    %59 = vector.broadcast %cst_27 : f32 to vector<152x1xf32>
    %60 = arith.addf %56, %59 : vector<152x1xf32>
    %61 = math.rsqrt %60 : vector<152x1xf32>
    %62 = vector.broadcast %61 : vector<152x1xf32> to vector<152x128xf32>
    %63 = arith.mulf %58, %62 : vector<152x128xf32>
    %c0_28 = arith.constant 0 : index
    %c0_29 = arith.constant 0 : index
    %64 = vector.load %arg8[%c0_28, %c0_29] : memref<1x128xf32, #tpu.memory_space<vmem>>, vector<1x128xf32>
    %65 = vector.broadcast %64 : vector<1x128xf32> to vector<152x128xf32>
    %66 = arith.mulf %63, %65 : vector<152x128xf32>
    %c0_30 = arith.constant 0 : index
    %c0_31 = arith.constant 0 : index
    %67 = vector.load %arg9[%c0_30, %c0_31] : memref<1x128xf32, #tpu.memory_space<vmem>>, vector<1x128xf32>
    %68 = vector.broadcast %67 : vector<1x128xf32> to vector<152x128xf32>
    %69 = arith.addf %66, %68 : vector<152x128xf32>
    %cst_32 = arith.constant 0.000000e+00 : f32
    %70 = vector.broadcast %cst_32 : f32 to vector<152x128xf32>
    %71 = arith.cmpf ogt, %69, %70 : vector<152x128xf32>
    %cst_33 = arith.constant 2.000000e-01 : f32
    %72 = vector.broadcast %cst_33 : f32 to vector<152x128xf32>
    %73 = arith.mulf %72, %69 : vector<152x128xf32>
    %74 = arith.select %71, %69, %73 : vector<152x128xi1>, vector<152x128xf32>
    %75 = arith.truncf %74 : vector<152x128xf32> to vector<152x128xbf16>
    %c0_34 = arith.constant 0 : index
    %c0_35 = arith.constant 0 : index
    %76 = vector.load %arg10[%c0_34, %c0_35] : memref<128x64xbf16, #tpu.memory_space<vmem>>, vector<128x64xbf16>
    %cst_36 = arith.constant dense<0.000000e+00> : vector<152x64xf32>
    %77 = tpu.matmul %75, %76, %cst_36 {dimension_numbers = #tpu.dot_dimension_numbers<[1], [0], [0], [1], [0, 0, 1, 1], [], []>} : vector<152x128xbf16>, vector<128x64xbf16>, vector<152x64xf32> -> vector<152x64xf32>
    %c0_37 = arith.constant 0 : index
    %c0_38 = arith.constant 0 : index
    %78 = vector.load %arg11[%c0_37, %c0_38] : memref<1x64xf32, #tpu.memory_space<vmem>>, vector<1x64xf32>
    %79 = vector.broadcast %78 : vector<1x64xf32> to vector<152x64xf32>
    %80 = arith.addf %77, %79 : vector<152x64xf32>
    %cst_39 = arith.constant dense<0.000000e+00> : vector<152xf32>
    %81 = vector.multi_reduction <add>, %80, %cst_39 [1] : vector<152x64xf32> to vector<152xf32>
    %82 = vector.shape_cast %81 : vector<152xf32> to vector<152x1xf32>
    %cst_40 = arith.constant 6.400000e+01 : f32
    %83 = vector.broadcast %cst_40 : f32 to vector<152x1xf32>
    %84 = arith.divf %82, %83 : vector<152x1xf32>
    %85 = arith.mulf %80, %80 : vector<152x64xf32>
    %cst_41 = arith.constant dense<0.000000e+00> : vector<152xf32>
    %86 = vector.multi_reduction <add>, %85, %cst_41 [1] : vector<152x64xf32> to vector<152xf32>
    %87 = vector.shape_cast %86 : vector<152xf32> to vector<152x1xf32>
    %cst_42 = arith.constant 6.400000e+01 : f32
    %88 = vector.broadcast %cst_42 : f32 to vector<152x1xf32>
    %89 = arith.divf %87, %88 : vector<152x1xf32>
    %90 = arith.mulf %84, %84 : vector<152x1xf32>
    %91 = arith.subf %89, %90 : vector<152x1xf32>
    %cst_43 = arith.constant 0.000000e+00 : f32
    %92 = vector.broadcast %cst_43 : f32 to vector<152x1xf32>
    %93 = arith.maximumf %91, %92 : vector<152x1xf32>
    %94 = vector.broadcast %84 : vector<152x1xf32> to vector<152x64xf32>
    %95 = arith.subf %80, %94 : vector<152x64xf32>
    %cst_44 = arith.constant 9.99999974E-6 : f32
    %96 = vector.broadcast %cst_44 : f32 to vector<152x1xf32>
    %97 = arith.addf %93, %96 : vector<152x1xf32>
    %98 = math.rsqrt %97 : vector<152x1xf32>
    %99 = vector.broadcast %98 : vector<152x1xf32> to vector<152x64xf32>
    %100 = arith.mulf %95, %99 : vector<152x64xf32>
    %c0_45 = arith.constant 0 : index
    %c0_46 = arith.constant 0 : index
    %101 = vector.load %arg12[%c0_45, %c0_46] : memref<1x64xf32, #tpu.memory_space<vmem>>, vector<1x64xf32>
    %102 = vector.broadcast %101 : vector<1x64xf32> to vector<152x64xf32>
    %103 = arith.mulf %100, %102 : vector<152x64xf32>
    %c0_47 = arith.constant 0 : index
    %c0_48 = arith.constant 0 : index
    %104 = vector.load %arg13[%c0_47, %c0_48] : memref<1x64xf32, #tpu.memory_space<vmem>>, vector<1x64xf32>
    %105 = vector.broadcast %104 : vector<1x64xf32> to vector<152x64xf32>
    %106 = arith.addf %103, %105 : vector<152x64xf32>
    %cst_49 = arith.constant 0.000000e+00 : f32
    %107 = vector.broadcast %cst_49 : f32 to vector<152x64xf32>
    %108 = arith.cmpf ogt, %106, %107 : vector<152x64xf32>
    %cst_50 = arith.constant 2.000000e-01 : f32
    %109 = vector.broadcast %cst_50 : f32 to vector<152x64xf32>
    %110 = arith.mulf %109, %106 : vector<152x64xf32>
    %111 = arith.select %108, %106, %110 : vector<152x64xi1>, vector<152x64xf32>
    %112 = arith.truncf %111 : vector<152x64xf32> to vector<152x64xbf16>
    %c0_51 = arith.constant 0 : index
    %c0_52 = arith.constant 0 : index
    %113 = vector.load %arg14[%c0_51, %c0_52] : memref<64x1xbf16, #tpu.memory_space<vmem>>, vector<64x1xbf16>
    %cst_53 = arith.constant dense<0.000000e+00> : vector<152x1xf32>
    %114 = tpu.matmul %112, %113, %cst_53 {dimension_numbers = #tpu.dot_dimension_numbers<[1], [0], [0], [1], [0, 0, 1, 1], [], []>} : vector<152x64xbf16>, vector<64x1xbf16>, vector<152x1xf32> -> vector<152x1xf32>
    %c0_54 = arith.constant 0 : index
    %c0_55 = arith.constant 0 : index
    %115 = vector.load %arg15[%c0_54, %c0_55] : memref<1x1xf32, #tpu.memory_space<vmem>>, vector<1x1xf32>
    %116 = vector.broadcast %115 : vector<1x1xf32> to vector<152x1xf32>
    %117 = arith.addf %114, %116 : vector<152x1xf32>
    %c0_56 = arith.constant 0 : index
    %c0_57 = arith.constant 0 : index
    %118 = vector.load %arg16[%c0_56, %c0_57] : memref<152x1xf32, #tpu.memory_space<vmem>>, vector<152x1xf32>
    tpu.vector_store %arg16[%c0_56, %c0_57], %117 {strides = array<i32>} : memref<152x1xf32, #tpu.memory_space<vmem>>, vector<152x1xf32>,
    return
  }
  func.func @transform_0(%arg0: i32) -> (i32, i32) {
    %c0_i32 = arith.constant 0 : i32
    %c0_i32_0 = arith.constant 0 : i32
    return %arg0, %c0_i32 : i32, i32
  }
  func.func @transform_1(%arg0: i32) -> (i32, i32) {
    %c0_i32 = arith.constant 0 : i32
    %c0_i32_0 = arith.constant 0 : i32
    %c0_i32_1 = arith.constant 0 : i32
    return %c0_i32, %c0_i32_0 : i32, i32
  }
  func.func @transform_2(%arg0: i32) -> (i32, i32) {
    %c0_i32 = arith.constant 0 : i32
    %c0_i32_0 = arith.constant 0 : i32
    %c0_i32_1 = arith.constant 0 : i32
    return %c0_i32, %c0_i32_0 : i32, i32
  }
  func.func @transform_3(%arg0: i32) -> (i32, i32) {
    %c0_i32 = arith.constant 0 : i32
    %c0_i32_0 = arith.constant 0 : i32
    %c0_i32_1 = arith.constant 0 : i32
    return %c0_i32, %c0_i32_0 : i32, i32
  }
  func.func @transform_4(%arg0: i32) -> (i32, i32) {
    %c0_i32 = arith.constant 0 : i32
    %c0_i32_0 = arith.constant 0 : i32
    %c0_i32_1 = arith.constant 0 : i32
    return %c0_i32, %c0_i32_0 : i32, i32
  }
  func.func @transform_5(%arg0: i32) -> (i32, i32) {
    %c0_i32 = arith.constant 0 : i32
    %c0_i32_0 = arith.constant 0 : i32
    %c0_i32_1 = arith.constant 0 : i32
    return %c0_i32, %c0_i32_0 : i32, i32
  }
  func.func @transform_6(%arg0: i32) -> (i32, i32) {
    %c0_i32 = arith.constant 0 : i32
    %c0_i32_0 = arith.constant 0 : i32
    %c0_i32_1 = arith.constant 0 : i32
    return %c0_i32, %c0_i32_0 : i32, i32
  }
  func.func @transform_7(%arg0: i32) -> (i32, i32) {
    %c0_i32 = arith.constant 0 : i32
    %c0_i32_0 = arith.constant 0 : i32
    %c0_i32_1 = arith.constant 0 : i32
    return %c0_i32, %c0_i32_0 : i32, i32
  }
  func.func @transform_8(%arg0: i32) -> (i32, i32) {
    %c0_i32 = arith.constant 0 : i32
    %c0_i32_0 = arith.constant 0 : i32
    %c0_i32_1 = arith.constant 0 : i32
    return %c0_i32, %c0_i32_0 : i32, i32
  }
  func.func @transform_9(%arg0: i32) -> (i32, i32) {
    %c0_i32 = arith.constant 0 : i32
    %c0_i32_0 = arith.constant 0 : i32
    %c0_i32_1 = arith.constant 0 : i32
    return %c0_i32, %c0_i32_0 : i32, i32
  }
  func.func @transform_10(%arg0: i32) -> (i32, i32) {
    %c0_i32 = arith.constant 0 : i32
    %c0_i32_0 = arith.constant 0 : i32
    %c0_i32_1 = arith.constant 0 : i32
    return %c0_i32, %c0_i32_0 : i32, i32
  }
  func.func @transform_11(%arg0: i32) -> (i32, i32) {
    %c0_i32 = arith.constant 0 : i32
    %c0_i32_0 = arith.constant 0 : i32
    %c0_i32_1 = arith.constant 0 : i32
    return %c0_i32, %c0_i32_0 : i32, i32
  }
  func.func @transform_12(%arg0: i32) -> (i32, i32) {
    %c0_i32 = arith.constant 0 : i32
    %c0_i32_0 = arith.constant 0 : i32
    %c0_i32_1 = arith.constant 0 : i32
    return %c0_i32, %c0_i32_0 : i32, i32
  }
  func.func @transform_13(%arg0: i32) -> (i32, i32) {
    %c0_i32 = arith.constant 0 : i32
    %c0_i32_0 = arith.constant 0 : i32
    %c0_i32_1 = arith.constant 0 : i32
    return %c0_i32, %c0_i32_0 : i32, i32
  }
  func.func @transform_14(%arg0: i32) -> (i32, i32) {
    %c0_i32 = arith.constant 0 : i32
    %c0_i32_0 = arith.constant 0 : i32
    %c0_i32_1 = arith.constant 0 : i32
    return %c0_i32, %c0_i32_0 : i32, i32
  }
  func.func @transform_15(%arg0: i32) -> (i32, i32) {
    %c0_i32 = arith.constant 0 : i32
    %c0_i32_0 = arith.constant 0 : i32
    return %arg0, %c0_i32 : i32, i32
  }
}

</mosaic_0001>

<bundles_post_ra>
// kernel: tpu_custom_call.1
= control target key start
LH: loop header
LB: loop body
LE: loop exit
PB: predicated region body
PF: predicated region fallthrough
CT: control target
= control target key end

     0   :  { %s3484_s20 = smov 0   ;;  %s4930_s0 = inlined_call_operand.vmem [shape: f32[304,147], index: 0, kind: input, shape index: {}]   ;;  %s4931_s1 = inlined_call_operand.vmem [shape: bf16[147,256], index: 1, kind: input, shape index: {}]   ;;  %s4932_s2 = inlined_call_operand.vmem [shape: f32[1,256], index: 2, kind: input, shape index: {}]   ;;  %s4933_s3 = inlined_call_operand.vmem [shape: f32[1,256], index: 3, kind: input, shape index: {}]   ;;  %s4934_s4 = inlined_call_operand.vmem [shape: f32[1,256], index: 4, kind: input, shape index: {}]   ;;  %s4935_s5 = inlined_call_operand.vmem [shape: bf16[256,128], index: 5, kind: input, shape index: {}]   ;;  %s4936_s6 = inlined_call_operand.vmem [shape: f32[1,128], index: 6, kind: input, shape index: {}]   ;;  %s4937_s7 = inlined_call_operand.vmem [shape: f32[1,128], index: 7, kind: input, shape index: {}]   ;;  %s4938_s8 = inlined_call_operand.vmem [shape: f32[1,128], index: 8, kind: input, shape index: {}]   ;;  %s4939_s9 = inlined_call_operand.vmem [shape: bf16[128,64], index: 9, kind: input, shape index: {}]   ;;  %s4940_s10 = inlined_call_operand.vmem [shape: f32[1,64], index: 10, kind: input, shape index: {}]   ;;  %s4941_s11 = inlined_call_operand.vmem [shape: f32[1,64], index: 11, kind: input, shape index: {}]   ;;  %s4942_s12 = inlined_call_operand.vmem [shape: f32[1,64], index: 12, kind: input, shape index: {}]   ;;  %s4943_s13 = inlined_call_operand.vmem [shape: bf16[64,1], index: 13, kind: input, shape index: {}]   ;;  %s4944_s14 = inlined_call_operand.<no memory space> [shape: f32[1,1], index: 14, kind: input, shape index: {}]   ;;  %s4945_s15 = inlined_call_operand.vmem [shape: f32[304,1], index: 15, kind: output, shape index: {}]  }
   0x1   :  { %v20_v0 = vstv %s4944_s14 }
   0x2   :  { %21 = vst [vmem:[#allocation2] sm:$0x1] %v20_v0 }
   0x3 LB: > { %s2954_s21 = sadd.s32 4294967295, %s3398_s20   ;;  %p2958_p0 = scmp.ge.s32.totalorder %s3398_s20, 1  ;;  %s3398_s20 = sphi %s3484_s20, %s27_s20  }
   0x4   : > { %p441_p1 = scmp.lt.s32.totalorder %s3398_s20, 3 }
   0x6   : > { %p442_p2 = pnand %p2958_p0, %p441_p1 }
   0x8   : > { %445 = sbr.rel (%p442_p2) target bundleno = 1556 (0x614), region = 80 }
   0xf   : > { %v3221_v1 = vld [vmem:[%s4931_s1 + $0x4] ss:$8 sps:$4 sm:$0xff]   ;;  %v3223_v2 = vld [vmem:[%s4931_s1] ss:$8 sps:$4 sm:$0xff]   ;;  %s490_s25 = smul.u32 19, %s2954_s21  ;;  %vm688_vm0 = vcmask 154624  }
  0x10   : > { %729 = vmatprep.subr.bf16.mxu0 %v3221_v1  ;;  %v3224_v3 = vld [vmem:[%s4931_s1 + $0x14] ss:$8 sps:$4 sm:$0xff]   ;;  %v3226_v4 = vld [vmem:[%s4931_s1 + $0x10] ss:$8 sps:$4 sm:$0xff]   ;;  %v3227_v5 = vld [vmem:[%s4931_s1 + $0x24] ss:$8 sps:$4 sm:$0xff]  }
  0x11   : > { %730 = vmatpush1.bf16.msra.mxu0 %v3223_v2  ;;  %p491_p3 = scmp.lt.s32.totalorder %s490_s25, 37  ;;  %v3229_v6 = vld [vmem:[%s4931_s1 + $0x20] ss:$8 sps:$4 sm:$0xff]   ;;  %v3230_v7 = vld [vmem:[%s4931_s1 + $0x34] ss:$8 sps:$4 sm:$0xff]   ;;  %vm719_vm1 = vcmask 1040384  }
  0x12   : > { %731 = vmatprep.subr.bf16.mxu0 %v3224_v3  ;;  %v3232_v8 = vld [vmem:[%s4931_s1 + $0x30] ss:$8 sps:$4 sm:$0xff]   ;;  %v3233_v9 = vld [vmem:[%s4931_s1 + $0x44] ss:$8 sps:$4 sm:$0xff]   ;;  %v3235_v13 = vld [vmem:[%s4931_s1 + $0x40] ss:$8 sps:$4 sm:$0xff]  }
  0x13   : > { %s4990_s25 = smov (!%p491_p3, %s490_s25), 37  ;;  %v3236_v14 = vld [vmem:[%s4931_s1 + $0x54] ss:$8 sps:$4 sm:$0xff]   ;;  %v3238_v15 = vld [vmem:[%s4931_s1 + $0x50] ss:$8 sps:$4 sm:$0xff]   ;;  %vm720_vm2 = vcmask 1041408  }
  0x14   : > { %s3039_s22 = sshll.u32 %s4990_s25, 4  ;;  %v3239_v16 = vld [vmem:[%s4931_s1 + $0x64] ss:$8 sps:$4 sm:$0xff]   ;;  %v3400_v17 = vmov 65535   ;;  %v3241_v19 = vld [vmem:[%s4931_s1 + $0x60] ss:$8 sps:$4 sm:$0xff]  }
  0x15   : > { %732 = vmatpush1.bf16.msra.mxu0 %v3226_v4  ;;  %s3519_s24 = scalar_lea.vmem %s4930_s0, %s3039_s22  ;;  %v721_v18 = vsel %vm719_vm1, 4294967295, %v3400_v17  ;;  %v3242_v20 = vld [vmem:[%s4931_s1 + $0x74] ss:$8 sps:$4 sm:$0xff]   ;;  %v3244_v22 = vld [vmem:[%s4931_s1 + $0x70] ss:$8 sps:$4 sm:$0xff]   ;;  %s2961_s27 = sshll.u32 %s4990_s25, 3 }
  0x16   : > { %733 = vmatprep.subr.bf16.mxu0 %v3227_v5  ;;  %v505_v10 = vld [vmem:[%s3519_s24 + $0x8] sm:$0xff]  ;;  %v507_v11 = vld [vmem:[%s3519_s24 + $0x18] sm:$0xff]  ;;  %v722_v21 = vsel %vm720_vm2, %v721_v18, 0  ;;  %v580_v23 = vld [vmem:[%s4931_s1 + $0x90] sm:$0x33]  ;;  %s4887_s30 = scalar_lea.vmem %s4945_s15, %s2961_s27 }
  0x17   : > { %v543_v12 = vpack.c.bf16 %v507_v11, %v505_v10  ;;  %v3245_v24 = vld [vmem:[%s4931_s1 + $0x84] ss:$8 sps:$4 sm:$0xff]   ;;  %v2981_v25 = vcombine.high %v580_v23, %v580_v23  ;;  %v3247_v26 = vld [vmem:[%s4931_s1 + $0x80] ss:$8 sps:$4 sm:$0xff]   ;;  %v2980_v27 = vcombine.low %v580_v23, %v580_v23  ;;  %v506_v30 = vld [vmem:[%s3519_s24 + $0x10] sm:$0xff] }
  0x18   : > { %v504_v29 = vld [vmem:[%s3519_s24] sm:$0xff]  ;;  %v509_v31 = vld [vmem:[%s3519_s24 + $0x28] sm:$0xff]  ;;  %v511_v32 = vld [vmem:[%s3519_s24 + $0x38] sm:$0xff] }
  0x19   : > { %734 = vmatpush1.bf16.msra.mxu0 %v3229_v6  ;;  %2982 = vmatprep.mubr.msk.bf16.mxu0 %vm688_vm0, %v543_v12  ;;  %v727_v28 = vand.u32 %v2981_v25, %v722_v21  ;;  %v724_v33 = vand.u32 %v2980_v27, %v722_v21  ;;  %v542_v34 = vpack.c.bf16 %v506_v30, %v504_v29  ;;  %v508_v36 = vld [vmem:[%s3519_s24 + $0x20] sm:$0xff]  ;;  %v510_v37 = vld [vmem:[%s3519_s24 + $0x30] sm:$0xff]  ;;  %v513_v38 = vld [vmem:[%s3519_s24 + $0x48] sm:$0xff]  ;;  %v583_v21 = vlaneseq }
  0x1a   : > { %735 = vmatprep.subr.bf16.mxu0 %v3230_v7  ;;  %v545_v35 = vpack.c.bf16 %v511_v32, %v509_v31  ;;  %v515_v39 = vld [vmem:[%s3519_s24 + $0x58] sm:$0xff]  ;;  %v544_v40 = vpack.c.bf16 %v510_v37, %v508_v36  ;;  %v512_v42 = vld [vmem:[%s3519_s24 + $0x40] sm:$0xff]  ;;  %v514_v43 = vld [vmem:[%s3519_s24 + $0x50] sm:$0xff] }
  0x1b   : > { %v547_v41 = vpack.c.bf16 %v515_v39, %v513_v38  ;;  %v517_v44 = vld [vmem:[%s3519_s24 + $0x68] sm:$0xff]  ;;  %v519_v45 = vld [vmem:[%s3519_s24 + $0x78] sm:$0xff]  ;;  %v546_v46 = vpack.c.bf16 %v514_v43, %v512_v42  ;;  %v516_v48 = vld [vmem:[%s3519_s24 + $0x60] sm:$0xff] }
  0x1c   : > { %v549_v47 = vpack.c.bf16 %v519_v45, %v517_v44  ;;  %v518_v49 = vld [vmem:[%s3519_s24 + $0x70] sm:$0xff]  ;;  %v521_v50 = vld [vmem:[%s3519_s24 + $0x88] sm:$0xff]  ;;  %v523_v51 = vld [vmem:[%s3519_s24 + $0x98] sm:$0xff] }
  0x1d   : > { %736 = vmatpush1.bf16.msra.mxu0 %v3232_v8  ;;  %v548_v52 = vpack.c.bf16 %v518_v49, %v516_v48  ;;  %v551_v53 = vpack.c.bf16 %v523_v51, %v521_v50  ;;  %v520_v54 = vld [vmem:[%s3519_s24 + $0x80] sm:$0xff]  ;;  %v522_v55 = vld [vmem:[%s3519_s24 + $0x90] sm:$0xff]  ;;  %v525_v56 = vld [vmem:[%s3519_s24 + $0xa8] sm:$0xff] }
  0x1e   : > { %737 = vmatprep.subr.bf16.mxu0 %v3233_v9  ;;  %v527_v57 = vld [vmem:[%s3519_s24 + $0xb8] sm:$0xff]  ;;  %v550_v58 = vpack.c.bf16 %v522_v55, %v520_v54  ;;  %v524_v60 = vld [vmem:[%s3519_s24 + $0xa0] sm:$0xff]  ;;  %v526_v61 = vld [vmem:[%s3519_s24 + $0xb0] sm:$0xff] }
  0x1f   : > { %v553_v59 = vpack.c.bf16 %v527_v57, %v525_v56  ;;  %v529_v62 = vld [vmem:[%s3519_s24 + $0xc8] sm:$0xff]  ;;  %v531_v63 = vld [vmem:[%s3519_s24 + $0xd8] sm:$0xff]  ;;  %v552_v0 = vpack.c.bf16 %v526_v61, %v524_v60  ;;  %v528_v2 = vld [vmem:[%s3519_s24 + $0xc0] sm:$0xff] }
  0x20   : > { %v555_v1 = vpack.c.bf16 %v531_v63, %v529_v62  ;;  %v530_v3 = vld [vmem:[%s3519_s24 + $0xd0] sm:$0xff]  ;;  %v533_v4 = vld [vmem:[%s3519_s24 + $0xe8] sm:$0xff]  ;;  %v535_v5 = vld [vmem:[%s3519_s24 + $0xf8] sm:$0xff] }
  0x21   : > { %738 = vmatpush1.bf16.msra.mxu0 %v3235_v13  ;;  %v554_v6 = vpack.c.bf16 %v530_v3, %v528_v2  ;;  %v557_v7 = vpack.c.bf16 %v535_v5, %v533_v4  ;;  %v532_v8 = vld [vmem:[%s3519_s24 + $0xe0] sm:$0xff]  ;;  %v534_v9 = vld [vmem:[%s3519_s24 + $0xf0] sm:$0xff]  ;;  %v537_v10 = vld [vmem:[%s3519_s24 + $0x108] sm:$0xff] }
  0x22   : > { %739 = vmatprep.subr.bf16.mxu0 %v3236_v14  ;;  %v539_v11 = vld [vmem:[%s3519_s24 + $0x118] sm:$0xff]  ;;  %v556_v12 = vpack.c.bf16 %v534_v9, %v532_v8  ;;  %v536_v14 = vld [vmem:[%s3519_s24 + $0x100] sm:$0xff] }
  0x23   : > { %v559_v13 = vpack.c.bf16 %v539_v11, %v537_v10  ;;  %v3250_v10 = vld [vmem:[%s4935_s5 + $0x40] sm:$0xff]  }
  0x24   : > { %3040 = vmatprep.subr.bf16.mxu1 %v3250_v10 }
  0x25   : > { %740 = vmatpush1.bf16.msra.mxu0 %v3238_v15  ;;  %v538_v15 = vld [vmem:[%s3519_s24 + $0x110] sm:$0xff] }
  0x26   : > { %741 = vmatprep.subr.bf16.mxu0 %v3239_v16  ;;  %v541_v16 = vld [vmem:[%s3519_s24 + $0x128] sm:$0xff]  ;;  %v558_v17 = vpack.c.bf16 %v538_v15, %v536_v14  ;;  %v3251_v15 = vld [vmem:[%s4935_s5] sm:$0xff]  }
  0x27   : > { %v561_v18 = vpack.c.bf16 %v541_v16, %v541_v16  ;;  %3041 = vmatpush3.bf16.msra.mxu1 %v3251_v15 }
  0x29   : > { %742 = vmatpush1.bf16.msra.mxu0 %v3241_v19  ;;  %v540_v19 = vld [vmem:[%s3519_s24 + $0x120] sm:$0xff] }
  0x2a   : > { %743 = vmatprep.subr.bf16.mxu0 %v3242_v20  ;;  %v560_v20 = vpack.c.bf16 %v540_v19, %v540_v19 }
  0x2d   : > { %744 = vmatpush1.bf16.msra.mxu0 %v3244_v22  ;;  %v584_v22 = vshrl.u32 %v583_v21, 7 }
  0x2e   : > { %745 = vmatprep.subr.bf16.mxu0 %v3245_v24  ;;  %v581_v24 = vld [vmem:[%s4932_s2] sm:$0x3] }
  0x2f   : > { %v3605_v23 = vsub.s32 0, %v584_v22  ;;  %v3610_v25 = vsub.s32 1, %v584_v22 }
  0x31   : > { %746 = vmatpush1.bf16.msra.mxu0 %v3247_v26  ;;  %v3613_v26 = vrot.slane %v581_v24, %v3605_v23  ;;  %v3616_v27 = vrot.slane %v581_v24, %v3610_v25 }
  0x32   : > { %747 = vmatprep.subr.bf16.mxu0 %v727_v28 }
  0x35   : > { %748 = vmatpush1.bf16.msra.mxu0 %v724_v33 }
  0x38   : > { %762 = vmatmul.mubr.bf16.vlgmr.msra.gmra.mrb[0].mxu0 %v542_v34 }
  0x39   : > { %2983 = vmatprep.mubr.msk.bf16.mxu0 %vm688_vm0, %v545_v35 }
  0x40   : > { %772 = vmatmul.mubr.bf16.gmra.mrb[4].mxu0 %v544_v40 }
  0x41   : > { %2984 = vmatprep.mubr.msk.bf16.mxu0 %vm688_vm0, %v547_v41 }
  0x48   : > { %782 = vmatmul.mubr.bf16.gmra.mrb[8].mxu0 %v546_v46 }
  0x49   : > { %2985 = vmatprep.mubr.msk.bf16.mxu0 %vm688_vm0, %v549_v47 }
  0x50   : > { %792 = vmatmul.mubr.bf16.gmra.mrb[12].mxu0 %v548_v52 }
  0x51   : > { %2986 = vmatprep.mubr.msk.bf16.mxu0 %vm688_vm0, %v551_v53 }
  0x58   : > { %802 = vmatmul.mubr.bf16.gmra.mrb[16].mxu0 %v550_v58 }
  0x59   : > { %2987 = vmatprep.mubr.msk.bf16.mxu0 %vm688_vm0, %v553_v59 }
  0x60   : > { %812 = vmatmul.mubr.bf16.gmra.mrb[20].mxu0 %v552_v0 }
  0x61   : > { %2988 = vmatprep.mubr.msk.bf16.mxu0 %vm688_vm0, %v555_v1 }
  0x68   : > { %822 = vmatmul.mubr.bf16.gmra.mrb[24].mxu0 %v554_v6 }
  0x69   : > { %2989 = vmatprep.mubr.msk.bf16.mxu0 %vm688_vm0, %v557_v7 }
  0x70   : > { %832 = vmatmul.mubr.bf16.gmra.mrb[28].mxu0 %v556_v12 }
  0x71   : > { %2990 = vmatprep.mubr.msk.bf16.mxu0 %vm688_vm0, %v559_v13 }
  0x78   : > { %842 = vmatmul.mubr.bf16.gmra.mrb[32].mxu0 %v558_v17 }
  0x79   : > { %2991 = vmatprep.mubr.msk.bf16.mxu0 %vm688_vm0, %v561_v18 }
  0x80   : > { %852 = vmatmul.mubr.bf16.gmra.mrb[36].mxu0 %v560_v20 }
 0x10b   : > { %v763_v28 = vpop.f32.mrb[0].mxu0 }
 0x10c   : > { %v3619_v29 = vadd.f32 %v763_v28, %v3613_v26  ;;  %v765_v30 = vpop.f32.mrb[1].mxu0 }
 0x10d   : > { %v3622_v31 = vadd.f32 %v765_v30, %v3616_v27  ;;  %v767_v32 = vpop.f32.mrb[2].mxu0  ;;  %v3252_v30 = vld [vmem:[%s4935_s5 + $0x48] sm:$0xff]  }
 0x10e   : > { %v3625_v33 = vadd.f32 %v767_v32, %v3613_v26  ;;  %v769_v34 = vpop.f32.mrb[3].mxu0  ;;  %v937_v35 = vmul.f32 %v3619_v29, %v3619_v29  ;;  %v3253_v32 = vld [vmem:[%s4935_s5 + $0x8] sm:$0xff]   ;;  %3042 = vmatprep.subr.bf16.mxu1 %v3252_v30 }
 0x10f   : > { %v3630_v36 = vadd.f32 %v769_v34, %v3616_v27  ;;  %v860_v37 = vadd.f32 %v3622_v31, %v3619_v29  ;;  %v938_v38 = vmul.f32 %v3622_v31, %v3622_v31  ;;  %3043 = vmatpush3.bf16.msra.mxu1 %v3253_v32 }
 0x110   : > { %v939_v40 = vmul.f32 %v3625_v33, %v3625_v33 }
 0x111   : > { %861 = vadd.xlane.f32.xlu0 %v860_v37  ;;  %v975_v39 = vadd.f32 %v938_v38, %v937_v35  ;;  %v940_v41 = vmul.f32 %v3630_v36, %v3630_v36  ;;  %v863_v43 = vadd.f32 %v3630_v36, %v3625_v33 }
 0x113   : > { %v773_v42 = vpop.f32.mrb[4].mxu0  ;;  %976 = vadd.xlane.f32.xlu1 %v975_v39  ;;  %v978_v48 = vadd.f32 %v940_v41, %v939_v40  ;;  %v3254_v40 = vld [vmem:[%s4935_s5 + $0x50] sm:$0xff]  }
 0x114   : > { %v3643_v44 = vadd.f32 %v773_v42, %v3613_v26  ;;  %v775_v45 = vpop.f32.mrb[5].mxu0  ;;  %3044 = vmatprep.subr.bf16.mxu1 %v3254_v40 }
 0x115   : > { %v3646_v46 = vadd.f32 %v775_v45, %v3616_v27  ;;  %v777_v47 = vpop.f32.mrb[6].mxu0  ;;  %864 = vadd.xlane.f32.xlu0 %v863_v43  ;;  %v3255_v43 = vld [vmem:[%s4935_s5 + $0x10] sm:$0xff]  }
 0x116   : > { %v3649_v49 = vadd.f32 %v777_v47, %v3613_v26  ;;  %v779_v50 = vpop.f32.mrb[7].mxu0  ;;  %v941_v53 = vmul.f32 %v3643_v44, %v3643_v44  ;;  %3045 = vmatpush3.bf16.msra.mxu1 %v3255_v43 }
 0x117   : > { %v3652_v51 = vadd.f32 %v779_v50, %v3616_v27  ;;  %979 = vadd.xlane.f32.xlu1 %v978_v48  ;;  %v866_v52 = vadd.f32 %v3646_v46, %v3643_v44  ;;  %v942_v54 = vmul.f32 %v3646_v46, %v3646_v46 }
 0x118   : > { %v943_v56 = vmul.f32 %v3649_v49, %v3649_v49 }
 0x119   : > { %867 = vadd.xlane.f32.xlu0 %v866_v52  ;;  %v869_v55 = vadd.f32 %v3652_v51, %v3649_v49  ;;  %v944_v57 = vmul.f32 %v3652_v51, %v3652_v51  ;;  %v981_v59 = vadd.f32 %v942_v54, %v941_v53 }
 0x11b   : > { %v783_v58 = vpop.f32.mrb[8].mxu0  ;;  %870 = vadd.xlane.f32.xlu1 %v869_v55  ;;  %v984_v0 = vadd.f32 %v944_v57, %v943_v56  ;;  %v3256_v57 = vld [vmem:[%s4935_s5 + $0x58] sm:$0xff]  }
 0x11c   : > { %v3667_v60 = vadd.f32 %v783_v58, %v3613_v26  ;;  %v785_v61 = vpop.f32.mrb[9].mxu0  ;;  %v3257_v58 = vld [vmem:[%s4935_s5 + $0x18] sm:$0xff]   ;;  %3046 = vmatprep.subr.bf16.mxu1 %v3256_v57 }
 0x11d   : > { %v3670_v62 = vadd.f32 %v785_v61, %v3616_v27  ;;  %v787_v63 = vpop.f32.mrb[10].mxu0  ;;  %982 = vadd.xlane.f32.xlu0 %v981_v59  ;;  %3047 = vmatpush3.bf16.msra.mxu1 %v3257_v58  ;;  %v3264_v57 = vld [vmem:[%s4935_s5 + $0x78] sm:$0xff]  }
 0x11e   : > { %v3673_v1 = vadd.f32 %v787_v63, %v3613_v26  ;;  %v789_v2 = vpop.f32.mrb[11].mxu0  ;;  %v945_v5 = vmul.f32 %v3667_v60, %v3667_v60  ;;  %v3265_v58 = vld [vmem:[%s4935_s5 + $0x38] sm:$0xff]  }
 0x11f   : > { %v3676_v3 = vadd.f32 %v789_v2, %v3616_v27  ;;  %985 = vadd.xlane.f32.xlu1 %v984_v0  ;;  %v872_v4 = vadd.f32 %v3670_v62, %v3667_v60  ;;  %v946_v6 = vmul.f32 %v3670_v62, %v3670_v62 }
 0x120   : > { %v947_v8 = vmul.f32 %v3673_v1, %v3673_v1 }
 0x121   : > { %873 = vadd.xlane.f32.xlu0 %v872_v4  ;;  %v875_v7 = vadd.f32 %v3676_v3, %v3673_v1  ;;  %v948_v9 = vmul.f32 %v3676_v3, %v3676_v3  ;;  %v987_v12 = vadd.f32 %v946_v6, %v945_v5  ;;  %v3258_v4 = vld [vmem:[%s4935_s5 + $0x60] sm:$0xff]  }
 0x122   : > { %3048 = vmatprep.subr.bf16.mxu1 %v3258_v4 }
 0x123   : > { %v793_v11 = vpop.f32.mrb[12].mxu0  ;;  %876 = vadd.xlane.f32.xlu1 %v875_v7  ;;  %v990_v18 = vadd.f32 %v948_v9, %v947_v8  ;;  %v3259_v7 = vld [vmem:[%s4935_s5 + $0x20] sm:$0xff]  }
 0x124   : > { %v3694_v13 = vadd.f32 %v793_v11, %v3613_v26  ;;  %v795_v14 = vpop.f32.mrb[13].mxu0  ;;  %3049 = vmatpush3.bf16.msra.mxu1 %v3259_v7 }
 0x125   : > { %v3700_v16 = vadd.f32 %v795_v14, %v3616_v27  ;;  %v797_v17 = vpop.f32.mrb[14].mxu0  ;;  %988 = vadd.xlane.f32.xlu0 %v987_v12 }
 0x126   : > { %v3703_v19 = vadd.f32 %v797_v17, %v3613_v26  ;;  %v799_v20 = vpop.f32.mrb[15].mxu0  ;;  %v949_v24 = vmul.f32 %v3694_v13, %v3694_v13 }
 0x127   : > { %v3706_v21 = vadd.f32 %v799_v20, %v3616_v27  ;;  %991 = vadd.xlane.f32.xlu1 %v990_v18  ;;  %v878_v22 = vadd.f32 %v3700_v16, %v3694_v13  ;;  %v950_v28 = vmul.f32 %v3700_v16, %v3700_v16  ;;  %v3260_v20 = vld [vmem:[%s4935_s5 + $0x68] sm:$0xff]  }
 0x128   : > { %v951_v35 = vmul.f32 %v3703_v19, %v3703_v19  ;;  %3050 = vmatprep.subr.bf16.mxu1 %v3260_v20 }
 0x129   : > { %879 = vadd.xlane.f32.xlu0 %v878_v22  ;;  %v881_v34 = vadd.f32 %v3706_v21, %v3703_v19  ;;  %v952_v37 = vmul.f32 %v3706_v21, %v3706_v21  ;;  %v993_v39 = vadd.f32 %v950_v28, %v949_v24  ;;  %v3261_v22 = vld [vmem:[%s4935_s5 + $0x28] sm:$0xff]  }
 0x12a   : > { %3051 = vmatpush3.bf16.msra.mxu1 %v3261_v22 }
 0x12b   : > { %v803_v38 = vpop.f32.mrb[16].mxu0  ;;  %882 = vadd.xlane.f32.xlu1 %v881_v34  ;;  %v996_v48 = vadd.f32 %v952_v37, %v951_v35  ;;  %v3262_v35 = vld [vmem:[%s4935_s5 + $0x70] sm:$0xff]  }
 0x12c   : > { %v3730_v41 = vadd.f32 %v803_v38, %v3613_v26  ;;  %v805_v42 = vpop.f32.mrb[17].mxu0  ;;  %3052 = vmatprep.subr.bf16.mxu1 %v3262_v35 }
 0x12d   : > { %v3736_v45 = vadd.f32 %v805_v42, %v3616_v27  ;;  %v807_v47 = vpop.f32.mrb[18].mxu0  ;;  %994 = vadd.xlane.f32.xlu0 %v993_v39  ;;  %v3263_v39 = vld [vmem:[%s4935_s5 + $0x30] sm:$0xff]  }
 0x12e   : > { %v3739_v50 = vadd.f32 %v807_v47, %v3613_v26  ;;  %v809_v52 = vpop.f32.mrb[19].mxu0  ;;  %v953_v55 = vmul.f32 %v3730_v41, %v3730_v41  ;;  %3053 = vmatpush3.bf16.msra.mxu1 %v3263_v39 }
 0x12f   : > { %v3742_v53 = vadd.f32 %v809_v52, %v3616_v27  ;;  %997 = vadd.xlane.f32.xlu1 %v996_v48  ;;  %v884_v54 = vadd.f32 %v3736_v45, %v3730_v41  ;;  %v954_v56 = vmul.f32 %v3736_v45, %v3736_v45  ;;  %3054 = vmatprep.subr.bf16.mxu1 %v3264_v57 }
 0x130   : > { %v955_v61 = vmul.f32 %v3739_v50, %v3739_v50 }
 0x131   : > { %885 = vadd.xlane.f32.xlu0 %v884_v54  ;;  %v887_v59 = vadd.f32 %v3742_v53, %v3739_v50  ;;  %v956_v63 = vmul.f32 %v3742_v53, %v3742_v53  ;;  %v999_v2 = vadd.f32 %v954_v56, %v953_v55 }
 0x132   : > { %3055 = vmatpush3.bf16.msra.mxu1 %v3265_v58 }
 0x133   : > { %v813_v0 = vpop.f32.mrb[20].mxu0  ;;  %888 = vadd.xlane.f32.xlu1 %v887_v59  ;;  %v1002_v10 = vadd.f32 %v956_v63, %v955_v61 }
 0x134   : > { %v3766_v5 = vadd.f32 %v813_v0, %v3613_v26  ;;  %v815_v6 = vpop.f32.mrb[21].mxu0 }
 0x135   : > { %v3772_v8 = vadd.f32 %v815_v6, %v3616_v27  ;;  %v817_v9 = vpop.f32.mrb[22].mxu0  ;;  %1000 = vadd.xlane.f32.xlu0 %v999_v2 }
 0x136   : > { %v3775_v11 = vadd.f32 %v817_v9, %v3613_v26  ;;  %v819_v12 = vpop.f32.mrb[23].mxu0  ;;  %v957_v17 = vmul.f32 %v3766_v5, %v3766_v5 }
 0x137   : > { %v3778_v14 = vadd.f32 %v819_v12, %v3616_v27  ;;  %1003 = vadd.xlane.f32.xlu1 %v1002_v10  ;;  %v890_v15 = vadd.f32 %v3772_v8, %v3766_v5  ;;  %v958_v18 = vmul.f32 %v3772_v8, %v3772_v8 }
 0x138   : > { %v959_v28 = vmul.f32 %v3775_v11, %v3775_v11 }
 0x139   : > { %891 = vadd.xlane.f32.xlu0 %v890_v15  ;;  %v893_v24 = vadd.f32 %v3778_v14, %v3775_v11  ;;  %v960_v30 = vmul.f32 %v3778_v14, %v3778_v14  ;;  %v1005_v34 = vadd.f32 %v958_v18, %v957_v17 }
 0x13b   : > { %v823_v32 = vpop.f32.mrb[24].mxu0  ;;  %894 = vadd.xlane.f32.xlu1 %v893_v24  ;;  %v1008_v43 = vadd.f32 %v960_v30, %v959_v28 }
 0x13c   : > { %v3802_v37 = vadd.f32 %v823_v32, %v3613_v26  ;;  %v825_v38 = vpop.f32.mrb[25].mxu0 }
 0x13d   : > { %v3808_v40 = vadd.f32 %v825_v38, %v3616_v27  ;;  %v827_v42 = vpop.f32.mrb[26].mxu0  ;;  %1006 = vadd.xlane.f32.xlu0 %v1005_v34 }
 0x13e   : > { %v3811_v47 = vadd.f32 %v827_v42, %v3613_v26  ;;  %v829_v48 = vpop.f32.mrb[27].mxu0  ;;  %v961_v55 = vmul.f32 %v3802_v37, %v3802_v37 }
 0x13f   : > { %v3814_v52 = vadd.f32 %v829_v48, %v3616_v27  ;;  %1009 = vadd.xlane.f32.xlu1 %v1008_v43  ;;  %v896_v54 = vadd.f32 %v3808_v40, %v3802_v37  ;;  %v962_v56 = vmul.f32 %v3808_v40, %v3808_v40 }
 0x140   : > { %v963_v61 = vmul.f32 %v3811_v47, %v3811_v47 }
 0x141   : > { %897 = vadd.xlane.f32.xlu0 %v896_v54  ;;  %v899_v59 = vadd.f32 %v3814_v52, %v3811_v47  ;;  %v964_v63 = vmul.f32 %v3814_v52, %v3814_v52  ;;  %v1011_v2 = vadd.f32 %v962_v56, %v961_v55 }
 0x143   : > { %v833_v0 = vpop.f32.mrb[28].mxu0  ;;  %900 = vadd.xlane.f32.xlu1 %v899_v59  ;;  %v1014_v10 = vadd.f32 %v964_v63, %v963_v61 }
 0x144   : > { %v3835_v4 = vadd.f32 %v833_v0, %v3613_v26  ;;  %v835_v6 = vpop.f32.mrb[29].mxu0 }
 0x145   : > { %v3838_v7 = vadd.f32 %v835_v6, %v3616_v27  ;;  %v837_v9 = vpop.f32.mrb[30].mxu0  ;;  %1012 = vadd.xlane.f32.xlu0 %v1011_v2 }
 0x146   : > { %v3841_v12 = vadd.f32 %v837_v9, %v3613_v26  ;;  %v839_v15 = vpop.f32.mrb[31].mxu0  ;;  %v965_v20 = vmul.f32 %v3835_v4, %v3835_v4 }
 0x147   : > { %v3844_v17 = vadd.f32 %v839_v15, %v3616_v27  ;;  %1015 = vadd.xlane.f32.xlu1 %v1014_v10  ;;  %v902_v18 = vadd.f32 %v3838_v7, %v3835_v4  ;;  %v966_v22 = vmul.f32 %v3838_v7, %v3838_v7 }
 0x148   : > { %v967_v28 = vmul.f32 %v3841_v12, %v3841_v12 }
 0x149   : > { %903 = vadd.xlane.f32.xlu0 %v902_v18  ;;  %v905_v24 = vadd.f32 %v3844_v17, %v3841_v12  ;;  %v968_v30 = vmul.f32 %v3844_v17, %v3844_v17  ;;  %v1017_v34 = vadd.f32 %v966_v22, %v965_v20 }
 0x14b   : > { %v843_v32 = vpop.f32.mrb[32].mxu0  ;;  %906 = vadd.xlane.f32.xlu1 %v905_v24  ;;  %v1020_v43 = vadd.f32 %v968_v30, %v967_v28 }
 0x14c   : > { %v3859_v35 = vadd.f32 %v843_v32, %v3613_v26  ;;  %v845_v38 = vpop.f32.mrb[33].mxu0 }
 0x14d   : > { %v3862_v39 = vadd.f32 %v845_v38, %v3616_v27  ;;  %v847_v42 = vpop.f32.mrb[34].mxu0  ;;  %1018 = vadd.xlane.f32.xlu0 %v1017_v34 }
 0x14e   : > { %v3865_v48 = vadd.f32 %v847_v42, %v3613_v26  ;;  %v849_v54 = vpop.f32.mrb[35].mxu0  ;;  %v969_v57 = vmul.f32 %v3859_v35, %v3859_v35 }
 0x14f   : > { %4956 = vst [vmem:[#allocation3_spill] sm:$0xff] %v3862_v39  ;;  %v3868_v55 = vadd.f32 %v849_v54, %v3616_v27  ;;  %1021 = vadd.xlane.f32.xlu1 %v1020_v43  ;;  %v908_v56 = vadd.f32 %v3862_v39, %v3859_v35  ;;  %v970_v58 = vmul.f32 %v3862_v39, %v3862_v39 }
 0x150   : > { %4957 = vst [vmem:[#allocation4_spill] sm:$0xff] %v3865_v48  ;;  %v971_v61 = vmul.f32 %v3865_v48, %v3865_v48 }
 0x151   : > { %4958 = vst [vmem:[#allocation5_spill] sm:$0xff] %v3868_v55  ;;  %909 = vadd.xlane.f32.xlu0 %v908_v56  ;;  %v911_v59 = vadd.f32 %v3868_v55, %v3865_v48  ;;  %v972_v63 = vmul.f32 %v3868_v55, %v3868_v55  ;;  %v1023_v2 = vadd.f32 %v970_v58, %v969_v57 }
 0x153   : > { %v853_v0 = vpop.f32.mrb[36].mxu0  ;;  %912 = vadd.xlane.f32.xlu1 %v911_v59  ;;  %v1026_v18 = vadd.f32 %v972_v63, %v971_v61 }
 0x154   : > { %v3883_v6 = vadd.f32 %v853_v0, %v3613_v26  ;;  %v855_v9 = vpop.f32.mrb[37].mxu0 }
 0x155   : > { %v3886_v10 = vadd.f32 %v855_v9, %v3616_v27  ;;  %1024 = vadd.xlane.f32.xlu0 %v1023_v2  ;;  %v857_v15 = vpop.f32.mrb[38].mxu0 }
 0x156   : > { %4959 = vst [vmem:[#allocation6_spill] sm:$0xff] %v3883_v6  ;;  %v858_v20 = vpop.f32.mrb[39].mxu0  ;;  %v973_v22 = vmul.f32 %v3883_v6, %v3883_v6 }
 0x157   : > { %4960 = vst [vmem:[#allocation7_spill] sm:$0xff] %v3886_v10  ;;  %1027 = vadd.xlane.f32.xlu1 %v1026_v18  ;;  %v914_v24 = vadd.f32 %v3886_v10, %v3883_v6  ;;  %v974_v28 = vmul.f32 %v3886_v10, %v3886_v10 }
 0x159   : > { %915 = vadd.xlane.f32.xlu0 %v914_v24  ;;  %v1029_v26 = vadd.f32 %v974_v28, %v973_v22 }
 0x15b   : > { %1030 = vadd.xlane.f32.xlu1 %v1029_v26 }
 0x19e   : > { %v862_v30 = vpop.xlane.xlu0 %861 }
 0x19f   : > { %v918_v27 = vmul.f32 0.00390625, %v862_v30 }
 0x1a0   : > { %v977_v32 = vpop.xlane.xlu1 %976 }
 0x1a1   : > { %v1032_v34 = vmul.f32 0.00390625, %v977_v32  ;;  %v1051_v38 = vmul.f32 %v918_v27, %v918_v27 }
 0x1a2   : > { %v865_v42 = vpop.xlane.xlu0 %864 }
 0x1a3   : > { %v1070_v43 = vsub.f32 %v1032_v34, %v1051_v38  ;;  %v3894_v54 = vmul.f32 0.00390625, %v865_v42  ;;  %v1222_v38 = vld [vmem:[%s4933_s3] sm:$0x3] }
 0x1a4   : > { %v980_v56 = vpop.xlane.xlu1 %979  ;;  %v1272_v42 = vld [vmem:[%s4934_s4] sm:$0x3] }
 0x1a5   : > { %v1089_v57 = vmax.f32 %v1070_v43, 0.0  ;;  %v1033_v58 = vmul.f32 0.00390625, %v980_v56  ;;  %v1052_v59 = vmul.f32 %v3894_v54, %v3894_v54 }
 0x1a6   : > { %v868_v61 = vpop.xlane.xlu0 %867 }
 0x1a7   : > { %v1146_v63 = vadd.f32 1e-05, %v1089_v57  ;;  %v3898_v0 = vmul.f32 0.00390625, %v868_v61  ;;  %v1071_v2 = vsub.f32 %v1033_v58, %v1052_v59  ;;  %v3915_v61 = vrot.slane %v1222_v38, %v3605_v23 }
 0x1a8   : > { %v871_v9 = vpop.xlane.xlu1 %870 }
 0x1a9   : > { %3278 = vrsqrt.f32 %v1146_v63  ;;  %v3900_v15 = vmul.f32 0.00390625, %v871_v9  ;;  %v1090_v18 = vmax.f32 %v1071_v2, 0.0  ;;  %v1053_v22 = vmul.f32 %v3898_v0, %v3898_v0 }
 0x1aa   : > { %v983_v20 = vpop.xlane.xlu0 %982  ;;  %v3918_v63 = vrot.slane %v1222_v38, %v3610_v25  ;;  %v3921_v2 = vrot.slane %v1272_v42, %v3605_v23  ;;  %v1108_v9 = vsub.f32 %v3619_v29, %v918_v27  ;;  %v1112_v29 = vsub.f32 %v3643_v44, %v3898_v0 }
 0x1ab   : > { %v1034_v24 = vmul.f32 0.00390625, %v983_v20  ;;  %v1147_v28 = vadd.f32 1e-05, %v1090_v18  ;;  %v1054_v32 = vmul.f32 %v3900_v15, %v3900_v15 }
 0x1ac   : > { %v986_v26 = vpop.xlane.xlu1 %985 }
 0x1ad   : > { %v1072_v30 = vsub.f32 %v1034_v24, %v1053_v22  ;;  %v1035_v34 = vmul.f32 0.00390625, %v986_v26  ;;  %3280 = vrsqrt.f32 %v1147_v28  ;;  %v3925_v22 = vrot.slane %v1272_v42, %v3610_v25 }
 0x1ae   : > { %v874_v43 = vpop.xlane.xlu0 %873  ;;  %v1109_v24 = vsub.f32 %v3622_v31, %v918_v27  ;;  %v1110_v28 = vsub.f32 %v3625_v33, %v3894_v54  ;;  %v1111_v26 = vsub.f32 %v3630_v36, %v3894_v54  ;;  %v1113_v31 = vsub.f32 %v3646_v46, %v3898_v0 }
 0x1af   : > { %v1091_v56 = vmax.f32 %v1072_v30, 0.0  ;;  %v1073_v57 = vsub.f32 %v1035_v34, %v1054_v32  ;;  %v3912_v58 = vmul.f32 0.00390625, %v874_v43 }
 0x1b0   : > { %v877_v59 = vpop.xlane.xlu1 %876 }
 0x1b1   : > { %v1148_v18 = vadd.f32 1e-05, %v1091_v56  ;;  %v1092_v20 = vmax.f32 %v1073_v57, 0.0  ;;  %v3932_v30 = vmul.f32 0.00390625, %v877_v59  ;;  %v1055_v25 = vmul.f32 %v3912_v58, %v3912_v58 }
 0x1b2   : > { %v989_v32 = vpop.xlane.xlu0 %988 }
 0x1b3   : > { %v3279_v23 = vpop.eup %3278  ;;  %3282 = vrsqrt.f32 %v1148_v18  ;;  %v1036_v34 = vmul.f32 0.00390625, %v989_v32  ;;  %v1149_v27 = vadd.f32 1e-05, %v1092_v20  ;;  %v1056_v42 = vmul.f32 %v3932_v30, %v3932_v30 }
 0x1b4   : > { %v992_v36 = vpop.xlane.xlu1 %991  ;;  %v1185_v54 = vmul.f32 %v3279_v23, %v1109_v24  ;;  %v1184_v44 = vmul.f32 %v3279_v23, %v1108_v9 }
 0x1b5   : > { %v1074_v38 = vsub.f32 %v1036_v34, %v1055_v25  ;;  %v1037_v43 = vmul.f32 0.00390625, %v992_v36  ;;  %3284 = vrsqrt.f32 %v1149_v27 }
 0x1b6   : > { %v880_v0 = vpop.xlane.xlu0 %879  ;;  %v1235_v59 = vmul.f32 %v3918_v63, %v1185_v54  ;;  %v1234_v36 = vmul.f32 %v3915_v61, %v1184_v44 }
 0x1b7   : > { %v1093_v20 = vmax.f32 %v1074_v38, 0.0  ;;  %v1075_v24 = vsub.f32 %v1037_v43, %v1056_v42  ;;  %v3953_v32 = vmul.f32 0.00390625, %v880_v0  ;;  %v3281_v9 = vpop.eup %3280 }
 0x1b8   : > { %v883_v25 = vpop.xlane.xlu1 %882  ;;  %v1285_v34 = vadd.f32 %v3925_v22, %v1235_v59  ;;  %v1187_v0 = vmul.f32 %v3281_v9, %v1111_v26  ;;  %v1186_v56 = vmul.f32 %v3281_v9, %v1110_v28 }
 0x1b9   : > { %v1150_v57 = vadd.f32 1e-05, %v1093_v20  ;;  %v1094_v46 = vmax.f32 %v1075_v24, 0.0  ;;  %v3963_v42 = vmul.f32 0.00390625, %v883_v25  ;;  %v1057_v27 = vmul.f32 %v3953_v32, %v3953_v32 }
 0x1ba   : > { %v995_v43 = vpop.xlane.xlu0 %994  ;;  %vm1323_vm3 = vcmp.gt.f32.partialorder %v1285_v34, 0.0  ;;  %v1361_v44 = vmul.f32 0.2, %v1285_v34  ;;  %v1237_v38 = vmul.f32 %v3918_v63, %v1187_v0  ;;  %v1284_v20 = vadd.f32 %v3921_v2, %v1234_v36 }
 0x1bb   : > { %3286 = vrsqrt.f32 %v1150_v57  ;;  %v1151_v59 = vadd.f32 1e-05, %v1094_v46  ;;  %v1038_v18 = vmul.f32 0.00390625, %v995_v43  ;;  %v1058_v25 = vmul.f32 %v3963_v42, %v3963_v42 }
 0x1bc   : > { %v998_v54 = vpop.xlane.xlu1 %997  ;;  %v1399_v57 = vsel %vm1323_vm3, %v1285_v34, %v1361_v44  ;;  %v1287_v43 = vadd.f32 %v3925_v22, %v1237_v38  ;;  %vm1322_vm5 = vcmp.gt.f32.partialorder %v1284_v20, 0.0 }
 0x1bd   : > { %v3283_v23 = vpop.eup %3282  ;;  %3288 = vrsqrt.f32 %v1151_v59  ;;  %v1076_v26 = vsub.f32 %v1038_v18, %v1057_v27  ;;  %v1039_v33 = vmul.f32 0.00390625, %v998_v54  ;;  %v1236_v59 = vmul.f32 %v3915_v61, %v1186_v56 }
 0x1be   : > { %v886_v46 = vpop.xlane.xlu0 %885  ;;  %v1189_v10 = vmul.f32 %v3283_v23, %v1113_v31  ;;  %v1188_v48 = vmul.f32 %v3283_v23, %v1112_v29  ;;  %vm1325_vm4 = vcmp.gt.f32.partialorder %v1287_v43, 0.0  ;;  %v1363_v0 = vmul.f32 0.2, %v1287_v43 }
 0x1bf   : > { %v1095_v6 = vmax.f32 %v1076_v26, 0.0  ;;  %v1077_v24 = vsub.f32 %v1039_v33, %v1058_v25  ;;  %v3976_v55 = vmul.f32 0.00390625, %v886_v46  ;;  %v3285_v31 = vpop.eup %3284  ;;  %v1286_v36 = vadd.f32 %v3921_v2, %v1236_v59 }
 0x1c0   : > { %v889_v39 = vpop.xlane.xlu1 %888  ;;  %v1401_v23 = vsel %vm1325_vm4, %v1287_v43, %v1363_v0  ;;  %v1360_v43 = vmul.f32 0.2, %v1284_v20  ;;  %v4961_v59 = vsub.f32 %v3652_v51, %v3900_v15 }
 0x1c1   : > { %v1152_v18 = vadd.f32 1e-05, %v1095_v6  ;;  %v1096_v34 = vmax.f32 %v1077_v24, 0.0  ;;  %v1125_v28 = vsub.f32 %v3736_v45, %v3976_v55  ;;  %v3983_v9 = vmul.f32 0.00390625, %v889_v39 }
 0x1c2   : > { %v1059_v29 = vmul.f32 %v3976_v55, %v3976_v55  ;;  %v1001_v33 = vpop.xlane.xlu0 %1000  ;;  %v1437_v38 = vpack.c.bf16 %v1401_v23, %v1399_v57  ;;  %vm1324_vm6 = vcmp.gt.f32.partialorder %v1286_v36, 0.0  ;;  %v1362_v0 = vmul.f32 0.2, %v1286_v36 }
 0x1c3   : > { %3290 = vrsqrt.f32 %v1152_v18  ;;  %v1153_v56 = vadd.f32 1e-05, %v1096_v34  ;;  %v1040_v6 = vmul.f32 0.00390625, %v1001_v33  ;;  %v1060_v39 = vmul.f32 %v3983_v9, %v3983_v9 }
 0x1c4   : > { %v1004_v24 = vpop.xlane.xlu1 %1003  ;;  %1623 = vmatprep.mubr.bf16.mxu1 %v1437_v38  ;;  %v1191_v18 = vmul.f32 %v3285_v31, %v4961_v59  ;;  %v1239_v34 = vmul.f32 %v3918_v63, %v1189_v10  ;;  %v4962_v33 = vsub.f32 %v3649_v49, %v3900_v15  ;;  %v1400_v38 = vsel %vm1324_vm6, %v1286_v36, %v1362_v0 }
 0x1c5   : > { %v3994_v25 = vpop.eup %3286  ;;  %3292 = vrsqrt.f32 %v1153_v56  ;;  %v1078_v26 = vsub.f32 %v1040_v6, %v1059_v29  ;;  %v1041_v46 = vmul.f32 0.00390625, %v1004_v24  ;;  %v1398_v29 = vsel %vm1322_vm5, %v1284_v20, %v1360_v43 }
 0x1c6   : > { %v892_v57 = vpop.xlane.xlu0 %891  ;;  %v1190_v23 = vmul.f32 %v3285_v31, %v4962_v33  ;;  %v1241_v51 = vmul.f32 %v3918_v63, %v1191_v18  ;;  %v1289_v59 = vadd.f32 %v3925_v22, %v1239_v34  ;;  %v1238_v10 = vmul.f32 %v3915_v61, %v1188_v48 }
 0x1c7   : > { %v4003_v27 = vpop.eup %3288  ;;  %v1097_v54 = vmax.f32 %v1078_v26, 0.0  ;;  %v1079_v56 = vsub.f32 %v1041_v46, %v1060_v39  ;;  %v4006_v6 = vmul.f32 0.00390625, %v892_v57  ;;  %v1436_v15 = vpack.c.bf16 %v1400_v38, %v1398_v29 }
 0x1c8   : > { %v895_v24 = vpop.xlane.xlu1 %894  ;;  %v1291_v46 = vadd.f32 %v3925_v22, %v1241_v51  ;;  %vm1327_vm7 = vcmp.gt.f32.partialorder %v1289_v59, 0.0  ;;  %v1365_v57 = vmul.f32 0.2, %v1289_v59  ;;  %v1288_v51 = vadd.f32 %v3921_v2, %v1238_v10 }
 0x1c9   : > { %v1154_v44 = vadd.f32 1e-05, %v1097_v54  ;;  %v1098_v49 = vmax.f32 %v1079_v56, 0.0  ;;  %v1129_v20 = vsub.f32 %v3772_v8, %v4006_v6  ;;  %v4016_v39 = vmul.f32 0.00390625, %v895_v24  ;;  %1624 = vmatmul.mubr.bf16.vlgmr.msra.gmra.mrb[0].mxu1 %v1436_v15 }
 0x1ca   : > { %v1061_v36 = vmul.f32 %v4006_v6, %v4006_v6  ;;  %v1007_v26 = vpop.xlane.xlu0 %1006  ;;  %vm1329_vm8 = vcmp.gt.f32.partialorder %v1291_v46, 0.0  ;;  %v1367_v56 = vmul.f32 0.2, %v1291_v46  ;;  %v1403_v29 = vsel %vm1327_vm7, %v1289_v59, %v1365_v57 }
 0x1cb   : > { %3294 = vrsqrt.f32 %v1154_v44  ;;  %v1155_v43 = vadd.f32 1e-05, %v1098_v49  ;;  %v1042_v48 = vmul.f32 0.00390625, %v1007_v26  ;;  %v1062_v44 = vmul.f32 %v4016_v39, %v4016_v39 }
 0x1cc   : > { %v1010_v18 = vpop.xlane.xlu1 %1009  ;;  %v1240_v24 = vmul.f32 %v3915_v61, %v1190_v23  ;;  %v1405_v54 = vsel %vm1329_vm8, %v1291_v46, %v1367_v56  ;;  %vm1326_vm9 = vcmp.gt.f32.partialorder %v1288_v51, 0.0  ;;  %v1364_v10 = vmul.f32 0.2, %v1288_v51 }
 0x1cd   : > { %v4025_v34 = vpop.eup %3290  ;;  %3296 = vrsqrt.f32 %v1155_v43  ;;  %v1080_v33 = vsub.f32 %v1042_v48, %v1061_v36  ;;  %v1043_v38 = vmul.f32 0.00390625, %v1010_v18  ;;  %v4963_v36 = vsub.f32 %v3670_v62, %v3912_v58 }
 0x1ce   : > { %v898_v49 = vpop.xlane.xlu0 %897  ;;  %v1439_v48 = vpack.c.bf16 %v1405_v54, %v1403_v29  ;;  %v1290_v59 = vadd.f32 %v3921_v2, %v1240_v24  ;;  %v4976_v45 = vsub.f32 %v3739_v50, %v3983_v9  ;;  %v4981_v8 = vsub.f32 %v3775_v11, %v4016_v39 }
 0x1cf   : > { %v4031_v15 = vpop.eup %3292  ;;  %v1099_v26 = vmax.f32 %v1080_v33, 0.0  ;;  %v4033_v31 = vmul.f32 0.00390625, %v898_v49  ;;  %v1193_v43 = vmul.f32 %v3994_v25, %v4963_v36  ;;  %v1081_v0 = vsub.f32 %v1043_v38, %v1062_v44 }
 0x1d0   : > { %v901_v23 = vpop.xlane.xlu1 %900  ;;  %1631 = vmatprep.mubr.bf16.mxu1 %v1439_v48  ;;  %vm1328_vm10 = vcmp.gt.f32.partialorder %v1290_v59, 0.0  ;;  %v1366_v62 = vmul.f32 0.2, %v1290_v59  ;;  %v1402_v44 = vsel %vm1326_vm9, %v1288_v51, %v1364_v10  ;;  %v4964_v51 = vsub.f32 %v3676_v3, %v3932_v30 }
 0x1d1   : > { %v1156_v57 = vadd.f32 1e-05, %v1099_v26  ;;  %v1133_v46 = vsub.f32 %v3808_v40, %v4033_v31  ;;  %v1100_v33 = vmax.f32 %v1081_v0, 0.0  ;;  %v4044_v56 = vmul.f32 0.00390625, %v901_v23 }
 0x1d2   : > { %v1013_v54 = vpop.xlane.xlu0 %1012  ;;  %v1063_v29 = vmul.f32 %v4033_v31, %v4033_v31  ;;  %v1404_v49 = vsel %vm1328_vm10, %v1290_v59, %v1366_v62  ;;  %v1243_v10 = vmul.f32 %v3918_v63, %v1193_v43  ;;  %v4965_v62 = vsub.f32 %v3667_v60, %v3912_v58 }
 0x1d3   : > { %3298 = vrsqrt.f32 %v1156_v57  ;;  %v1044_v38 = vmul.f32 0.00390625, %v1013_v54  ;;  %v1157_v24 = vadd.f32 1e-05, %v1100_v33  ;;  %v1135_v36 = vsub.f32 %v3814_v52, %v4044_v56 }
 0x1d4   : > { %v1016_v0 = vpop.xlane.xlu1 %1015  ;;  %v1438_v23 = vpack.c.bf16 %v1404_v49, %v1402_v44  ;;  %v1195_v57 = vmul.f32 %v4003_v27, %v4964_v51  ;;  %v1064_v59 = vmul.f32 %v4044_v56, %v4044_v56  ;;  %v1192_v54 = vmul.f32 %v3994_v25, %v4965_v62 }
 0x1d5   : > { %v4052_v48 = vpop.eup %3294  ;;  %v1082_v18 = vsub.f32 %v1044_v38, %v1063_v29  ;;  %3300 = vrsqrt.f32 %v1157_v24  ;;  %v1045_v33 = vmul.f32 0.00390625, %v1016_v0  ;;  %v1293_v38 = vadd.f32 %v3925_v22, %v1243_v10 }
 0x1d6   : > { %v904_v26 = vpop.xlane.xlu0 %903  ;;  %1632 = vmatmul.mubr.bf16.gmra.mrb[4].mxu1 %v1438_v23  ;;  %v1245_v3 = vmul.f32 %v3918_v63, %v1195_v57  ;;  %v4966_v43 = vsub.f32 %v3673_v1, %v3932_v30  ;;  %v1242_v0 = vmul.f32 %v3915_v61, %v1192_v54  ;;  %v4967_v25 = vsub.f32 %v3700_v16, %v3953_v32 }
 0x1d7   : > { %v4065_v44 = vpop.eup %3296  ;;  %v1101_v29 = vmax.f32 %v1082_v18, 0.0  ;;  %v1083_v49 = vsub.f32 %v1045_v33, %v1064_v59  ;;  %v4074_v60 = vmul.f32 0.00390625, %v904_v26  ;;  %vm1331_vm11 = vcmp.gt.f32.partialorder %v1293_v38, 0.0 }
 0x1d8   : > { %v1194_v24 = vmul.f32 %v4003_v27, %v4966_v43  ;;  %v907_v58 = vpop.xlane.xlu1 %906  ;;  %v1197_v18 = vmul.f32 %v4025_v34, %v4967_v25  ;;  %v1295_v51 = vadd.f32 %v3925_v22, %v1245_v3  ;;  %v1369_v57 = vmul.f32 0.2, %v1293_v38 }
 0x1d9   : > { %v1158_v23 = vadd.f32 1e-05, %v1101_v29  ;;  %v1102_v10 = vmax.f32 %v1083_v49, 0.0  ;;  %v1292_v30 = vadd.f32 %v3921_v2, %v1242_v0  ;;  %v4090_v49 = vmul.f32 0.00390625, %v907_v58 }
 0x1da   : > { %v1244_v1 = vmul.f32 %v3915_v61, %v1194_v24  ;;  %v1019_v26 = vpop.xlane.xlu0 %1018  ;;  %vm1333_vm12 = vcmp.gt.f32.partialorder %v1295_v51, 0.0  ;;  %v1371_v59 = vmul.f32 0.2, %v1295_v51  ;;  %v1407_v16 = vsel %vm1331_vm11, %v1293_v38, %v1369_v57 }
 0x1db   : > { %3302 = vrsqrt.f32 %v1158_v23  ;;  %v1159_v33 = vadd.f32 1e-05, %v1102_v10  ;;  %vm1330_vm13 = vcmp.gt.f32.partialorder %v1292_v30, 0.0  ;;  %v1368_v54 = vmul.f32 0.2, %v1292_v30 }
 0x1dc   : > { %v1294_v62 = vadd.f32 %v3921_v2, %v1244_v1  ;;  %v1022_v29 = vpop.xlane.xlu1 %1021  ;;  %v1409_v43 = vsel %vm1333_vm12, %v1295_v51, %v1371_v59  ;;  %v1065_v0 = vmul.f32 %v4074_v60, %v4074_v60  ;;  %v1046_v1 = vmul.f32 0.00390625, %v1019_v26 }
 0x1dd   : > { %v4086_v3 = vpop.eup %3298  ;;  %v1441_v25 = vpack.c.bf16 %v1409_v43, %v1407_v16  ;;  %3304 = vrsqrt.f32 %v1159_v33  ;;  %v1406_v57 = vsel %vm1330_vm13, %v1292_v30, %v1368_v54  ;;  %v4968_v27 = vsub.f32 %v3706_v21, %v3963_v42 }
 0x1de   : > { %vm1332_vm14 = vcmp.gt.f32.partialorder %v1294_v62, 0.0  ;;  %v1370_v38 = vmul.f32 0.2, %v1294_v62  ;;  %v910_v23 = vpop.xlane.xlu0 %909  ;;  %v1247_v33 = vmul.f32 %v3918_v63, %v1197_v18  ;;  %v1066_v30 = vmul.f32 %v4090_v49, %v4090_v49 }
 0x1df   : > { %v4098_v59 = vpop.eup %3300  ;;  %1639 = vmatprep.mubr.bf16.mxu1 %v1441_v25  ;;  %v1199_v16 = vmul.f32 %v4031_v15, %v4968_v27  ;;  %v1084_v10 = vsub.f32 %v1046_v1, %v1065_v0  ;;  %v1047_v24 = vmul.f32 0.00390625, %v1022_v29  ;;  %v4969_v26 = vsub.f32 %v3694_v13, %v3953_v32 }
 0x1e0   : > { %v1408_v58 = vsel %vm1332_vm14, %v1294_v62, %v1370_v38  ;;  %v913_v54 = vpop.xlane.xlu1 %912  ;;  %v1297_v21 = vadd.f32 %v3925_v22, %v1247_v33  ;;  %v4970_v27 = vsub.f32 %v3703_v19, %v3963_v42  ;;  %v4117_v38 = vmul.f32 0.00390625, %v910_v23 }
 0x1e1   : > { %v1440_v43 = vpack.c.bf16 %v1408_v58, %v1406_v57  ;;  %v1196_v25 = vmul.f32 %v4025_v34, %v4969_v26  ;;  %v1249_v62 = vmul.f32 %v3918_v63, %v1199_v16  ;;  %v1103_v57 = vmax.f32 %v1084_v10, 0.0 }
 0x1e2   : > { %v1198_v18 = vmul.f32 %v4031_v15, %v4970_v27  ;;  %v1085_v0 = vsub.f32 %v1047_v24, %v1066_v30  ;;  %v4120_v1 = vmul.f32 0.00390625, %v913_v54  ;;  %vm1335_vm15 = vcmp.gt.f32.partialorder %v1297_v21, 0.0  ;;  %v1025_v58 = vpop.xlane.xlu0 %1024  ;;  %v4971_v27 = vld [vmem:[#allocation3_spill] sm:$0xff] }
 0x1e3   : > { %1640 = vmatmul.mubr.bf16.gmra.mrb[8].mxu1 %v1440_v43  ;;  %v1246_v29 = vmul.f32 %v3915_v61, %v1196_v25  ;;  %v1299_v13 = vadd.f32 %v3925_v22, %v1249_v62  ;;  %v1373_v32 = vmul.f32 0.2, %v1297_v21  ;;  %v1160_v42 = vadd.f32 1e-05, %v1103_v57 }
 0x1e4   : > { %v1248_v34 = vmul.f32 %v3915_v61, %v1198_v18  ;;  %v1028_v16 = vpop.xlane.xlu1 %1027  ;;  %v1104_v15 = vmax.f32 %v1085_v0, 0.0  ;;  %v1141_v18 = vsub.f32 %v4971_v27, %v4117_v38  ;;  %v1048_v24 = vmul.f32 0.00390625, %v1025_v58 }
 0x1e5   : > { %v4124_v19 = vpop.eup %3302  ;;  %v1296_v23 = vadd.f32 %v3921_v2, %v1246_v29  ;;  %vm1337_vm0 = vcmp.gt.f32.partialorder %v1299_v13, 0.0  ;;  %v1375_v10 = vmul.f32 0.2, %v1299_v13  ;;  %v1411_v33 = vsel %vm1335_vm15, %v1297_v21, %v1373_v32  ;;  %v4972_v29 = vld [vmem:[#allocation4_spill] sm:$0xff] }
 0x1e6   : > { %v1298_v30 = vadd.f32 %v3921_v2, %v1248_v34  ;;  %3306 = vrsqrt.f32 %v1160_v42  ;;  %v1161_v54 = vadd.f32 1e-05, %v1104_v15  ;;  %v1142_v21 = vsub.f32 %v4972_v29, %v4120_v1  ;;  %v4973_v34 = vld [vmem:[#allocation5_spill] sm:$0xff] }
 0x1e7   : > { %vm1334_vm1 = vcmp.gt.f32.partialorder %v1296_v23, 0.0  ;;  %v1372_v43 = vmul.f32 0.2, %v1296_v23  ;;  %v4130_v26 = vpop.eup %3304  ;;  %v1413_v25 = vsel %vm1337_vm0, %v1299_v13, %v1375_v10  ;;  %v1143_v42 = vsub.f32 %v4973_v34, %v4120_v1  ;;  %v916_v13 = vpop.xlane.xlu0 %915 }
 0x1e8   : > { %vm1336_vm2 = vcmp.gt.f32.partialorder %v1298_v30, 0.0  ;;  %v1374_v62 = vmul.f32 0.2, %v1298_v30  ;;  %v1443_v57 = vpack.c.bf16 %v1413_v25, %v1411_v33  ;;  %3308 = vrsqrt.f32 %v1161_v54  ;;  %v1031_v10 = vpop.xlane.xlu1 %1030 }
 0x1e9   : > { %v1410_v0 = vsel %vm1334_vm1, %v1296_v23, %v1372_v43  ;;  %v1067_v15 = vmul.f32 %v4117_v38, %v4117_v38  ;;  %v1201_v23 = vmul.f32 %v4052_v48, %v1125_v28  ;;  %v4974_v33 = vsub.f32 %v3742_v53, %v3983_v9  ;;  %v4977_v9 = vld [vmem:[#allocation6_spill] sm:$0xff] }
 0x1ea   : > { %v1412_v32 = vsel %vm1336_vm2, %v1298_v30, %v1374_v62  ;;  %1647 = vmatprep.mubr.bf16.mxu1 %v1443_v57  ;;  %v1068_v54 = vmul.f32 %v4120_v1, %v4120_v1  ;;  %v1049_v25 = vmul.f32 0.00390625, %v1028_v16  ;;  %v4975_v58 = vsub.f32 %v3730_v41, %v3976_v55 }
 0x1eb   : > { %v1442_v51 = vpack.c.bf16 %v1412_v32, %v1410_v0  ;;  %v1203_v30 = vmul.f32 %v4065_v44, %v4974_v33  ;;  %v1086_v43 = vsub.f32 %v1048_v24, %v1067_v15  ;;  %v1202_v28 = vmul.f32 %v4065_v44, %v4976_v45  ;;  %v4978_v44 = vld [vmem:[#allocation7_spill] sm:$0xff] }
 0x1ec   : > { %v1200_v62 = vmul.f32 %v4052_v48, %v4975_v58  ;;  %v1251_v53 = vmul.f32 %v3918_v63, %v1201_v23  ;;  %v4160_v0 = vmul.f32 0.00390625, %v916_v13  ;;  %v1050_v32 = vmul.f32 0.00390625, %v1031_v10 }
 0x1ed   : > { %1648 = vmatmul.mubr.bf16.gmra.mrb[12].mxu1 %v1442_v51  ;;  %v1253_v57 = vmul.f32 %v3918_v63, %v1203_v30  ;;  %v1105_v24 = vmax.f32 %v1086_v43, 0.0  ;;  %v1087_v16 = vsub.f32 %v1049_v25, %v1068_v54  ;;  %v1252_v41 = vmul.f32 %v3915_v61, %v1202_v28 }
 0x1ee   : > { %v1250_v15 = vmul.f32 %v3915_v61, %v1200_v62  ;;  %v1301_v55 = vadd.f32 %v3925_v22, %v1251_v53  ;;  %v1144_v48 = vsub.f32 %v4977_v9, %v4160_v0  ;;  %v1145_v51 = vsub.f32 %v4978_v44, %v4160_v0 }
 0x1ef   : > { %v1303_v50 = vadd.f32 %v3925_v22, %v1253_v57  ;;  %v1162_v23 = vadd.f32 1e-05, %v1105_v24  ;;  %v1106_v13 = vmax.f32 %v1087_v16, 0.0  ;;  %v1302_v33 = vadd.f32 %v3921_v2, %v1252_v41 }
 0x1f0   : > { %v1300_v10 = vadd.f32 %v3921_v2, %v1250_v15  ;;  %v4172_v30 = vpop.eup %3306  ;;  %vm1339_vm3 = vcmp.gt.f32.partialorder %v1301_v55, 0.0  ;;  %v1377_v54 = vmul.f32 0.2, %v1301_v55  ;;  %v1069_v24 = vmul.f32 %v4160_v0, %v4160_v0 }
 0x1f1   : > { %vm1341_vm4 = vcmp.gt.f32.partialorder %v1303_v50, 0.0  ;;  %v1379_v43 = vmul.f32 0.2, %v1303_v50  ;;  %3310 = vrsqrt.f32 %v1162_v23  ;;  %v1163_v25 = vadd.f32 1e-05, %v1106_v13 }
 0x1f2   : > { %vm1338_vm5 = vcmp.gt.f32.partialorder %v1300_v10, 0.0  ;;  %vm1340_vm6 = vcmp.gt.f32.partialorder %v1302_v33, 0.0  ;;  %v4174_v58 = vpop.eup %3308  ;;  %v1415_v62 = vsel %vm1339_vm3, %v1301_v55, %v1377_v54  ;;  %v1376_v28 = vmul.f32 0.2, %v1300_v10 }
 0x1f3   : > { %v1417_v45 = vsel %vm1341_vm4, %v1303_v50, %v1379_v43  ;;  %v1378_v53 = vmul.f32 0.2, %v1302_v33  ;;  %3312 = vrsqrt.f32 %v1163_v25  ;;  %v1205_v16 = vmul.f32 %v4086_v3, %v1129_v20 }
 0x1f4   : > { %v1445_v57 = vpack.c.bf16 %v1417_v45, %v1415_v62  ;;  %v1414_v15 = vsel %vm1338_vm5, %v1300_v10, %v1376_v28  ;;  %v4979_v23 = vsub.f32 %v3778_v14, %v4016_v39  ;;  %v4980_v50 = vsub.f32 %v3766_v5, %v4006_v6 }
 0x1f5   : > { %v1416_v41 = vsel %vm1340_vm6, %v1302_v33, %v1378_v53  ;;  %v1088_v43 = vsub.f32 %v1050_v32, %v1069_v24  ;;  %v1255_v25 = vmul.f32 %v3918_v63, %v1205_v16  ;;  %v1206_v20 = vmul.f32 %v4098_v59, %v4981_v8 }
 0x1f6   : > { %v1207_v55 = vmul.f32 %v4098_v59, %v4979_v23  ;;  %v1204_v13 = vmul.f32 %v4086_v3, %v4980_v50  ;;  %1655 = vmatprep.mubr.bf16.mxu1 %v1445_v57  ;;  %v1444_v54 = vpack.c.bf16 %v1416_v41, %v1414_v15  ;;  %v1209_v5 = vmul.f32 %v4124_v19, %v1133_v46 }
 0x1f7   : > { %v1211_v6 = vmul.f32 %v4130_v26, %v1135_v36  ;;  %v1107_v3 = vmax.f32 %v1088_v43, 0.0  ;;  %v1305_v11 = vadd.f32 %v3925_v22, %v1255_v25  ;;  %v1256_v39 = vmul.f32 %v3915_v61, %v1206_v20 }
 0x1f8   : > { %v1257_v10 = vmul.f32 %v3918_v63, %v1207_v55  ;;  %v1254_v14 = vmul.f32 %v3915_v61, %v1204_v13  ;;  %1656 = vmatmul.mubr.bf16.gmra.mrb[16].mxu1 %v1444_v54  ;;  %v4982_v59 = vsub.f32 %v3802_v37, %v4033_v31  ;;  %v1259_v33 = vmul.f32 %v3918_v63, %v1209_v5 }
 0x1f9   : > { %v1261_v52 = vmul.f32 %v3918_v63, %v1211_v6  ;;  %v1164_v36 = vadd.f32 1e-05, %v1107_v3  ;;  %vm1343_vm7 = vcmp.gt.f32.partialorder %v1305_v11, 0.0  ;;  %v1381_v62 = vmul.f32 0.2, %v1305_v11 }
 0x1fa   : > { %v1208_v32 = vmul.f32 %v4124_v19, %v4982_v59  ;;  %v1307_v40 = vadd.f32 %v3925_v22, %v1257_v10  ;;  %v1304_v46 = vadd.f32 %v3921_v2, %v1254_v14  ;;  %v1306_v45 = vadd.f32 %v3921_v2, %v1256_v39 }
 0x1fb   : > { %v3311_v37 = vpop.eup %3310  ;;  %3314 = vrsqrt.f32 %v1164_v36  ;;  %v1419_v31 = vsel %vm1343_vm7, %v1305_v11, %v1381_v62  ;;  %v1309_v16 = vadd.f32 %v3925_v22, %v1259_v33  ;;  %v1311_v15 = vadd.f32 %v3925_v22, %v1261_v52 }
 0x1fc   : > { %vm1345_vm8 = vcmp.gt.f32.partialorder %v1307_v40, 0.0  ;;  %v1383_v28 = vmul.f32 0.2, %v1307_v40  ;;  %vm1342_vm9 = vcmp.gt.f32.partialorder %v1304_v46, 0.0  ;;  %v1380_v53 = vmul.f32 0.2, %v1304_v46 }
 0x1fd   : > { %vm1344_vm10 = vcmp.gt.f32.partialorder %v1306_v45, 0.0  ;;  %v1382_v19 = vmul.f32 0.2, %v1306_v45  ;;  %v3313_v41 = vpop.eup %3312  ;;  %v4983_v50 = vsub.f32 %v3811_v47, %v4044_v56  ;;  %v1258_v54 = vmul.f32 %v3915_v61, %v1208_v32 }
 0x1fe   : > { %v1421_v57 = vsel %vm1345_vm8, %v1307_v40, %v1383_v28  ;;  %v1418_v24 = vsel %vm1342_vm9, %v1304_v46, %v1380_v53  ;;  %vm1347_vm11 = vcmp.gt.f32.partialorder %v1309_v16, 0.0  ;;  %vm1349_vm12 = vcmp.gt.f32.partialorder %v1311_v15, 0.0 }
 0x1ff   : > { %v1447_v23 = vpack.c.bf16 %v1421_v57, %v1419_v31  ;;  %v1420_v55 = vsel %vm1344_vm10, %v1306_v45, %v1382_v19  ;;  %v1210_v13 = vmul.f32 %v4130_v26, %v4983_v50  ;;  %v1385_v25 = vmul.f32 0.2, %v1309_v16 }
 0x200   : > { %v1446_v43 = vpack.c.bf16 %v1420_v55, %v1418_v24  ;;  %v1387_v8 = vmul.f32 0.2, %v1311_v15  ;;  %v1308_v10 = vadd.f32 %v3921_v2, %v1258_v54  ;;  %v4984_v14 = vsub.f32 %v3838_v7, %v4074_v60 }
 0x201   : > { %1663 = vmatprep.mubr.bf16.mxu1 %v1447_v23  ;;  %v1260_v20 = vmul.f32 %v3915_v61, %v1210_v13  ;;  %v1423_v47 = vsel %vm1347_vm11, %v1309_v16, %v1385_v25  ;;  %v4985_v56 = vsub.f32 %v3844_v17, %v4090_v49  ;;  %v4986_v6 = vsub.f32 %v3835_v4, %v4074_v60 }
 0x202   : > { %v1213_v5 = vmul.f32 %v4172_v30, %v4984_v14  ;;  %1664 = vmatmul.mubr.bf16.gmra.mrb[20].mxu1 %v1446_v43  ;;  %v4987_v11 = vsub.f32 %v3841_v12, %v4090_v49  ;;  %v1425_v7 = vsel %vm1349_vm12, %v1311_v15, %v1387_v8  ;;  %vm1346_vm13 = vcmp.gt.f32.partialorder %v1308_v10, 0.0 }
 0x203   : > { %v1215_v26 = vmul.f32 %v4174_v58, %v4985_v56  ;;  %v1212_v3 = vmul.f32 %v4172_v30, %v4986_v6  ;;  %v1310_v59 = vadd.f32 %v3921_v2, %v1260_v20  ;;  %v1384_v32 = vmul.f32 0.2, %v1308_v10 }
 0x204   : > { %v1214_v39 = vmul.f32 %v4174_v58, %v4987_v11  ;;  %v1449_v40 = vpack.c.bf16 %v1425_v7, %v1423_v47  ;;  %v1263_v17 = vmul.f32 %v3918_v63, %v1213_v5  ;;  %v1217_v52 = vmul.f32 %v3311_v37, %v1141_v18 }
 0x205   : > { %v1265_v46 = vmul.f32 %v3918_v63, %v1215_v26  ;;  %v1262_v33 = vmul.f32 %v3915_v61, %v1212_v3  ;;  %vm1348_vm14 = vcmp.gt.f32.partialorder %v1310_v59, 0.0  ;;  %v1386_v4 = vmul.f32 0.2, %v1310_v59  ;;  %v3315_v36 = vpop.eup %3314 }
 0x206   : > { %v1422_v60 = vsel %vm1346_vm13, %v1308_v10, %v1384_v32  ;;  %v1264_v30 = vmul.f32 %v3915_v61, %v1214_v39  ;;  %1671 = vmatprep.mubr.bf16.mxu1 %v1449_v40  ;;  %v1313_v12 = vadd.f32 %v3925_v22, %v1263_v17  ;;  %v1219_v28 = vmul.f32 %v3313_v41, %v1143_v42  ;;  %v4295_v40 = vld [vmem:[%s4936_s6] ss:$0 sm:$0xff] }
 0x207   : > { %v1315_v49 = vadd.f32 %v3925_v22, %v1265_v46  ;;  %v1312_v58 = vadd.f32 %v3921_v2, %v1262_v33  ;;  %v1424_v62 = vsel %vm1348_vm14, %v1310_v59, %v1386_v4  ;;  %v4988_v53 = vsub.f32 %v3859_v35, %v4117_v38  ;;  %v3269_v59 = vld [vmem:[%s4939_s9 + $0x18] sm:$0xff]  }
 0x208   : > { %v1314_v45 = vadd.f32 %v3921_v2, %v1264_v30  ;;  %v1448_v19 = vpack.c.bf16 %v1424_v62, %v1422_v60  ;;  %vm1351_vm15 = vcmp.gt.f32.partialorder %v1313_v12, 0.0  ;;  %v1389_v57 = vmul.f32 0.2, %v1313_v12 }
 0x209   : > { %v1216_v31 = vmul.f32 %v3311_v37, %v4988_v53  ;;  %vm1353_vm0 = vcmp.gt.f32.partialorder %v1315_v49, 0.0  ;;  %v1391_v24 = vmul.f32 0.2, %v1315_v49  ;;  %vm1350_vm1 = vcmp.gt.f32.partialorder %v1312_v58, 0.0 }
 0x20a   : > { %vm1352_vm2 = vcmp.gt.f32.partialorder %v1314_v45, 0.0  ;;  %v1388_v27 = vmul.f32 0.2, %v1312_v58  ;;  %1672 = vmatmul.mubr.bf16.gmra.mrb[24].mxu1 %v1448_v19  ;;  %v1427_v18 = vsel %vm1351_vm15, %v1313_v12, %v1389_v57  ;;  %v1390_v16 = vmul.f32 0.2, %v1314_v45 }
 0x20b   : > { %v1267_v15 = vmul.f32 %v3918_v63, %v1217_v52  ;;  %v1269_v34 = vmul.f32 %v3918_v63, %v1219_v28  ;;  %v1429_v42 = vsel %vm1353_vm0, %v1315_v49, %v1391_v24  ;;  %v1218_v35 = vmul.f32 %v3313_v41, %v1142_v21 }
 0x20c   : > { %v1426_v23 = vsel %vm1350_vm1, %v1312_v58, %v1388_v27  ;;  %v1266_v38 = vmul.f32 %v3915_v61, %v1216_v31  ;;  %v1451_v37 = vpack.c.bf16 %v1429_v42, %v1427_v18  ;;  %v1428_v55 = vsel %vm1352_vm2, %v1314_v45, %v1390_v16  ;;  %v3270_v18 = vld [vmem:[%s4939_s9 + $0x20] sm:$0xff]  }
 0x20d   : > { %v1317_v50 = vadd.f32 %v3925_v22, %v1267_v15  ;;  %v1319_v13 = vadd.f32 %v3925_v22, %v1269_v34  ;;  %v1450_v54 = vpack.c.bf16 %v1428_v55, %v1426_v23  ;;  %v1268_v43 = vmul.f32 %v3915_v61, %v1218_v35 }
 0x20e   : > { %v1316_v25 = vadd.f32 %v3921_v2, %v1266_v38  ;;  %v1221_v8 = vmul.f32 %v3315_v36, %v1145_v51  ;;  %1679 = vmatprep.mubr.bf16.mxu1 %v1451_v37  ;;  %v1220_v14 = vmul.f32 %v3315_v36, %v1144_v48 }
 0x20f   : > { %vm1355_vm3 = vcmp.gt.f32.partialorder %v1317_v50, 0.0  ;;  %vm1357_vm4 = vcmp.gt.f32.partialorder %v1319_v13, 0.0  ;;  %v1393_v1 = vmul.f32 0.2, %v1317_v50  ;;  %v1395_v29 = vmul.f32 0.2, %v1319_v13 }
 0x210   : > { %v1318_v21 = vadd.f32 %v3921_v2, %v1268_v43  ;;  %v1271_v41 = vmul.f32 %v3918_v63, %v1221_v8  ;;  %v1392_v47 = vmul.f32 0.2, %v1316_v25  ;;  %vm1354_vm6 = vcmp.gt.f32.partialorder %v1316_v25, 0.0 }
 0x211   : > { %v1431_v20 = vsel %vm1355_vm3, %v1317_v50, %v1393_v1  ;;  %v1433_v10 = vsel %vm1357_vm4, %v1319_v13, %v1395_v29  ;;  %v1270_v56 = vmul.f32 %v3915_v61, %v1220_v14  ;;  %v3266_v61 = vld [vmem:[%s4939_s9] sm:$0xff]  }
 0x212   : > { %v1453_v5 = vpack.c.bf16 %v1433_v10, %v1431_v20  ;;  %vm1356_vm5 = vcmp.gt.f32.partialorder %v1318_v21, 0.0  ;;  %v1394_v44 = vmul.f32 0.2, %v1318_v21  ;;  %1680 = vmatmul.mubr.bf16.gmra.mrb[28].mxu1 %v1450_v54  ;;  %v1321_v51 = vadd.f32 %v3925_v22, %v1271_v41  ;;  %v3267_v22 = vld [vmem:[%s4939_s9 + $0x8] sm:$0xff]   ;;  %3148 = vmatprep.subr.bf16.mxu1 %v3266_v61 }
 0x213   : > { %v1430_v6 = vsel %vm1354_vm6, %v1316_v25, %v1392_v47  ;;  %v1320_v3 = vadd.f32 %v3921_v2, %v1270_v56  ;;  %3149 = vmatpush3.bf16.msra.mxu1 %v3266_v61  ;;  %v3268_v2 = vld [vmem:[%s4939_s9 + $0x10] sm:$0xff]  }
 0x214   : > { %1687 = vmatprep.mubr.bf16.mxu1 %v1453_v5  ;;  %v1432_v26 = vsel %vm1356_vm5, %v1318_v21, %v1394_v44  ;;  %vm1359_vm7 = vcmp.gt.f32.partialorder %v1321_v51, 0.0  ;;  %v1397_v63 = vmul.f32 0.2, %v1321_v51  ;;  %3150 = vmatprep.subr.bf16.mxu1 %v3267_v22  ;;  %v3272_v61 = vld [vmem:[%s4939_s9 + $0x30] sm:$0xff]  }
 0x215   : > { %v1452_v11 = vpack.c.bf16 %v1432_v26, %v1430_v6  ;;  %v1396_v48 = vmul.f32 0.2, %v1320_v3  ;;  %vm1358_vm8 = vcmp.gt.f32.partialorder %v1320_v3, 0.0 }
 0x216   : > { %v1435_v0 = vsel %vm1359_vm7, %v1321_v51, %v1397_v63 }
 0x217   : > { %v1455_v9 = vpack.c.bf16 %v1435_v0, %v1435_v0  ;;  %v1434_v39 = vsel %vm1358_vm8, %v1320_v3, %v1396_v48  ;;  %3151 = vmatpush3.bf16.msra.mxu1 %v3267_v22  ;;  %v3271_v48 = vld [vmem:[%s4939_s9 + $0x28] sm:$0xff]  }
 0x218   : > { %v1454_v7 = vpack.c.bf16 %v1434_v39, %v1434_v39  ;;  %3152 = vmatprep.subr.bf16.mxu1 %v3268_v2 }
 0x21a   : > { %1688 = vmatmul.mubr.bf16.gmra.mrb[32].mxu1 %v1452_v11 }
 0x21b   : > { %1695 = vmatprep.mubr.bf16.mxu1 %v1455_v9  ;;  %3153 = vmatpush3.bf16.msra.mxu1 %v3268_v2 }
 0x21c   : > { %3154 = vmatprep.subr.bf16.mxu1 %v3269_v59 }
 0x21f   : > { %3155 = vmatpush3.bf16.msra.mxu1 %v3269_v59 }
 0x220   : > { %3156 = vmatprep.subr.bf16.mxu1 %v3270_v18 }
 0x222   : > { %1696 = vmatmul.mubr.bf16.gmra.mrb[36].mxu1 %v1454_v7 }
 0x223   : > { %3157 = vmatpush3.bf16.msra.mxu1 %v3270_v18 }
 0x224   : > { %3158 = vmatprep.subr.bf16.mxu1 %v3271_v48 }
 0x227   : > { %3159 = vmatpush3.bf16.msra.mxu1 %v3271_v48 }
 0x228   : > { %3160 = vmatprep.subr.bf16.mxu1 %v3272_v61 }
 0x22b   : > { %3161 = vmatpush3.bf16.msra.mxu1 %v3272_v61 }
 0x29c   : > { %v3056_v32 = vpop.f32.mrb[0].mxu1 }
 0x29d   : > { %v3057_v17 = vpop.f32.mrb[1].mxu1 }
 0x29e   : > { %v3058_v46 = vadd.f32 %v3057_v17, %v3056_v32  ;;  %v3059_v33 = vpop.f32.mrb[2].mxu1 }
 0x29f   : > { %v3060_v4 = vpop.f32.mrb[3].mxu1 }
 0x2a0   : > { %v4298_v60 = vadd.f32 %v3058_v46, %v4295_v40  ;;  %v3061_v30 = vadd.f32 %v3060_v4, %v3059_v33 }
 0x2a2   : > { %v4301_v12 = vadd.f32 %v3061_v30, %v4295_v40  ;;  %1703 = vadd.xlane.f32.xlu0 %v4298_v60  ;;  %v1761_v49 = vmul.f32 %v4298_v60, %v4298_v60 }
 0x2a4   : > { %1705 = vadd.xlane.f32.xlu1 %v4301_v12  ;;  %v1762_v58 = vmul.f32 %v4301_v12, %v4301_v12 }
 0x2a6   : > { %1780 = vadd.xlane.f32.xlu0 %v1761_v49 }
 0x2a8   : > { %1782 = vadd.xlane.f32.xlu1 %v1762_v58 }
 0x2a9   : > { %v3062_v52 = vpop.f32.mrb[4].mxu1 }
 0x2aa   : > { %v3063_v36 = vpop.f32.mrb[5].mxu1 }
 0x2ab   : > { %v3064_v62 = vadd.f32 %v3063_v36, %v3062_v52  ;;  %v3065_v45 = vpop.f32.mrb[6].mxu1  ;;  %v3273_v52 = vld [vmem:[%s4939_s9 + $0x38] sm:$0xff]  }
 0x2ac   : > { %v3066_v28 = vpop.f32.mrb[7].mxu1  ;;  %3162 = vmatprep.subr.bf16.mxu1 %v3273_v52 }
 0x2ad   : > { %v4310_v53 = vadd.f32 %v3064_v62, %v4295_v40  ;;  %v3067_v31 = vadd.f32 %v3066_v28, %v3065_v45  ;;  %3163 = vmatpush3.bf16.msra.mxu1 %v3273_v52 }
 0x2af   : > { %v4313_v19 = vadd.f32 %v3067_v31, %v4295_v40  ;;  %1707 = vadd.xlane.f32.xlu0 %v4310_v53  ;;  %v1763_v57 = vmul.f32 %v4310_v53, %v4310_v53 }
 0x2b1   : > { %1709 = vadd.xlane.f32.xlu1 %v4313_v19  ;;  %v1764_v24 = vmul.f32 %v4313_v19, %v4313_v19 }
 0x2b3   : > { %1784 = vadd.xlane.f32.xlu0 %v1763_v57 }
 0x2b5   : > { %1786 = vadd.xlane.f32.xlu1 %v1764_v24 }
 0x2b6   : > { %v3068_v27 = vpop.f32.mrb[8].mxu1 }
 0x2b7   : > { %v3069_v16 = vpop.f32.mrb[9].mxu1 }
 0x2b8   : > { %v3070_v15 = vadd.f32 %v3069_v16, %v3068_v27  ;;  %v3071_v34 = vpop.f32.mrb[10].mxu1 }
 0x2b9   : > { %v3072_v42 = vpop.f32.mrb[11].mxu1 }
 0x2ba   : > { %v4325_v23 = vadd.f32 %v3070_v15, %v4295_v40  ;;  %v3073_v35 = vadd.f32 %v3072_v42, %v3071_v34 }
 0x2bc   : > { %v4328_v38 = vadd.f32 %v3073_v35, %v4295_v40  ;;  %1711 = vadd.xlane.f32.xlu0 %v4325_v23  ;;  %v1765_v37 = vmul.f32 %v4325_v23, %v4325_v23 }
 0x2be   : > { %1713 = vadd.xlane.f32.xlu1 %v4328_v38  ;;  %v1766_v50 = vmul.f32 %v4328_v38, %v4328_v38 }
 0x2c0   : > { %v3074_v55 = vpop.f32.mrb[12].mxu1  ;;  %1788 = vadd.xlane.f32.xlu0 %v1765_v37 }
 0x2c1   : > { %v3075_v13 = vpop.f32.mrb[13].mxu1 }
 0x2c2   : > { %v3076_v54 = vadd.f32 %v3075_v13, %v3074_v55  ;;  %v3077_v43 = vpop.f32.mrb[14].mxu1  ;;  %1790 = vadd.xlane.f32.xlu1 %v1766_v50 }
 0x2c3   : > { %v3078_v25 = vpop.f32.mrb[15].mxu1 }
 0x2c4   : > { %v4337_v8 = vadd.f32 %v3076_v54, %v4295_v40  ;;  %v3079_v1 = vadd.f32 %v3078_v25, %v3077_v43 }
 0x2c6   : > { %v4340_v29 = vadd.f32 %v3079_v1, %v4295_v40  ;;  %1715 = vadd.xlane.f32.xlu0 %v4337_v8  ;;  %v1767_v21 = vmul.f32 %v4337_v8, %v4337_v8 }
 0x2c8   : > { %1717 = vadd.xlane.f32.xlu1 %v4340_v29  ;;  %v1768_v41 = vmul.f32 %v4340_v29, %v4340_v29 }
 0x2ca   : > { %1792 = vadd.xlane.f32.xlu0 %v1767_v21 }
 0x2cb   : > { %v3080_v20 = vpop.f32.mrb[16].mxu1 }
 0x2cc   : > { %v3081_v10 = vpop.f32.mrb[17].mxu1  ;;  %1794 = vadd.xlane.f32.xlu1 %v1768_v41 }
 0x2cd   : > { %v3082_v14 = vadd.f32 %v3081_v10, %v3080_v20  ;;  %v3083_v5 = vpop.f32.mrb[18].mxu1 }
 0x2ce   : > { %v3084_v47 = vpop.f32.mrb[19].mxu1 }
 0x2cf   : > { %v4349_v44 = vadd.f32 %v3082_v14, %v4295_v40  ;;  %v3085_v51 = vadd.f32 %v3084_v47, %v3083_v5 }
 0x2d1   : > { %v4352_v56 = vadd.f32 %v3085_v51, %v4295_v40  ;;  %1719 = vadd.xlane.f32.xlu0 %v4349_v44  ;;  %v1769_v26 = vmul.f32 %v4349_v44, %v4349_v44 }
 0x2d3   : > { %1721 = vadd.xlane.f32.xlu1 %v4352_v56  ;;  %v1770_v3 = vmul.f32 %v4352_v56, %v4352_v56 }
 0x2d5   : > { %v3086_v63 = vpop.f32.mrb[20].mxu1  ;;  %1796 = vadd.xlane.f32.xlu0 %v1769_v26 }
 0x2d6   : > { %v3087_v6 = vpop.f32.mrb[21].mxu1 }
 0x2d7   : > { %v3088_v11 = vadd.f32 %v3087_v6, %v3086_v63  ;;  %v3089_v0 = vpop.f32.mrb[22].mxu1  ;;  %1798 = vadd.xlane.f32.xlu1 %v1770_v3 }
 0x2d8   : > { %v3090_v9 = vpop.f32.mrb[23].mxu1 }
 0x2d9   : > { %v4364_v39 = vadd.f32 %v3088_v11, %v4295_v40  ;;  %v3091_v7 = vadd.f32 %v3090_v9, %v3089_v0 }
 0x2db   : > { %v4370_v22 = vadd.f32 %v3091_v7, %v4295_v40  ;;  %1723 = vadd.xlane.f32.xlu0 %v4364_v39  ;;  %v1771_v59 = vmul.f32 %v4364_v39, %v4364_v39 }
 0x2dd   : > { %1725 = vadd.xlane.f32.xlu1 %v4370_v22  ;;  %v3092_v2 = vpop.f32.mrb[24].mxu1  ;;  %v1772_v33 = vmul.f32 %v4370_v22, %v4370_v22 }
 0x2de   : > { %v3093_v32 = vpop.f32.mrb[25].mxu1 }
 0x2df   : > { %v3094_v17 = vadd.f32 %v3093_v32, %v3092_v2  ;;  %1800 = vadd.xlane.f32.xlu0 %v1771_v59  ;;  %v3095_v46 = vpop.f32.mrb[26].mxu1 }
 0x2e0   : > { %v3096_v4 = vpop.f32.mrb[27].mxu1 }
 0x2e1   : > { %v4379_v30 = vadd.f32 %v3094_v17, %v4295_v40  ;;  %v3097_v49 = vadd.f32 %v3096_v4, %v3095_v46  ;;  %1802 = vadd.xlane.f32.xlu1 %v1772_v33 }
 0x2e3   : > { %v4382_v58 = vadd.f32 %v3097_v49, %v4295_v40  ;;  %1727 = vadd.xlane.f32.xlu0 %v4379_v30  ;;  %v1773_v62 = vmul.f32 %v4379_v30, %v4379_v30 }
 0x2e5   : > { %1729 = vadd.xlane.f32.xlu1 %v4382_v58  ;;  %v3098_v36 = vpop.f32.mrb[28].mxu1  ;;  %v1774_v57 = vmul.f32 %v4382_v58, %v4382_v58 }
 0x2e6   : > { %v3099_v45 = vpop.f32.mrb[29].mxu1 }
 0x2e7   : > { %v3100_v28 = vadd.f32 %v3099_v45, %v3098_v36  ;;  %1804 = vadd.xlane.f32.xlu0 %v1773_v62  ;;  %v3101_v31 = vpop.f32.mrb[30].mxu1 }
 0x2e8   : > { %v3102_v24 = vpop.f32.mrb[31].mxu1 }
 0x2e9   : > { %v4394_v27 = vadd.f32 %v3100_v28, %v4295_v40  ;;  %v3103_v18 = vadd.f32 %v3102_v24, %v3101_v31  ;;  %1806 = vadd.xlane.f32.xlu1 %v1774_v57 }
 0x2eb   : > { %v4397_v16 = vadd.f32 %v3103_v18, %v4295_v40  ;;  %1731 = vadd.xlane.f32.xlu0 %v4394_v27  ;;  %v1775_v34 = vmul.f32 %v4394_v27, %v4394_v27 }
 0x2ed   : > { %1733 = vadd.xlane.f32.xlu1 %v4397_v16  ;;  %v3104_v15 = vpop.f32.mrb[32].mxu1  ;;  %v1776_v55 = vmul.f32 %v4397_v16, %v4397_v16 }
 0x2ee   : > { %v3105_v42 = vpop.f32.mrb[33].mxu1 }
 0x2ef   : > { %v3106_v35 = vadd.f32 %v3105_v42, %v3104_v15  ;;  %1808 = vadd.xlane.f32.xlu0 %v1775_v34  ;;  %v3107_v37 = vpop.f32.mrb[34].mxu1  ;;  %v4427_v42 = vld [vmem:[%s4937_s7] ss:$0 sm:$0xff] }
 0x2f0   : > { %v3108_v50 = vpop.f32.mrb[35].mxu1 }
 0x2f1   : > { %v4406_v13 = vadd.f32 %v3106_v35, %v4295_v40  ;;  %v3109_v54 = vadd.f32 %v3108_v50, %v3107_v37  ;;  %1810 = vadd.xlane.f32.xlu1 %v1776_v55 }
 0x2f3   : > { %v4409_v43 = vadd.f32 %v3109_v54, %v4295_v40  ;;  %1735 = vadd.xlane.f32.xlu0 %v4406_v13  ;;  %v1777_v20 = vmul.f32 %v4406_v13, %v4406_v13 }
 0x2f5   : > { %1737 = vadd.xlane.f32.xlu1 %v4409_v43  ;;  %v3110_v25 = vpop.f32.mrb[36].mxu1  ;;  %v1778_v47 = vmul.f32 %v4409_v43, %v4409_v43 }
 0x2f6   : > { %v3111_v1 = vpop.f32.mrb[37].mxu1 }
 0x2f7   : > { %v3112_v21 = vadd.f32 %v3111_v1, %v3110_v25  ;;  %v3113_v41 = vpop.f32.mrb[38].mxu1 }
 0x2f8   : > { %v3114_v10 = vpop.f32.mrb[39].mxu1 }
 0x2f9   : > { %v4416_v14 = vadd.f32 %v3112_v21, %v4295_v40  ;;  %1812 = vadd.xlane.f32.xlu1 %v1777_v20 }
 0x2fb   : > { %1739 = vadd.xlane.f32.xlu0 %v4416_v14  ;;  %v1779_v5 = vmul.f32 %v4416_v14, %v4416_v14 }
 0x2fd   : > { %1816 = vadd.xlane.f32.xlu1 %v1779_v5 }
 0x2ff   : > { %1814 = vadd.xlane.f32.xlu0 %v1778_v47 }
 0x32f   : > { %v1704_v51 = vpop.xlane.xlu0 %1703 }
 0x330   : > { %v1742_v26 = vmul.f32 0.0078125, %v1704_v51 }
 0x331   : > { %v1706_v63 = vpop.xlane.xlu1 %1705 }
 0x332   : > { %v1743_v6 = vmul.f32 0.0078125, %v1706_v63  ;;  %v1837_v11 = vmul.f32 %v1742_v26, %v1742_v26  ;;  %v1894_v15 = vsub.f32 %v4298_v60, %v1742_v26  ;;  %v4435_v60 = vld [vmem:[%s4938_s8] ss:$0 sm:$0xff] }
 0x333   : > { %v1781_v3 = vpop.xlane.xlu0 %1780 }
 0x334   : > { %v1818_v0 = vmul.f32 0.0078125, %v1781_v3  ;;  %v1838_v9 = vmul.f32 %v1743_v6, %v1743_v6  ;;  %v1895_v55 = vsub.f32 %v4301_v12, %v1743_v6 }
 0x335   : > { %v1783_v40 = vpop.xlane.xlu1 %1782 }
 0x336   : > { %v1856_v48 = vsub.f32 %v1818_v0, %v1837_v11  ;;  %v1819_v7 = vmul.f32 0.0078125, %v1783_v40 }
 0x338   : > { %v1875_v61 = vmax.f32 %v1856_v48, 0.0  ;;  %v1857_v2 = vsub.f32 %v1819_v7, %v1838_v9 }
 0x33a   : > { %v1913_v59 = vadd.f32 1e-05, %v1875_v61  ;;  %v1876_v32 = vmax.f32 %v1857_v2, 0.0 }
 0x33c   : > { %v1708_v17 = vpop.xlane.xlu0 %1707  ;;  %3316 = vrsqrt.f32 %v1913_v59  ;;  %v1914_v46 = vadd.f32 1e-05, %v1876_v32 }
 0x33d   : > { %v1744_v33 = vmul.f32 0.0078125, %v1708_v17 }
 0x33e   : > { %v1710_v4 = vpop.xlane.xlu1 %1709  ;;  %3318 = vrsqrt.f32 %v1914_v46 }
 0x33f   : > { %v1745_v49 = vmul.f32 0.0078125, %v1710_v4  ;;  %v1839_v36 = vmul.f32 %v1744_v33, %v1744_v33  ;;  %v1896_v2 = vsub.f32 %v4310_v53, %v1744_v33 }
 0x340   : > { %v1785_v52 = vpop.xlane.xlu0 %1784 }
 0x341   : > { %v1820_v62 = vmul.f32 0.0078125, %v1785_v52  ;;  %v1840_v28 = vmul.f32 %v1745_v49, %v1745_v49 }
 0x342   : > { %v1787_v45 = vpop.xlane.xlu1 %1786 }
 0x343   : > { %v1858_v31 = vsub.f32 %v1820_v62, %v1839_v36  ;;  %v1821_v57 = vmul.f32 0.0078125, %v1787_v45  ;;  %v1897_v45 = vsub.f32 %v4313_v19, %v1745_v49 }
 0x345   : > { %v1877_v24 = vmax.f32 %v1858_v31, 0.0  ;;  %v1859_v18 = vsub.f32 %v1821_v57, %v1840_v28 }
 0x346   : > { %v3317_v34 = vpop.eup %3316 }
 0x347   : > { %v1915_v35 = vadd.f32 1e-05, %v1877_v24  ;;  %v1878_v37 = vmax.f32 %v1859_v18, 0.0  ;;  %v1951_v54 = vmul.f32 %v3317_v34, %v1894_v15 }
 0x348   : > { %v3319_v25 = vpop.eup %3318 }
 0x349   : > { %v1712_v50 = vpop.xlane.xlu0 %1711  ;;  %3320 = vrsqrt.f32 %v1915_v35  ;;  %v1916_v1 = vadd.f32 1e-05, %v1878_v37  ;;  %v1952_v20 = vmul.f32 %v3319_v25, %v1895_v55  ;;  %v1977_v10 = vmul.f32 %v4427_v42, %v1951_v54 }
 0x34a   : > { %v4430_v21 = vmul.f32 0.0078125, %v1712_v50 }
 0x34b   : > { %v1714_v41 = vpop.xlane.xlu1 %1713  ;;  %3322 = vrsqrt.f32 %v1916_v1  ;;  %v1978_v47 = vmul.f32 %v4427_v42, %v1952_v20  ;;  %v2003_v51 = vadd.f32 %v4435_v60, %v1977_v10 }
 0x34c   : > { %v4438_v5 = vmul.f32 0.0078125, %v1714_v41  ;;  %v1841_v26 = vmul.f32 %v4430_v21, %v4430_v21 }
 0x34d   : > { %v1789_v12 = vpop.xlane.xlu0 %1788  ;;  %v2004_v3 = vadd.f32 %v4435_v60, %v1978_v47  ;;  %v2041_v11 = vmul.f32 0.2, %v2003_v51  ;;  %vm2022_vm9 = vcmp.gt.f32.partialorder %v2003_v51, 0.0 }
 0x34e   : > { %v1822_v63 = vmul.f32 0.0078125, %v1789_v12  ;;  %v1842_v0 = vmul.f32 %v4438_v5, %v4438_v5 }
 0x34f   : > { %v1791_v6 = vpop.xlane.xlu1 %1790  ;;  %vm2023_vm10 = vcmp.gt.f32.partialorder %v2004_v3, 0.0  ;;  %v2042_v48 = vmul.f32 0.2, %v2004_v3  ;;  %v2060_v32 = vsel %vm2022_vm9, %v2003_v51, %v2041_v11 }
 0x350   : > { %v1860_v40 = vsub.f32 %v1822_v63, %v1841_v26  ;;  %v1823_v9 = vmul.f32 0.0078125, %v1791_v6  ;;  %v1898_v26 = vsub.f32 %v4325_v23, %v4430_v21 }
 0x351   : > { %v2061_v17 = vsel %vm2023_vm10, %v2004_v3, %v2042_v48  ;;  %v1899_v48 = vsub.f32 %v4328_v38, %v4438_v5 }
 0x352   : > { %v1879_v7 = vmax.f32 %v1860_v40, 0.0  ;;  %v1861_v61 = vsub.f32 %v1823_v9, %v1842_v0  ;;  %v2079_v62 = vpack.c.bf16 %v2061_v17, %v2060_v32 }
 0x353   : > { %v1716_v59 = vpop.xlane.xlu0 %1715  ;;  %v3321_v46 = vpop.eup %3320 }
 0x354   : > { %v1917_v4 = vadd.f32 1e-05, %v1879_v7  ;;  %v1880_v52 = vmax.f32 %v1861_v61, 0.0  ;;  %v4448_v36 = vmul.f32 0.0078125, %v1716_v59  ;;  %v1953_v28 = vmul.f32 %v3321_v46, %v1896_v2  ;;  %3164 = vmatprep.mubr.bf16.mxu1 %v2079_v62 }
 0x355   : > { %v1718_v31 = vpop.xlane.xlu1 %1717  ;;  %v3323_v57 = vpop.eup %3322 }
 0x356   : > { %3324 = vrsqrt.f32 %v1917_v4  ;;  %v1918_v24 = vadd.f32 1e-05, %v1880_v52  ;;  %v1979_v18 = vmul.f32 %v4427_v42, %v1953_v28  ;;  %v1954_v53 = vmul.f32 %v3323_v57, %v1897_v45 }
 0x357   : > { %v4452_v33 = vmul.f32 0.0078125, %v1718_v31  ;;  %v1793_v15 = vpop.xlane.xlu0 %1792  ;;  %v1843_v34 = vmul.f32 %v4448_v36, %v4448_v36 }
 0x358   : > { %3326 = vrsqrt.f32 %v1918_v24  ;;  %v1824_v35 = vmul.f32 0.0078125, %v1793_v15  ;;  %v1980_v37 = vmul.f32 %v4427_v42, %v1954_v53  ;;  %v2005_v49 = vadd.f32 %v4435_v60, %v1979_v18 }
 0x359   : > { %v1795_v19 = vpop.xlane.xlu1 %1794  ;;  %v1844_v55 = vmul.f32 %v4452_v33, %v4452_v33  ;;  %v1900_v24 = vsub.f32 %v4337_v8, %v4448_v36 }
 0x35a   : > { %v1862_v50 = vsub.f32 %v1824_v35, %v1843_v34  ;;  %v1825_v54 = vmul.f32 0.0078125, %v1795_v19  ;;  %v2006_v25 = vadd.f32 %v4435_v60, %v1980_v37  ;;  %v2043_v1 = vmul.f32 0.2, %v2005_v49 }
 0x35b   : > { %vm2024_vm11 = vcmp.gt.f32.partialorder %v2005_v49, 0.0 }
 0x35c   : > { %v1881_v41 = vmax.f32 %v1862_v50, 0.0  ;;  %v1863_v20 = vsub.f32 %v1825_v54, %v1844_v55  ;;  %vm2025_vm12 = vcmp.gt.f32.partialorder %v2006_v25, 0.0  ;;  %v2044_v10 = vmul.f32 0.2, %v2006_v25 }
 0x35d   : > { %v2062_v6 = vsel %vm2024_vm11, %v2005_v49, %v2043_v1  ;;  %v1901_v49 = vsub.f32 %v4340_v29, %v4452_v33 }
 0x35e   : > { %v1919_v12 = vadd.f32 1e-05, %v1881_v41  ;;  %v1882_v47 = vmax.f32 %v1863_v20, 0.0  ;;  %v1720_v51 = vpop.xlane.xlu0 %1719  ;;  %v2063_v3 = vsel %vm2025_vm12, %v2006_v25, %v2044_v10  ;;  %vm2272_vm12 = vcmask 523264  }
 0x35f   : > { %v4463_v63 = vmul.f32 0.0078125, %v1720_v51  ;;  %v2080_v9 = vpack.c.bf16 %v2063_v3, %v2062_v6 }
 0x360   : > { %v3325_v11 = vpop.eup %3324  ;;  %3328 = vrsqrt.f32 %v1919_v12  ;;  %v1920_v0 = vadd.f32 1e-05, %v1882_v47  ;;  %v1722_v40 = vpop.xlane.xlu1 %1721 }
 0x361   : > { %v4467_v7 = vmul.f32 0.0078125, %v1722_v40  ;;  %v1955_v61 = vmul.f32 %v3325_v11, %v1898_v26  ;;  %3165 = vmatmul.mubr.bf16.vlgmr.msra.gmra.mrb[40].mxu1 %v2080_v9  ;;  %v1845_v23 = vmul.f32 %v4463_v63, %v4463_v63 }
 0x362   : > { %v3327_v2 = vpop.eup %3326  ;;  %3330 = vrsqrt.f32 %v1920_v0  ;;  %v1797_v59 = vpop.xlane.xlu0 %1796 }
 0x363   : > { %v1826_v21 = vmul.f32 0.0078125, %v1797_v59  ;;  %v1956_v32 = vmul.f32 %v3327_v2, %v1899_v48  ;;  %v1981_v46 = vmul.f32 %v4427_v42, %v1955_v61  ;;  %v1846_v4 = vmul.f32 %v4467_v7, %v4467_v7 }
 0x364   : > { %v1799_v17 = vpop.xlane.xlu1 %1798 }
 0x365   : > { %v1864_v52 = vsub.f32 %v1826_v21, %v1845_v23  ;;  %v1827_v38 = vmul.f32 0.0078125, %v1799_v17  ;;  %v1982_v5 = vmul.f32 %v4427_v42, %v1956_v32  ;;  %v2007_v62 = vadd.f32 %v4435_v60, %v1981_v46 }
 0x366   : > { %v1902_v21 = vsub.f32 %v4349_v44, %v4463_v63 }
 0x367   : > { %v1883_v45 = vmax.f32 %v1864_v52, 0.0  ;;  %v1865_v28 = vsub.f32 %v1827_v38, %v1846_v4  ;;  %v2008_v57 = vadd.f32 %v4435_v60, %v1982_v5  ;;  %vm2026_vm13 = vcmp.gt.f32.partialorder %v2007_v62, 0.0 }
 0x368   : > { %v1724_v31 = vpop.xlane.xlu0 %1723  ;;  %v2045_v53 = vmul.f32 0.2, %v2007_v62 }
 0x369   : > { %v4479_v18 = vmul.f32 0.0078125, %v1724_v31  ;;  %v1921_v15 = vadd.f32 1e-05, %v1883_v45  ;;  %v1884_v34 = vmax.f32 %v1865_v28, 0.0  ;;  %vm2027_vm14 = vcmp.gt.f32.partialorder %v2008_v57, 0.0 }
 0x36a   : > { %v1726_v35 = vpop.xlane.xlu1 %1725  ;;  %v2046_v37 = vmul.f32 0.2, %v2008_v57  ;;  %v3329_v19 = vpop.eup %3328  ;;  %v2064_v50 = vsel %vm2026_vm13, %v2007_v62, %v2045_v53  ;;  %v1903_v62 = vsub.f32 %v4352_v56, %v4467_v7 }
 0x36b   : > { %v4483_v55 = vmul.f32 0.0078125, %v1726_v35  ;;  %3332 = vrsqrt.f32 %v1921_v15  ;;  %v1922_v54 = vadd.f32 1e-05, %v1884_v34  ;;  %v1957_v36 = vmul.f32 %v3329_v19, %v1900_v24 }
 0x36c   : > { %v1801_v25 = vpop.xlane.xlu0 %1800  ;;  %v2065_v8 = vsel %vm2027_vm14, %v2008_v57, %v2046_v37  ;;  %v3331_v1 = vpop.eup %3330  ;;  %v1847_v41 = vmul.f32 %v4479_v18, %v4479_v18 }
 0x36d   : > { %v1828_v20 = vmul.f32 0.0078125, %v1801_v25  ;;  %v2081_v10 = vpack.c.bf16 %v2065_v8, %v2064_v50  ;;  %3334 = vrsqrt.f32 %v1922_v54  ;;  %v1958_v47 = vmul.f32 %v3331_v1, %v1901_v49 }
 0x36e   : > { %v1803_v12 = vpop.xlane.xlu1 %1802  ;;  %v1983_v51 = vmul.f32 %v4427_v42, %v1957_v36  ;;  %v1848_v29 = vmul.f32 %v4483_v55, %v4483_v55 }
 0x36f   : > { %v1866_v33 = vsub.f32 %v1828_v20, %v1847_v41  ;;  %v1829_v26 = vmul.f32 0.0078125, %v1803_v12  ;;  %3168 = vmatprep.mubr.bf16.mxu1 %v2081_v10  ;;  %v1984_v3 = vmul.f32 %v4427_v42, %v1958_v47  ;;  %v1904_v12 = vsub.f32 %v4364_v39, %v4479_v18 }
 0x370   : > { %v1728_v6 = vpop.xlane.xlu0 %1727  ;;  %v2009_v11 = vadd.f32 %v4435_v60, %v1983_v51  ;;  %v1905_v47 = vsub.f32 %v4370_v22, %v4483_v55 }
 0x371   : > { %v1885_v0 = vmax.f32 %v1866_v33, 0.0  ;;  %v1867_v40 = vsub.f32 %v1829_v26, %v1848_v29  ;;  %v4492_v9 = vmul.f32 0.0078125, %v1728_v6  ;;  %v2010_v61 = vadd.f32 %v4435_v60, %v1984_v3 }
 0x372   : > { %v1730_v48 = vpop.xlane.xlu1 %1729  ;;  %v2047_v2 = vmul.f32 0.2, %v2009_v11  ;;  %vm2028_vm15 = vcmp.gt.f32.partialorder %v2009_v11, 0.0 }
 0x373   : > { %v1923_v59 = vadd.f32 1e-05, %v1885_v0  ;;  %v1886_v23 = vmax.f32 %v1867_v40, 0.0  ;;  %v4497_v32 = vmul.f32 0.0078125, %v1730_v48  ;;  %vm2029_vm0 = vcmp.gt.f32.partialorder %v2010_v61, 0.0 }
 0x374   : > { %v1805_v17 = vpop.xlane.xlu0 %1804  ;;  %v2048_v46 = vmul.f32 0.2, %v2010_v61  ;;  %v1849_v52 = vmul.f32 %v4492_v9, %v4492_v9  ;;  %v2066_v44 = vsel %vm2028_vm15, %v2009_v11, %v2047_v2 }
 0x375   : > { %3336 = vrsqrt.f32 %v1923_v59  ;;  %v1924_v4 = vadd.f32 1e-05, %v1886_v23  ;;  %v1830_v38 = vmul.f32 0.0078125, %v1805_v17  ;;  %v3333_v5 = vpop.eup %3332  ;;  %v1850_v45 = vmul.f32 %v4497_v32, %v4497_v32 }
 0x376   : > { %v1807_v28 = vpop.xlane.xlu1 %1806  ;;  %v2067_v63 = vsel %vm2029_vm0, %v2010_v61, %v2048_v46  ;;  %v1959_v34 = vmul.f32 %v3333_v5, %v1902_v21 }
 0x377   : > { %3338 = vrsqrt.f32 %v1924_v4  ;;  %v1868_v31 = vsub.f32 %v1830_v38, %v1849_v52  ;;  %v1831_v57 = vmul.f32 0.0078125, %v1807_v28  ;;  %v2082_v24 = vpack.c.bf16 %v2067_v63, %v2066_v44  ;;  %v3335_v53 = vpop.eup %3334 }
 0x378   : > { %v1732_v15 = vpop.xlane.xlu0 %1731  ;;  %v1960_v49 = vmul.f32 %v3335_v53, %v1903_v62  ;;  %v1985_v7 = vmul.f32 %v4427_v42, %v1959_v34  ;;  %v1906_v62 = vsub.f32 %v4379_v30, %v4492_v9 }
 0x379   : > { %v1887_v35 = vmax.f32 %v1868_v31, 0.0  ;;  %v1869_v37 = vsub.f32 %v1831_v57, %v1850_v45  ;;  %v4505_v19 = vmul.f32 0.0078125, %v1732_v15  ;;  %3169 = vmatmul.mubr.bf16.gmra.mrb[44].mxu1 %v2082_v24  ;;  %v1907_v45 = vsub.f32 %v4382_v58, %v4497_v32 }
 0x37a   : > { %v1734_v56 = vpop.xlane.xlu1 %1733  ;;  %v1986_v36 = vmul.f32 %v4427_v42, %v1960_v49  ;;  %v2011_v1 = vadd.f32 %v4435_v60, %v1985_v7 }
 0x37b   : > { %v1925_v50 = vadd.f32 1e-05, %v1887_v35  ;;  %v1888_v54 = vmax.f32 %v1869_v37, 0.0  ;;  %v4508_v25 = vmul.f32 0.0078125, %v1734_v56  ;;  %v1851_v20 = vmul.f32 %v4505_v19, %v4505_v19 }
 0x37c   : > { %v1809_v8 = vpop.xlane.xlu0 %1808  ;;  %v2012_v33 = vadd.f32 %v4435_v60, %v1986_v36  ;;  %v2049_v11 = vmul.f32 0.2, %v2011_v1  ;;  %vm2030_vm1 = vcmp.gt.f32.partialorder %v2011_v1, 0.0 }
 0x37d   : > { %3340 = vrsqrt.f32 %v1925_v50  ;;  %v1926_v41 = vadd.f32 1e-05, %v1888_v54  ;;  %v1832_v10 = vmul.f32 0.0078125, %v1809_v8  ;;  %v1852_v51 = vmul.f32 %v4508_v25, %v4508_v25 }
 0x37e   : > { %v1811_v29 = vpop.xlane.xlu1 %1810  ;;  %vm2031_vm2 = vcmp.gt.f32.partialorder %v2012_v33, 0.0  ;;  %v2050_v40 = vmul.f32 0.2, %v2012_v33  ;;  %v2068_v46 = vsel %vm2030_vm1, %v2011_v1, %v2049_v11 }
 0x37f   : > { %v3337_v26 = vpop.eup %3336  ;;  %3342 = vrsqrt.f32 %v1926_v41  ;;  %v1870_v6 = vsub.f32 %v1832_v10, %v1851_v20  ;;  %v1833_v3 = vmul.f32 0.0078125, %v1811_v29  ;;  %v1908_v29 = vsub.f32 %v4394_v27, %v4505_v19 }
 0x380   : > { %v1736_v0 = vpop.xlane.xlu0 %1735  ;;  %v1961_v48 = vmul.f32 %v3337_v26, %v1904_v12  ;;  %v2069_v55 = vsel %vm2031_vm2, %v2012_v33, %v2050_v40 }
 0x381   : > { %v3339_v39 = vpop.eup %3338  ;;  %v1889_v18 = vmax.f32 %v1870_v6, 0.0  ;;  %v1871_v61 = vsub.f32 %v1833_v3, %v1852_v51  ;;  %v4522_v17 = vmul.f32 0.0078125, %v1736_v0  ;;  %v2083_v4 = vpack.c.bf16 %v2069_v55, %v2068_v46 }
 0x382   : > { %v1738_v22 = vpop.xlane.xlu1 %1737  ;;  %v1962_v2 = vmul.f32 %v3339_v39, %v1905_v47  ;;  %v1987_v59 = vmul.f32 %v4427_v42, %v1961_v48  ;;  %v1909_v0 = vsub.f32 %v4397_v16, %v4508_v25 }
 0x383   : > { %v1927_v23 = vadd.f32 1e-05, %v1889_v18  ;;  %v1890_v21 = vmax.f32 %v1871_v61, 0.0  ;;  %3172 = vmatprep.mubr.bf16.mxu1 %v2083_v4  ;;  %v1853_v31 = vmul.f32 %v4522_v17, %v4522_v17  ;;  %v4533_v9 = vmul.f32 0.0078125, %v1738_v22 }
 0x384   : > { %v1988_v52 = vmul.f32 %v4427_v42, %v1962_v2  ;;  %v2013_v38 = vadd.f32 %v4435_v60, %v1987_v59  ;;  %v1910_v46 = vsub.f32 %v4406_v13, %v4522_v17 }
 0x385   : > { %3344 = vrsqrt.f32 %v1927_v23  ;;  %v1928_v5 = vadd.f32 1e-05, %v1890_v21  ;;  %v1854_v10 = vmul.f32 %v4533_v9, %v4533_v9 }
 0x386   : > { %v1813_v28 = vpop.xlane.xlu1 %1812  ;;  %v2014_v44 = vadd.f32 %v4435_v60, %v1988_v52  ;;  %v2051_v24 = vmul.f32 0.2, %v2013_v38  ;;  %vm2032_vm3 = vcmp.gt.f32.partialorder %v2013_v38, 0.0 }
 0x387   : > { %v3341_v63 = vpop.eup %3340  ;;  %3346 = vrsqrt.f32 %v1928_v5  ;;  %v1834_v57 = vmul.f32 0.0078125, %v1813_v28 }
 0x388   : > { %v1740_v53 = vpop.xlane.xlu0 %1739  ;;  %vm2033_vm4 = vcmp.gt.f32.partialorder %v2014_v44, 0.0  ;;  %v2052_v15 = vmul.f32 0.2, %v2014_v44  ;;  %v1963_v34 = vmul.f32 %v3341_v63, %v1906_v62  ;;  %v2070_v8 = vsel %vm2032_vm3, %v2013_v38, %v2051_v24 }
 0x389   : > { %v3343_v30 = vpop.eup %3342  ;;  %v1872_v58 = vsub.f32 %v1834_v57, %v1853_v31  ;;  %v1760_v32 = vmul.f32 0.0078125, %v1740_v53  ;;  %v1911_v31 = vsub.f32 %v4409_v43, %v4533_v9 }
 0x38a   : > { %v1817_v35 = vpop.xlane.xlu1 %1816  ;;  %v2071_v37 = vsel %vm2033_vm4, %v2014_v44, %v2052_v15  ;;  %v1964_v49 = vmul.f32 %v3343_v30, %v1907_v45  ;;  %v1989_v56 = vmul.f32 %v4427_v42, %v1963_v34 }
 0x38b   : > { %v1891_v7 = vmax.f32 %v1872_v58, 0.0  ;;  %v1855_v50 = vmul.f32 %v1760_v32, %v1760_v32  ;;  %v1836_v54 = vmul.f32 0.0078125, %v1817_v35  ;;  %v2084_v1 = vpack.c.bf16 %v2071_v37, %v2070_v8 }
 0x38c   : > { %v1815_v36 = vpop.xlane.xlu0 %1814  ;;  %v1990_v41 = vmul.f32 %v4427_v42, %v1964_v49  ;;  %v2015_v20 = vadd.f32 %v4435_v60, %v1989_v56  ;;  %v1912_v28 = vsub.f32 %v4416_v14, %v1760_v32 }
 0x38d   : > { %v1929_v12 = vadd.f32 1e-05, %v1891_v7  ;;  %v1874_v47 = vsub.f32 %v1836_v54, %v1855_v50  ;;  %v1835_v51 = vmul.f32 0.0078125, %v1815_v36  ;;  %3173 = vmatmul.mubr.bf16.gmra.mrb[48].mxu1 %v2084_v1 }
 0x38e   : > { %v2016_v33 = vadd.f32 %v4435_v60, %v1990_v41  ;;  %v2053_v26 = vmul.f32 0.2, %v2015_v20  ;;  %vm2034_vm5 = vcmp.gt.f32.partialorder %v2015_v20, 0.0 }
 0x38f   : > { %v3345_v6 = vpop.eup %3344  ;;  %3348 = vrsqrt.f32 %v1929_v12  ;;  %v1893_v3 = vmax.f32 %v1874_v47, 0.0  ;;  %v1873_v11 = vsub.f32 %v1835_v51, %v1854_v10 }
 0x390   : > { %vm2035_vm6 = vcmp.gt.f32.partialorder %v2016_v33, 0.0  ;;  %v2054_v40 = vmul.f32 0.2, %v2016_v33  ;;  %v1965_v48 = vmul.f32 %v3345_v6, %v1908_v29  ;;  %v2072_v22 = vsel %vm2034_vm5, %v2015_v20, %v2053_v26 }
 0x391   : > { %v3347_v39 = vpop.eup %3346  ;;  %v1931_v18 = vadd.f32 1e-05, %v1893_v3  ;;  %v1892_v61 = vmax.f32 %v1873_v11, 0.0 }
 0x392   : > { %v2073_v27 = vsel %vm2035_vm6, %v2016_v33, %v2054_v40  ;;  %v1966_v19 = vmul.f32 %v3347_v39, %v1909_v0  ;;  %v1991_v55 = vmul.f32 %v4427_v42, %v1965_v48 }
 0x393   : > { %3350 = vrsqrt.f32 %v1931_v18  ;;  %v1930_v2 = vadd.f32 1e-05, %v1892_v61  ;;  %v2085_v59 = vpack.c.bf16 %v2073_v27, %v2072_v22 }
 0x394   : > { %v1992_v23 = vmul.f32 %v4427_v42, %v1966_v19  ;;  %v2017_v21 = vadd.f32 %v4435_v60, %v1991_v55 }
 0x395   : > { %3352 = vrsqrt.f32 %v1930_v2  ;;  %3176 = vmatprep.mubr.bf16.mxu1 %v2085_v59 }
 0x396   : > { %v2018_v16 = vadd.f32 %v4435_v60, %v1992_v23  ;;  %v2055_v25 = vmul.f32 0.2, %v2017_v21  ;;  %vm2036_vm7 = vcmp.gt.f32.partialorder %v2017_v21, 0.0 }
 0x398   : > { %vm2037_vm8 = vcmp.gt.f32.partialorder %v2018_v16, 0.0  ;;  %v2056_v4 = vmul.f32 0.2, %v2018_v16  ;;  %v2074_v38 = vsel %vm2036_vm7, %v2017_v21, %v2055_v25 }
 0x399   : > { %v3349_v52 = vpop.eup %3348 }
 0x39a   : > { %v2075_v5 = vsel %vm2037_vm8, %v2018_v16, %v2056_v4  ;;  %v1967_v62 = vmul.f32 %v3349_v52, %v1910_v46 }
 0x39b   : > { %v2086_v45 = vpack.c.bf16 %v2075_v5, %v2074_v38 }
 0x39c   : > { %v1993_v44 = vmul.f32 %v4427_v42, %v1967_v62 }
 0x39d   : > { %v3351_v63 = vpop.eup %3350  ;;  %3177 = vmatmul.mubr.bf16.gmra.mrb[52].mxu1 %v2086_v45 }
 0x39e   : > { %v1969_v57 = vmul.f32 %v3351_v63, %v1912_v28  ;;  %v2019_v13 = vadd.f32 %v4435_v60, %v1993_v44 }
 0x39f   : > { %v3353_v24 = vpop.eup %3352 }
 0x3a0   : > { %v1968_v53 = vmul.f32 %v3353_v24, %v1911_v31  ;;  %v1995_v17 = vmul.f32 %v4427_v42, %v1969_v57  ;;  %v2057_v30 = vmul.f32 0.2, %v2019_v13  ;;  %vm2038_vm10 = vcmp.gt.f32.partialorder %v2019_v13, 0.0 }
 0x3a2   : > { %v1994_v15 = vmul.f32 %v4427_v42, %v1968_v53  ;;  %v2021_v34 = vadd.f32 %v4435_v60, %v1995_v17  ;;  %v2076_v9 = vsel %vm2038_vm10, %v2019_v13, %v2057_v30  ;;  %v3274_v42 = vld [vmem:[%s4943_s13] sm:$0xff]  }
 0x3a3   : > { %3184 = vmatprep.subr.bf16.mxu0 %v3274_v42 }
 0x3a4   : > { %v2020_v14 = vadd.f32 %v4435_v60, %v1994_v15  ;;  %vm2040_vm9 = vcmp.gt.f32.partialorder %v2021_v34, 0.0  ;;  %v2059_v58 = vmul.f32 0.2, %v2021_v34  ;;  %3185 = vmatpush3.bf16.msra.mxu0 %v3274_v42  ;;  %v4566_v60 = vld [vmem:[%s4940_s10] ss:$0 sm:$0xff] }
 0x3a6   : > { %vm2039_vm11 = vcmp.gt.f32.partialorder %v2020_v14, 0.0  ;;  %v2058_v32 = vmul.f32 0.2, %v2020_v14  ;;  %v2078_v43 = vsel %vm2040_vm9, %v2021_v34, %v2059_v58  ;;  %v3275_v34 = vld [vmem:[%s4943_s13 + $0x8] sm:$0xff]  }
 0x3a7   : > { %v2088_v49 = vpack.c.bf16 %v2078_v43, %v2078_v43  ;;  %3186 = vmatprep.subr.bf16.mxu0 %v3275_v34 }
 0x3a8   : > { %v2077_v35 = vsel %vm2039_vm11, %v2020_v14, %v2058_v32  ;;  %3187 = vmatpush3.bf16.msra.mxu0 %v3275_v34 }
 0x3a9   : > { %v2087_v37 = vpack.c.bf16 %v2077_v35, %v2076_v9 }
 0x3ab   : > { %3180 = vmatprep.mubr.bf16.mxu1 %v2087_v37 }
 0x3ac   : > { %3181 = vmatmul.mubr.bf16.gmra.mrb[56].mxu1 %v2088_v49 }
 0x434   : > { %v3166_v56 = vpop.f32.mrb[40].mxu1 }
 0x435   : > { %v4569_v7 = vadd.f32 %v3166_v56, %v4566_v60  ;;  %v2194_v50 = vpop.f32.mrb[41].mxu1 }
 0x436   : > { %v3167_v54 = vpop.f32.mrb[42].mxu1  ;;  %v4572_v8 = vadd.f32 %v4566_v60, %v2194_v50 }
 0x437   : > { %v4575_v36 = vadd.f32 %v3167_v54, %v4566_v60  ;;  %v2197_v1 = vpop.f32.mrb[43].mxu1  ;;  %v2279_v41 = vsel %vm2272_vm12, %v4569_v7, 0.0  ;;  %v2352_v47 = vmul.f32 %v4569_v7, %v4569_v7 }
 0x438   : > { %2280 = vadd.xlane.f32.xlu0 %v2279_v41  ;;  %v4580_v20 = vadd.f32 %v4566_v60, %v2197_v1  ;;  %v2273_v12 = vsel %vm2272_vm12, %v4572_v8, 0.0  ;;  %v2350_v26 = vmul.f32 %v4572_v8, %v4572_v8 }
 0x439   : > { %v2282_v10 = vsel %vm2272_vm12, %v4575_v36, 0.0  ;;  %v2353_v29 = vmul.f32 %v4575_v36, %v4575_v36  ;;  %v2375_v33 = vsel %vm2272_vm12, %v2352_v47, 0.0 }
 0x43a   : > { %2283 = vadd.xlane.f32.xlu1 %v2282_v10  ;;  %v2276_v51 = vsel %vm2272_vm12, %v4580_v20, 0.0  ;;  %v2351_v3 = vmul.f32 %v4580_v20, %v4580_v20  ;;  %v2369_v11 = vsel %vm2272_vm12, %v2350_v26, 0.0 }
 0x43b   : > { %v2378_v6 = vsel %vm2272_vm12, %v2353_v29, 0.0 }
 0x43c   : > { %2274 = vadd.xlane.f32.xlu0 %v2273_v12  ;;  %v2372_v0 = vsel %vm2272_vm12, %v2351_v3, 0.0  ;;  %v3277_v3 = vld [vmem:[%s4943_s13 + $0x18] sm:$0xff]  }
 0x43e   : > { %2277 = vadd.xlane.f32.xlu1 %v2276_v51  ;;  %v3276_v51 = vld [vmem:[%s4943_s13 + $0x10] sm:$0xff]  }
 0x43f   : > { %3188 = vmatprep.subr.bf16.mxu0 %v3276_v51 }
 0x440   : > { %2376 = vadd.xlane.f32.xlu0 %v2375_v33  ;;  %3189 = vmatpush3.bf16.msra.mxu0 %v3276_v51 }
 0x441   : > { %3190 = vmatprep.subr.bf16.mxu0 %v3277_v3 }
 0x442   : > { %2379 = vadd.xlane.f32.xlu1 %v2378_v6 }
 0x444   : > { %2370 = vadd.xlane.f32.xlu0 %v2369_v11  ;;  %3191 = vmatpush3.bf16.msra.mxu0 %v3277_v3 }
 0x446   : > { %2373 = vadd.xlane.f32.xlu1 %v2372_v0 }
 0x44c   : > { %v3170_v40 = vpop.f32.mrb[44].mxu1 }
 0x44d   : > { %v4601_v48 = vadd.f32 %v3170_v40, %v4566_v60  ;;  %v2210_v39 = vpop.f32.mrb[45].mxu1 }
 0x44e   : > { %v3171_v18 = vpop.f32.mrb[46].mxu1  ;;  %v4604_v61 = vadd.f32 %v4566_v60, %v2210_v39 }
 0x44f   : > { %v4607_v22 = vadd.f32 %v3171_v18, %v4566_v60  ;;  %v2213_v27 = vpop.f32.mrb[47].mxu1  ;;  %v2291_v19 = vsel %vm2272_vm12, %v4601_v48, 0.0  ;;  %v2356_v23 = vmul.f32 %v4601_v48, %v4601_v48 }
 0x450   : > { %2292 = vadd.xlane.f32.xlu0 %v2291_v19  ;;  %v4612_v55 = vadd.f32 %v4566_v60, %v2213_v27  ;;  %v2285_v59 = vsel %vm2272_vm12, %v4604_v61, 0.0  ;;  %v2354_v46 = vmul.f32 %v4604_v61, %v4604_v61 }
 0x451   : > { %v2294_v2 = vsel %vm2272_vm12, %v4607_v22, 0.0  ;;  %v2357_v16 = vmul.f32 %v4607_v22, %v4607_v22  ;;  %v2387_v25 = vsel %vm2272_vm12, %v2356_v23, 0.0 }
 0x452   : > { %2295 = vadd.xlane.f32.xlu1 %v2294_v2  ;;  %v2288_v21 = vsel %vm2272_vm12, %v4612_v55, 0.0  ;;  %v2355_v52 = vmul.f32 %v4612_v55, %v4612_v55  ;;  %v2381_v38 = vsel %vm2272_vm12, %v2354_v46, 0.0 }
 0x453   : > { %v2390_v4 = vsel %vm2272_vm12, %v2357_v16, 0.0 }
 0x454   : > { %2286 = vadd.xlane.f32.xlu0 %v2285_v59  ;;  %v2384_v5 = vsel %vm2272_vm12, %v2355_v52, 0.0 }
 0x456   : > { %2289 = vadd.xlane.f32.xlu1 %v2288_v21 }
 0x458   : > { %2388 = vadd.xlane.f32.xlu0 %v2387_v25 }
 0x45a   : > { %2391 = vadd.xlane.f32.xlu1 %v2390_v4 }
 0x45c   : > { %2382 = vadd.xlane.f32.xlu0 %v2381_v38 }
 0x45e   : > { %2385 = vadd.xlane.f32.xlu1 %v2384_v5 }
 0x460   : > { %v3174_v62 = vpop.f32.mrb[48].mxu1 }
 0x461   : > { %v4633_v45 = vadd.f32 %v3174_v62, %v4566_v60  ;;  %v2226_v28 = vpop.f32.mrb[49].mxu1 }
 0x462   : > { %v3175_v44 = vpop.f32.mrb[50].mxu1  ;;  %v4636_v63 = vadd.f32 %v4566_v60, %v2226_v28 }
 0x463   : > { %v4639_v31 = vadd.f32 %v3175_v44, %v4566_v60  ;;  %v2229_v57 = vpop.f32.mrb[51].mxu1  ;;  %v2303_v24 = vsel %vm2272_vm12, %v4633_v45, 0.0  ;;  %v2360_v15 = vmul.f32 %v4633_v45, %v4633_v45 }
 0x464   : > { %2304 = vadd.xlane.f32.xlu0 %v2303_v24  ;;  %v4644_v53 = vadd.f32 %v4566_v60, %v2229_v57  ;;  %v2297_v17 = vsel %vm2272_vm12, %v4636_v63, 0.0  ;;  %v2358_v32 = vmul.f32 %v4636_v63, %v4636_v63 }
 0x465   : > { %v2306_v13 = vsel %vm2272_vm12, %v4639_v31, 0.0  ;;  %v2361_v30 = vmul.f32 %v4639_v31, %v4639_v31  ;;  %v2399_v58 = vsel %vm2272_vm12, %v2360_v15, 0.0 }
 0x466   : > { %2307 = vadd.xlane.f32.xlu1 %v2306_v13  ;;  %v2300_v14 = vsel %vm2272_vm12, %v4644_v53, 0.0  ;;  %v2359_v9 = vmul.f32 %v4644_v53, %v4644_v53  ;;  %v2393_v35 = vsel %vm2272_vm12, %v2358_v32, 0.0 }
 0x467   : > { %v2402_v43 = vsel %vm2272_vm12, %v2361_v30, 0.0 }
 0x468   : > { %2298 = vadd.xlane.f32.xlu0 %v2297_v17  ;;  %v2396_v56 = vsel %vm2272_vm12, %v2359_v9, 0.0 }
 0x46a   : > { %2301 = vadd.xlane.f32.xlu1 %v2300_v14 }
 0x46c   : > { %2400 = vadd.xlane.f32.xlu0 %v2399_v58 }
 0x46e   : > { %2403 = vadd.xlane.f32.xlu1 %v2402_v43 }
 0x470   : > { %v3178_v37 = vpop.f32.mrb[52].mxu1  ;;  %2394 = vadd.xlane.f32.xlu0 %v2393_v35 }
 0x471   : > { %v4667_v49 = vadd.f32 %v3178_v37, %v4566_v60  ;;  %v2242_v42 = vpop.f32.mrb[53].mxu1 }
 0x472   : > { %v3179_v50 = vpop.f32.mrb[54].mxu1  ;;  %2397 = vadd.xlane.f32.xlu1 %v2396_v56  ;;  %v4676_v10 = vadd.f32 %v4566_v60, %v2242_v42 }
 0x473   : > { %v4671_v54 = vadd.f32 %v3179_v50, %v4566_v60  ;;  %v2245_v1 = vpop.f32.mrb[55].mxu1  ;;  %v2315_v41 = vsel %vm2272_vm12, %v4667_v49, 0.0  ;;  %v2364_v33 = vmul.f32 %v4667_v49, %v4667_v49 }
 0x474   : > { %2316 = vadd.xlane.f32.xlu0 %v2315_v41  ;;  %v4681_v47 = vadd.f32 %v4566_v60, %v2245_v1  ;;  %v2309_v29 = vsel %vm2272_vm12, %v4676_v10, 0.0  ;;  %v2362_v0 = vmul.f32 %v4676_v10, %v4676_v10 }
 0x475   : > { %v2318_v12 = vsel %vm2272_vm12, %v4671_v54, 0.0  ;;  %v2365_v6 = vmul.f32 %v4671_v54, %v4671_v54  ;;  %v2411_v11 = vsel %vm2272_vm12, %v2364_v33, 0.0 }
 0x476   : > { %2319 = vadd.xlane.f32.xlu1 %v2318_v12  ;;  %v2312_v26 = vsel %vm2272_vm12, %v4681_v47, 0.0  ;;  %v2363_v39 = vmul.f32 %v4681_v47, %v4681_v47  ;;  %v2405_v19 = vsel %vm2272_vm12, %v2362_v0, 0.0 }
 0x477   : > { %v2414_v40 = vsel %vm2272_vm12, %v2365_v6, 0.0 }
 0x478   : > { %2310 = vadd.xlane.f32.xlu0 %v2309_v29  ;;  %v2408_v21 = vsel %vm2272_vm12, %v2363_v39, 0.0 }
 0x47a   : > { %2313 = vadd.xlane.f32.xlu1 %v2312_v26 }
 0x47c   : > { %2412 = vadd.xlane.f32.xlu0 %v2411_v11 }
 0x47e   : > { %2415 = vadd.xlane.f32.xlu1 %v2414_v40 }
 0x47f   : > { %v3182_v18 = vpop.f32.mrb[56].mxu1 }
 0x480   : > { %v4704_v27 = vadd.f32 %v3182_v18, %v4566_v60  ;;  %v2258_v2 = vpop.f32.mrb[57].mxu1  ;;  %2406 = vadd.xlane.f32.xlu0 %v2405_v19 }
 0x481   : > { %v3183_v59 = vpop.f32.mrb[58].mxu1  ;;  %v4708_v23 = vadd.f32 %v4566_v60, %v2258_v2 }
 0x482   : > { %v2261_v16 = vpop.f32.mrb[59].mxu1  ;;  %v2327_v25 = vsel %vm2272_vm12, %v4704_v27, 0.0  ;;  %2409 = vadd.xlane.f32.xlu1 %v2408_v21 }
 0x483   : > { %v4714_v46 = vadd.f32 %v4566_v60, %v2261_v16  ;;  %v2366_v52 = vmul.f32 %v4708_v23, %v4708_v23  ;;  %v2321_v38 = vsel %vm2272_vm12, %v4708_v23, 0.0  ;;  %v2368_v60 = vmul.f32 %v4704_v27, %v4704_v27 }
 0x484   : > { %2328 = vadd.xlane.f32.xlu0 %v2327_v25 }
 0x485   : > { %v2324_v4 = vsel %vm2272_vm12, %v4714_v46, 0.0  ;;  %v2367_v5 = vmul.f32 %v4714_v46, %v4714_v46  ;;  %v2417_v62 = vsel %vm2272_vm12, %v2366_v52, 0.0  ;;  %v2423_v44 = vsel %vm2272_vm12, %v2368_v60, 0.0 }
 0x486   : > { %2325 = vadd.xlane.f32.xlu1 %v2324_v4  ;;  %v4733_v4 = vld [vmem:[%s4941_s11] ss:$0 sm:$0xff] }
 0x487   : > { %v2420_v28 = vsel %vm2272_vm12, %v2367_v5, 0.0 }
 0x488   : > { %2322 = vadd.xlane.f32.xlu0 %v2321_v38 }
 0x48a   : > { %2418 = vadd.xlane.f32.xlu1 %v2417_v62 }
 0x48c   : > { %2421 = vadd.xlane.f32.xlu0 %v2420_v28  ;;  %v4741_v28 = vld [vmem:[%s4942_s12] ss:$0 sm:$0xff] }
 0x48e   : > { %2424 = vadd.xlane.f32.xlu1 %v2423_v44 }
 0x4c5   : > { %v2281_v57 = vpop.xlane.xlu0 %2280 }
 0x4c6   : > { %v2333_v17 = vmul.f32 0.015625, %v2281_v57 }
 0x4c7   : > { %v2284_v24 = vpop.xlane.xlu1 %2283 }
 0x4c8   : > { %v2334_v34 = vmul.f32 0.015625, %v2284_v24  ;;  %v2447_v30 = vmul.f32 %v2333_v17, %v2333_v17  ;;  %v2504_v21 = vsub.f32 %v4569_v7, %v2333_v17 }
 0x4c9   : > { %v2275_v13 = vpop.xlane.xlu0 %2274 }
 0x4ca   : > { %v2331_v58 = vmul.f32 0.015625, %v2275_v13  ;;  %v2448_v35 = vmul.f32 %v2334_v34, %v2334_v34  ;;  %v2505_v38 = vsub.f32 %v4575_v36, %v2334_v34 }
 0x4cb   : > { %v2278_v15 = vpop.xlane.xlu1 %2277 }
 0x4cc   : > { %v2332_v43 = vmul.f32 0.015625, %v2278_v15  ;;  %v2445_v50 = vmul.f32 %v2331_v58, %v2331_v58  ;;  %v2502_v44 = vsub.f32 %v4572_v8, %v2331_v58 }
 0x4cd   : > { %v2377_v14 = vpop.xlane.xlu0 %2376 }
 0x4ce   : > { %v2428_v32 = vmul.f32 0.015625, %v2377_v14  ;;  %v2446_v51 = vmul.f32 %v2332_v43, %v2332_v43 }
 0x4cf   : > { %v2380_v9 = vpop.xlane.xlu1 %2379 }
 0x4d0   : > { %v2466_v37 = vsub.f32 %v2428_v32, %v2447_v30  ;;  %v2429_v42 = vmul.f32 0.015625, %v2380_v9  ;;  %v2503_v30 = vsub.f32 %v4580_v20, %v2332_v43 }
 0x4d1   : > { %v2371_v56 = vpop.xlane.xlu0 %2370 }
 0x4d2   : > { %v2485_v1 = vmax.f32 %v2466_v37, 0.0  ;;  %v2467_v41 = vsub.f32 %v2429_v42, %v2448_v35  ;;  %v2426_v12 = vmul.f32 0.015625, %v2371_v56 }
 0x4d3   : > { %v2374_v29 = vpop.xlane.xlu1 %2373 }
 0x4d4   : > { %v2523_v33 = vadd.f32 1e-05, %v2485_v1  ;;  %v2486_v26 = vmax.f32 %v2467_v41, 0.0  ;;  %v2464_v6 = vsub.f32 %v2426_v12, %v2445_v50  ;;  %v2427_v3 = vmul.f32 0.015625, %v2374_v29 }
 0x4d6   : > { %3354 = vrsqrt.f32 %v2523_v33  ;;  %v2524_v11 = vadd.f32 1e-05, %v2486_v26  ;;  %v2483_v0 = vmax.f32 %v2464_v6, 0.0  ;;  %v2465_v40 = vsub.f32 %v2427_v3, %v2446_v51 }
 0x4d8   : > { %3356 = vrsqrt.f32 %v2524_v11  ;;  %v2521_v39 = vadd.f32 1e-05, %v2483_v0  ;;  %v2484_v18 = vmax.f32 %v2465_v40, 0.0 }
 0x4da   : > { %3358 = vrsqrt.f32 %v2521_v39  ;;  %v2522_v19 = vadd.f32 1e-05, %v2484_v18 }
 0x4dc   : > { %3360 = vrsqrt.f32 %v2522_v19 }
 0x4dd   : > { %v2293_v2 = vpop.xlane.xlu0 %2292 }
 0x4de   : > { %v4735_v52 = vmul.f32 0.015625, %v2293_v2 }
 0x4df   : > { %v2296_v59 = vpop.xlane.xlu1 %2295 }
 0x4e0   : > { %v3355_v25 = vpop.eup %3354  ;;  %v4743_v7 = vmul.f32 0.015625, %v2296_v59  ;;  %v2451_v36 = vmul.f32 %v4735_v52, %v4735_v52 }
 0x4e1   : > { %v2287_v16 = vpop.xlane.xlu0 %2286  ;;  %v2561_v5 = vmul.f32 %v3355_v25, %v2504_v21 }
 0x4e2   : > { %v3357_v60 = vpop.eup %3356  ;;  %v4747_v13 = vmul.f32 0.015625, %v2287_v16  ;;  %v2452_v37 = vmul.f32 %v4743_v7, %v4743_v7 }
 0x4e3   : > { %v2290_v62 = vpop.xlane.xlu1 %2289  ;;  %v2587_v57 = vmul.f32 %v4733_v4, %v2561_v5  ;;  %v2562_v24 = vmul.f32 %v3357_v60, %v2505_v38 }
 0x4e4   : > { %v3359_v15 = vpop.eup %3358  ;;  %v4751_v34 = vmul.f32 0.015625, %v2290_v62  ;;  %v2449_v41 = vmul.f32 %v4747_v13, %v4747_v13 }
 0x4e5   : > { %v2389_v17 = vpop.xlane.xlu0 %2388  ;;  %v2613_v32 = vadd.f32 %v4741_v28, %v2587_v57  ;;  %v2588_v9 = vmul.f32 %v4733_v4, %v2562_v24  ;;  %v2559_v8 = vmul.f32 %v3359_v15, %v2502_v44 }
 0x4e6   : > { %v2432_v14 = vmul.f32 0.015625, %v2389_v17  ;;  %v3361_v35 = vpop.eup %3360  ;;  %v2450_v43 = vmul.f32 %v4751_v34, %v4751_v34 }
 0x4e7   : > { %v2392_v58 = vpop.xlane.xlu1 %2391  ;;  %v2614_v50 = vadd.f32 %v4741_v28, %v2588_v9  ;;  %v2560_v1 = vmul.f32 %v3361_v35, %v2503_v30  ;;  %v2585_v20 = vmul.f32 %v4733_v4, %v2559_v8  ;;  %v2651_v11 = vmul.f32 0.2, %v2613_v32 }
 0x4e8   : > { %v2470_v42 = vsub.f32 %v2432_v14, %v2451_v36  ;;  %v2433_v56 = vmul.f32 0.015625, %v2392_v58  ;;  %vm2632_vm0 = vcmp.gt.f32.partialorder %v2613_v32, 0.0  ;;  %v2508_v8 = vsub.f32 %v4601_v48, %v4735_v52 }
 0x4e9   : > { %v2383_v12 = vpop.xlane.xlu0 %2382  ;;  %v2586_v6 = vmul.f32 %v4733_v4, %v2560_v1  ;;  %v2611_v3 = vadd.f32 %v4741_v28, %v2585_v20  ;;  %v2652_v0 = vmul.f32 0.2, %v2614_v50  ;;  %vm2633_vm14 = vcmp.gt.f32.partialorder %v2614_v50, 0.0 }
 0x4ea   : > { %v2489_v51 = vmax.f32 %v2470_v42, 0.0  ;;  %v2471_v29 = vsub.f32 %v2433_v56, %v2452_v37  ;;  %v2430_v33 = vmul.f32 0.015625, %v2383_v12  ;;  %v2670_v36 = vsel %vm2632_vm0, %v2613_v32, %v2651_v11 }
 0x4eb   : > { %v2386_v26 = vpop.xlane.xlu1 %2385  ;;  %v2612_v2 = vadd.f32 %v4741_v28, %v2586_v6  ;;  %vm2630_vm13 = vcmp.gt.f32.partialorder %v2611_v3, 0.0  ;;  %v2649_v59 = vmul.f32 0.2, %v2611_v3  ;;  %v2671_v60 = vsel %vm2633_vm14, %v2614_v50, %v2652_v0 }
 0x4ec   : > { %v2527_v40 = vadd.f32 1e-05, %v2489_v51  ;;  %v2490_v39 = vmax.f32 %v2471_v29, 0.0  ;;  %v2468_v18 = vsub.f32 %v2430_v33, %v2449_v41  ;;  %v2431_v19 = vmul.f32 0.015625, %v2386_v26 }
 0x4ed   : > { %vm2631_vm15 = vcmp.gt.f32.partialorder %v2612_v2, 0.0  ;;  %v2650_v38 = vmul.f32 0.2, %v2612_v2  ;;  %v2668_v44 = vsel %vm2630_vm13, %v2611_v3, %v2649_v59  ;;  %v2688_v14 = vpack.c.bf16 %v2671_v60, %v2670_v36 }
 0x4ee   : > { %3362 = vrsqrt.f32 %v2527_v40  ;;  %v2528_v21 = vadd.f32 1e-05, %v2490_v39  ;;  %v2487_v16 = vmax.f32 %v2468_v18, 0.0  ;;  %v2469_v25 = vsub.f32 %v2431_v19, %v2450_v43 }
 0x4ef   : > { %v2669_v57 = vsel %vm2631_vm15, %v2612_v2, %v2650_v38  ;;  %v2509_v32 = vsub.f32 %v4607_v22, %v4743_v7  ;;  %v2506_v12 = vsub.f32 %v4604_v61, %v4747_v13  ;;  %v2507_v51 = vsub.f32 %v4612_v55, %v4751_v34 }
 0x4f0   : > { %3364 = vrsqrt.f32 %v2528_v21  ;;  %v2525_v5 = vadd.f32 1e-05, %v2487_v16  ;;  %v2488_v62 = vmax.f32 %v2469_v25, 0.0  ;;  %v2687_v15 = vpack.c.bf16 %v2669_v57, %v2668_v44 }
 0x4f1   : > { %v2305_v17 = vpop.xlane.xlu0 %2304 }
 0x4f2   : > { %3366 = vrsqrt.f32 %v2525_v5  ;;  %v2526_v24 = vadd.f32 1e-05, %v2488_v62  ;;  %3192 = vmatprep.mubr.msk.bf16.mxu0 %vm2272_vm12, %v2687_v15  ;;  %v4771_v58 = vmul.f32 0.015625, %v2305_v17 }
 0x4f3   : > { %v2308_v30 = vpop.xlane.xlu1 %2307  ;;  %3193 = vmatmul.mubr.msk.bf16.vlgmr.msra.gmra.mrb[40].mxu0 %vm2272_vm12, %v2688_v14 }
 0x4f4   : > { %3368 = vrsqrt.f32 %v2526_v24  ;;  %v4773_v37 = vmul.f32 0.015625, %v2308_v30  ;;  %v2455_v48 = vmul.f32 %v4771_v58, %v4771_v58 }
 0x4f5   : > { %v2299_v9 = vpop.xlane.xlu0 %2298 }
 0x4f6   : > { %v4777_v1 = vmul.f32 0.015625, %v2299_v9  ;;  %v2456_v22 = vmul.f32 %v4773_v37, %v4773_v37 }
 0x4f7   : > { %v2302_v42 = vpop.xlane.xlu1 %2301 }
 0x4f8   : > { %v3363_v35 = vpop.eup %3362  ;;  %v4787_v7 = vmul.f32 0.015625, %v2302_v42  ;;  %v2453_v11 = vmul.f32 %v4777_v1, %v4777_v1 }
 0x4f9   : > { %v2565_v56 = vmul.f32 %v3363_v35, %v2508_v8  ;;  %v2401_v41 = vpop.xlane.xlu0 %2400 }
 0x4fa   : > { %v3365_v50 = vpop.eup %3364  ;;  %v2436_v52 = vmul.f32 0.015625, %v2401_v41  ;;  %v2454_v18 = vmul.f32 %v4787_v7, %v4787_v7 }
 0x4fb   : > { %v2566_v20 = vmul.f32 %v3365_v50, %v2509_v32  ;;  %v2404_v29 = vpop.xlane.xlu1 %2403  ;;  %v2591_v33 = vmul.f32 %v4733_v4, %v2565_v56 }
 0x4fc   : > { %v3367_v43 = vpop.eup %3366  ;;  %v2474_v6 = vsub.f32 %v2436_v52, %v2455_v48  ;;  %v2437_v61 = vmul.f32 0.015625, %v2404_v29 }
 0x4fd   : > { %v2563_v26 = vmul.f32 %v3367_v43, %v2506_v12  ;;  %v2592_v13 = vmul.f32 %v4733_v4, %v2566_v20  ;;  %v2395_v0 = vpop.xlane.xlu0 %2394  ;;  %v2617_v59 = vadd.f32 %v4741_v28, %v2591_v33 }
 0x4fe   : > { %v3369_v3 = vpop.eup %3368  ;;  %v2493_v55 = vmax.f32 %v2474_v6, 0.0  ;;  %v2475_v34 = vsub.f32 %v2437_v61, %v2456_v22  ;;  %v2434_v39 = vmul.f32 0.015625, %v2395_v0  ;;  %v2512_v61 = vsub.f32 %v4633_v45, %v4771_v58 }
 0x4ff   : > { %v2564_v40 = vmul.f32 %v3369_v3, %v2507_v51  ;;  %v2398_v19 = vpop.xlane.xlu1 %2397  ;;  %v2589_v2 = vmul.f32 %v4733_v4, %v2563_v26  ;;  %v2618_v21 = vadd.f32 %v4741_v28, %v2592_v13  ;;  %v2655_v30 = vmul.f32 0.2, %v2617_v59 }
 0x500   : > { %v2531_v16 = vadd.f32 1e-05, %v2493_v55  ;;  %v2494_v25 = vmax.f32 %v2475_v34, 0.0  ;;  %v2472_v38 = vsub.f32 %v2434_v39, %v2453_v11  ;;  %v2435_v5 = vmul.f32 0.015625, %v2398_v19 }
 0x501   : > { %v2317_v62 = vpop.xlane.xlu0 %2316  ;;  %v2590_v60 = vmul.f32 %v4733_v4, %v2564_v40  ;;  %v2615_v44 = vadd.f32 %v4741_v28, %v2589_v2  ;;  %v2656_v9 = vmul.f32 0.2, %v2618_v21  ;;  %vm2636_vm3 = vcmp.gt.f32.partialorder %v2617_v59, 0.0 }
 0x502   : > { %3370 = vrsqrt.f32 %v2531_v16  ;;  %v2532_v57 = vadd.f32 1e-05, %v2494_v25  ;;  %v2491_v24 = vmax.f32 %v2472_v38, 0.0  ;;  %v2473_v17 = vsub.f32 %v2435_v5, %v2454_v18 }
 0x503   : > { %v2320_v15 = vpop.xlane.xlu1 %2319  ;;  %v2616_v36 = vadd.f32 %v4741_v28, %v2590_v60  ;;  %v2653_v14 = vmul.f32 0.2, %v2615_v44  ;;  %vm2634_vm1 = vcmp.gt.f32.partialorder %v2615_v44, 0.0  ;;  %vm2637_vm4 = vcmp.gt.f32.partialorder %v2618_v21, 0.0 }
 0x504   : > { %3372 = vrsqrt.f32 %v2532_v57  ;;  %v2529_v8 = vadd.f32 1e-05, %v2491_v24  ;;  %v2492_v35 = vmax.f32 %v2473_v17, 0.0  ;;  %v4801_v50 = vmul.f32 0.015625, %v2317_v62 }
 0x505   : > { %v2311_v42 = vpop.xlane.xlu0 %2310  ;;  %vm2635_vm2 = vcmp.gt.f32.partialorder %v2616_v36, 0.0  ;;  %v2654_v32 = vmul.f32 0.2, %v2616_v36  ;;  %v4803_v41 = vmul.f32 0.015625, %v2320_v15  ;;  %v2672_v20 = vsel %vm2634_vm1, %v2615_v44, %v2653_v14 }
 0x506   : > { %3374 = vrsqrt.f32 %v2529_v8  ;;  %v2530_v56 = vadd.f32 1e-05, %v2492_v35  ;;  %v2674_v43 = vsel %vm2636_vm3, %v2617_v59, %v2655_v30  ;;  %v2675_v51 = vsel %vm2637_vm4, %v2618_v21, %v2656_v9 }
 0x507   : > { %v2314_v12 = vpop.xlane.xlu1 %2313  ;;  %v2673_v48 = vsel %vm2635_vm2, %v2616_v36, %v2654_v32  ;;  %v2690_v29 = vpack.c.bf16 %v2675_v51, %v2674_v43  ;;  %v2459_v33 = vmul.f32 %v4801_v50, %v4801_v50  ;;  %v4807_v26 = vmul.f32 0.015625, %v2311_v42 }
 0x508   : > { %3376 = vrsqrt.f32 %v2530_v56  ;;  %v2689_v52 = vpack.c.bf16 %v2673_v48, %v2672_v20  ;;  %v4812_v13 = vmul.f32 0.015625, %v2314_v12  ;;  %v2460_v0 = vmul.f32 %v4803_v41, %v4803_v41 }
 0x509   : > { %v2413_v22 = vpop.xlane.xlu0 %2412  ;;  %v2513_v34 = vsub.f32 %v4639_v31, %v4773_v37  ;;  %v2457_v45 = vmul.f32 %v4807_v26, %v4807_v26  ;;  %v2510_v21 = vsub.f32 %v4636_v63, %v4777_v1  ;;  %v2511_v44 = vsub.f32 %v4644_v53, %v4787_v7 }
 0x50a   : > { %v2440_v6 = vmul.f32 0.015625, %v2413_v22  ;;  %3196 = vmatprep.mubr.msk.bf16.mxu0 %vm2272_vm12, %v2689_v52  ;;  %v2458_v25 = vmul.f32 %v4812_v13, %v4812_v13  ;;  %v2516_v20 = vsub.f32 %v4667_v49, %v4801_v50  ;;  %vm2878_vm1 = vcmask 7168  }
 0x50b   : > { %v2416_v3 = vpop.xlane.xlu1 %2415  ;;  %3197 = vmatmul.mubr.msk.bf16.gmra.mrb[44].mxu0 %vm2272_vm12, %v2690_v29 }
 0x50c   : > { %v3371_v11 = vpop.eup %3370  ;;  %v2478_v40 = vsub.f32 %v2440_v6, %v2459_v33  ;;  %v2441_v55 = vmul.f32 0.015625, %v2416_v3 }
 0x50d   : > { %v2569_v39 = vmul.f32 %v3371_v11, %v2512_v61  ;;  %v2407_v18 = vpop.xlane.xlu0 %2406 }
 0x50e   : > { %v3373_v19 = vpop.eup %3372  ;;  %v2497_v58 = vmax.f32 %v2478_v40, 0.0  ;;  %v2479_v2 = vsub.f32 %v2441_v55, %v2460_v0  ;;  %v2438_v59 = vmul.f32 0.015625, %v2407_v18  ;;  %v2517_v55 = vsub.f32 %v4671_v54, %v4803_v41 }
 0x50f   : > { %v2570_v16 = vmul.f32 %v3373_v19, %v2513_v34  ;;  %v2410_v38 = vpop.xlane.xlu1 %2409  ;;  %v2595_v17 = vmul.f32 %v4733_v4, %v2569_v39 }
 0x510   : > { %v3375_v5 = vpop.eup %3374  ;;  %v2535_v62 = vadd.f32 1e-05, %v2497_v58  ;;  %v2498_v31 = vmax.f32 %v2479_v2, 0.0  ;;  %v2476_v37 = vsub.f32 %v2438_v59, %v2457_v45  ;;  %v2439_v60 = vmul.f32 0.015625, %v2410_v38 }
 0x511   : > { %v2567_v57 = vmul.f32 %v3375_v5, %v2510_v21  ;;  %v2329_v24 = vpop.xlane.xlu0 %2328  ;;  %v2596_v15 = vmul.f32 %v4733_v4, %v2570_v16  ;;  %v2621_v12 = vadd.f32 %v4741_v28, %v2595_v17 }
 0x512   : > { %v3377_v63 = vpop.eup %3376  ;;  %3378 = vrsqrt.f32 %v2535_v62  ;;  %v2536_v1 = vadd.f32 1e-05, %v2498_v31  ;;  %v2495_v36 = vmax.f32 %v2476_v37, 0.0  ;;  %v2477_v14 = vsub.f32 %v2439_v60, %v2458_v25 }
 0x513   : > { %v2568_v30 = vmul.f32 %v3377_v63, %v2511_v44  ;;  %v2326_v9 = vpop.xlane.xlu1 %2325  ;;  %v2593_v8 = vmul.f32 %v4733_v4, %v2567_v57  ;;  %v2622_v52 = vadd.f32 %v4741_v28, %v2596_v15  ;;  %v4838_v43 = vmul.f32 0.015625, %v2329_v24 }
 0x514   : > { %3380 = vrsqrt.f32 %v2536_v1  ;;  %v2533_v35 = vadd.f32 1e-05, %v2495_v36  ;;  %v2496_v42 = vmax.f32 %v2477_v14, 0.0  ;;  %v4830_v32 = vmul.f32 0.015625, %v2326_v9 }
 0x515   : > { %v2323_v53 = vpop.xlane.xlu0 %2322  ;;  %v2594_v7 = vmul.f32 %v4733_v4, %v2568_v30  ;;  %v2619_v56 = vadd.f32 %v4741_v28, %v2593_v8  ;;  %vm2640_vm7 = vcmp.gt.f32.partialorder %v2621_v12, 0.0  ;;  %vm2641_vm8 = vcmp.gt.f32.partialorder %v2622_v52, 0.0 }
 0x516   : > { %3382 = vrsqrt.f32 %v2533_v35  ;;  %v2534_v48 = vadd.f32 1e-05, %v2496_v42  ;;  %v4840_v51 = vmul.f32 0.015625, %v2323_v53  ;;  %v2462_v6 = vmul.f32 %v4830_v32, %v4830_v32 }
 0x517   : > { %v2419_v22 = vpop.xlane.xlu1 %2418  ;;  %v2620_v29 = vadd.f32 %v4741_v28, %v2594_v7  ;;  %v2657_v33 = vmul.f32 0.2, %v2619_v56  ;;  %vm2638_vm5 = vcmp.gt.f32.partialorder %v2619_v56, 0.0  ;;  %v2659_v0 = vmul.f32 0.2, %v2621_v12 }
 0x518   : > { %3384 = vrsqrt.f32 %v2534_v48  ;;  %v2442_v61 = vmul.f32 0.015625, %v2419_v22  ;;  %v2461_v49 = vmul.f32 %v4840_v51, %v4840_v51  ;;  %v2660_v40 = vmul.f32 0.2, %v2622_v52 }
 0x519   : > { %v2422_v50 = vpop.xlane.xlu0 %2421  ;;  %vm2639_vm6 = vcmp.gt.f32.partialorder %v2620_v29, 0.0  ;;  %v2658_v3 = vmul.f32 0.2, %v2620_v29  ;;  %v2676_v18 = vsel %vm2638_vm5, %v2619_v56, %v2657_v33  ;;  %v2463_v58 = vmul.f32 %v4838_v43, %v4838_v43 }
 0x51a   : > { %v2443_v11 = vmul.f32 0.015625, %v2422_v50  ;;  %v2480_v34 = vsub.f32 %v2442_v61, %v2461_v49  ;;  %v2678_v38 = vsel %vm2640_vm7, %v2621_v12, %v2659_v0  ;;  %v2679_v5 = vsel %vm2641_vm8, %v2622_v52, %v2660_v40 }
 0x51b   : > { %v2425_v39 = vpop.xlane.xlu1 %2424  ;;  %v2677_v19 = vsel %vm2639_vm6, %v2620_v29, %v2658_v3  ;;  %v2692_v41 = vpack.c.bf16 %v2679_v5, %v2678_v38  ;;  %v2514_v37 = vsub.f32 %v4676_v10, %v4807_v26  ;;  %v2515_v63 = vsub.f32 %v4681_v47, %v4812_v13 }
 0x51c   : > { %v3379_v45 = vpop.eup %3378  ;;  %v2481_v2 = vsub.f32 %v2443_v11, %v2462_v6  ;;  %v2444_v59 = vmul.f32 0.015625, %v2425_v39  ;;  %v2691_v21 = vpack.c.bf16 %v2677_v19, %v2676_v18  ;;  %v2499_v25 = vmax.f32 %v2480_v34, 0.0 }
 0x51d   : > { %v2573_v16 = vmul.f32 %v3379_v45, %v2516_v20  ;;  %v2518_v12 = vsub.f32 %v4708_v23, %v4840_v51  ;;  %v2519_v52 = vsub.f32 %v4714_v46, %v4830_v32  ;;  %v2520_v50 = vsub.f32 %v4704_v27, %v4838_v43 }
 0x51e   : > { %v3381_v62 = vpop.eup %3380  ;;  %v2500_v31 = vmax.f32 %v2481_v2, 0.0  ;;  %v2482_v54 = vsub.f32 %v2444_v59, %v2463_v58  ;;  %3200 = vmatprep.mubr.msk.bf16.mxu0 %vm2272_vm12, %v2691_v21  ;;  %v2537_v44 = vadd.f32 1e-05, %v2499_v25  ;;  %v3022_v59 = vld [vmem:[#allocation2] ss:$0 sm:$0xff] }
 0x51f   : > { %v2574_v60 = vmul.f32 %v3381_v62, %v2517_v55  ;;  %3201 = vmatmul.mubr.msk.bf16.gmra.mrb[48].mxu0 %vm2272_vm12, %v2692_v41  ;;  %v2599_v15 = vmul.f32 %v4733_v4, %v2573_v16 }
 0x520   : > { %v3383_v57 = vpop.eup %3382  ;;  %v2538_v24 = vadd.f32 1e-05, %v2500_v31  ;;  %v2501_v17 = vmax.f32 %v2482_v54, 0.0  ;;  %3386 = vrsqrt.f32 %v2537_v44 }
 0x521   : > { %v2571_v1 = vmul.f32 %v3383_v57, %v2514_v37  ;;  %v2600_v36 = vmul.f32 %v4733_v4, %v2574_v60  ;;  %v2625_v8 = vadd.f32 %v4741_v28, %v2599_v15 }
 0x522   : > { %v3385_v14 = vpop.eup %3384  ;;  %3388 = vrsqrt.f32 %v2538_v24  ;;  %v2539_v30 = vadd.f32 1e-05, %v2501_v17 }
 0x523   : > { %v2572_v10 = vmul.f32 %v3385_v14, %v2515_v63  ;;  %v2597_v26 = vmul.f32 %v4733_v4, %v2571_v1  ;;  %v2626_v9 = vadd.f32 %v4741_v28, %v2600_v36  ;;  %v2663_v7 = vmul.f32 0.2, %v2625_v8 }
 0x524   : > { %3390 = vrsqrt.f32 %v2539_v30  ;;  %vm2644_vm13 = vcmp.gt.f32.partialorder %v2625_v8, 0.0 }
 0x525   : > { %v2598_v35 = vmul.f32 %v4733_v4, %v2572_v10  ;;  %v2623_v42 = vadd.f32 %v4741_v28, %v2597_v26  ;;  %v2664_v47 = vmul.f32 0.2, %v2626_v9  ;;  %vm2645_vm9 = vcmp.gt.f32.partialorder %v2626_v9, 0.0 }
 0x526   : > { %v2682_v49 = vsel %vm2644_vm13, %v2625_v8, %v2663_v7 }
 0x527   : > { %v2624_v13 = vadd.f32 %v4741_v28, %v2598_v35  ;;  %v2661_v53 = vmul.f32 0.2, %v2623_v42  ;;  %vm2642_vm10 = vcmp.gt.f32.partialorder %v2623_v42, 0.0  ;;  %v2683_v20 = vsel %vm2645_vm9, %v2626_v9, %v2664_v47 }
 0x528   : > { %v2694_v11 = vpack.c.bf16 %v2683_v20, %v2682_v49 }
 0x529   : > { %vm2643_vm11 = vcmp.gt.f32.partialorder %v2624_v13, 0.0  ;;  %v2662_v56 = vmul.f32 0.2, %v2624_v13  ;;  %v2680_v22 = vsel %vm2642_vm10, %v2623_v42, %v2661_v53 }
 0x52a   : > { %v3387_v48 = vpop.eup %3386 }
 0x52b   : > { %v2681_v29 = vsel %vm2643_vm11, %v2624_v13, %v2662_v56  ;;  %v2575_v6 = vmul.f32 %v3387_v48, %v2518_v12 }
 0x52c   : > { %v3389_v33 = vpop.eup %3388  ;;  %v2693_v61 = vpack.c.bf16 %v2681_v29, %v2680_v22 }
 0x52d   : > { %v2576_v3 = vmul.f32 %v3389_v33, %v2519_v52  ;;  %v2601_v23 = vmul.f32 %v4733_v4, %v2575_v6 }
 0x52e   : > { %v3391_v0 = vpop.eup %3390  ;;  %3204 = vmatprep.mubr.msk.bf16.mxu0 %vm2272_vm12, %v2693_v61 }
 0x52f   : > { %v2577_v51 = vmul.f32 %v3391_v0, %v2520_v50  ;;  %3205 = vmatmul.mubr.msk.bf16.gmra.mrb[52].mxu0 %vm2272_vm12, %v2694_v11  ;;  %v2602_v46 = vmul.f32 %v4733_v4, %v2576_v3  ;;  %v2627_v32 = vadd.f32 %v4741_v28, %v2601_v23 }
 0x531   : > { %v2628_v40 = vadd.f32 %v4741_v28, %v2602_v46  ;;  %v2603_v55 = vmul.f32 %v4733_v4, %v2577_v51  ;;  %vm2646_vm14 = vcmp.gt.f32.partialorder %v2627_v32, 0.0  ;;  %v2665_v27 = vmul.f32 0.2, %v2627_v32 }
 0x533   : > { %vm2647_vm15 = vcmp.gt.f32.partialorder %v2628_v40, 0.0  ;;  %v2666_v43 = vmul.f32 0.2, %v2628_v40  ;;  %v2629_v34 = vadd.f32 %v4741_v28, %v2603_v55  ;;  %v2684_v39 = vsel %vm2646_vm14, %v2627_v32, %v2665_v27 }
 0x535   : > { %v2685_v18 = vsel %vm2647_vm15, %v2628_v40, %v2666_v43  ;;  %vm2648_vm0 = vcmp.gt.f32.partialorder %v2629_v34, 0.0  ;;  %v2667_v19 = vmul.f32 0.2, %v2629_v34 }
 0x536   : > { %v2695_v45 = vpack.c.bf16 %v2685_v18, %v2684_v39 }
 0x537   : > { %v2686_v58 = vsel %vm2648_vm0, %v2629_v34, %v2667_v19 }
 0x538   : > { %3208 = vmatprep.mubr.msk.bf16.mxu0 %vm2272_vm12, %v2695_v45  ;;  %v2696_v2 = vpack.c.bf16 %v2686_v58, %v2686_v58 }
 0x53a   : > { %3209 = vmatmul.mubr.msk.bf16.gmra.mrb[56].mxu0 %vm2272_vm12, %v2696_v2 }
 0x5c6   : > { %v3194_v4 = vpop.f32.mrb[40].mxu0 }
 0x5c7   : > { %v2809_v28 = vadd.f32 %v3194_v4, %v3022_v59  ;;  %v2800_v21 = vpop.f32.mrb[41].mxu0 }
 0x5c8   : > { %v2801_v16 = vadd.f32 %v3022_v59, %v2800_v21  ;;  %v3195_v25 = vpop.f32.mrb[42].mxu0 }
 0x5c9   : > { %2881 = vst.msk [vmem:[%s4887_s30 + $0x10] sm:$0xff] %vm2878_vm1, %v2809_v28  ;;  %v2812_v38 = vadd.f32 %v3195_v25, %v3022_v59  ;;  %v2803_v5 = vpop.f32.mrb[43].mxu0 }
 0x5ca   : > { %2879 = vst.msk [vmem:[%s4887_s30] sm:$0xff] %vm2878_vm1, %v2801_v16  ;;  %v2804_v62 = vadd.f32 %v3022_v59, %v2803_v5 }
 0x5cb   : > { %2882 = vst.msk [vmem:[%s4887_s30 + $0x18] sm:$0xff] %vm2878_vm1, %v2812_v38 }
 0x5cc   : > { %2880 = vst.msk [vmem:[%s4887_s30 + $0x8] sm:$0xff] %vm2878_vm1, %v2804_v62 }
 0x5de   : > { %v3198_v31 = vpop.f32.mrb[44].mxu0 }
 0x5df   : > { %v2825_v54 = vadd.f32 %v3198_v31, %v3022_v59  ;;  %v2816_v41 = vpop.f32.mrb[45].mxu0 }
 0x5e0   : > { %v2817_v37 = vadd.f32 %v3022_v59, %v2816_v41  ;;  %v3199_v60 = vpop.f32.mrb[46].mxu0 }
 0x5e1   : > { %2885 = vst.msk [vmem:[%s4887_s30 + $0x30] sm:$0xff] %vm2878_vm1, %v2825_v54  ;;  %v2828_v44 = vadd.f32 %v3199_v60, %v3022_v59  ;;  %v2819_v57 = vpop.f32.mrb[47].mxu0 }
 0x5e2   : > { %2883 = vst.msk [vmem:[%s4887_s30 + $0x20] sm:$0xff] %vm2878_vm1, %v2817_v37  ;;  %v2820_v24 = vadd.f32 %v3022_v59, %v2819_v57 }
 0x5e3   : > { %2886 = vst.msk [vmem:[%s4887_s30 + $0x38] sm:$0xff] %vm2878_vm1, %v2828_v44 }
 0x5e4   : > { %2884 = vst.msk [vmem:[%s4887_s30 + $0x28] sm:$0xff] %vm2878_vm1, %v2820_v24 }
 0x5f2   : > { %v3202_v17 = vpop.f32.mrb[48].mxu0 }
 0x5f3   : > { %v2841_v15 = vadd.f32 %v3202_v17, %v3022_v59  ;;  %v2832_v63 = vpop.f32.mrb[49].mxu0 }
 0x5f4   : > { %v2833_v1 = vadd.f32 %v3022_v59, %v2832_v63  ;;  %v3203_v36 = vpop.f32.mrb[50].mxu0 }
 0x5f5   : > { %2889 = vst.msk [vmem:[%s4887_s30 + $0x50] sm:$0xff] %vm2878_vm1, %v2841_v15  ;;  %v2844_v14 = vadd.f32 %v3203_v36, %v3022_v59  ;;  %v2835_v30 = vpop.f32.mrb[51].mxu0 }
 0x5f6   : > { %2887 = vst.msk [vmem:[%s4887_s30 + $0x40] sm:$0xff] %vm2878_vm1, %v2833_v1  ;;  %v2836_v10 = vadd.f32 %v3022_v59, %v2835_v30 }
 0x5f7   : > { %2890 = vst.msk [vmem:[%s4887_s30 + $0x58] sm:$0xff] %vm2878_vm1, %v2844_v14 }
 0x5f8   : > { %2888 = vst.msk [vmem:[%s4887_s30 + $0x48] sm:$0xff] %vm2878_vm1, %v2836_v10 }
 0x602   : > { %v3206_v26 = vpop.f32.mrb[52].mxu0 }
 0x603   : > { %v2857_v9 = vadd.f32 %v3206_v26, %v3022_v59  ;;  %v2848_v8 = vpop.f32.mrb[53].mxu0 }
 0x604   : > { %v2849_v35 = vadd.f32 %v3022_v59, %v2848_v8  ;;  %v3207_v42 = vpop.f32.mrb[54].mxu0 }
 0x605   : > { %2893 = vst.msk [vmem:[%s4887_s30 + $0x70] sm:$0xff] %vm2878_vm1, %v2857_v9  ;;  %v2860_v47 = vadd.f32 %v3207_v42, %v3022_v59  ;;  %v2851_v13 = vpop.f32.mrb[55].mxu0 }
 0x606   : > { %2891 = vst.msk [vmem:[%s4887_s30 + $0x60] sm:$0xff] %vm2878_vm1, %v2849_v35  ;;  %v2852_v53 = vadd.f32 %v3022_v59, %v2851_v13 }
 0x607   : > { %2894 = vst.msk [vmem:[%s4887_s30 + $0x78] sm:$0xff] %vm2878_vm1, %v2860_v47 }
 0x608   : > { %2892 = vst.msk [vmem:[%s4887_s30 + $0x68] sm:$0xff] %vm2878_vm1, %v2852_v53 }
 0x60d   : > { %v3210_v7 = vpop.f32.mrb[56].mxu0 }
 0x60e   : > { %v2873_v56 = vadd.f32 %v3210_v7, %v3022_v59  ;;  %v2864_v12 = vpop.f32.mrb[57].mxu0 }
 0x60f   : > { %v2865_v20 = vadd.f32 %v3022_v59, %v2864_v12  ;;  %v3211_v48 = vpop.f32.mrb[58].mxu0 }
 0x610   : > { %2897 = vst.msk [vmem:[%s4887_s30 + $0x90] sm:$0xff] %vm2878_vm1, %v2873_v56  ;;  %v2867_v52 = vpop.f32.mrb[59].mxu0 }
 0x611   : > { %2895 = vst.msk [vmem:[%s4887_s30 + $0x80] sm:$0xff] %vm2878_vm1, %v2865_v20  ;;  %v2868_v22 = vadd.f32 %v3022_v59, %v2867_v52 }
 0x613   : > { %2896 = vst.msk [vmem:[%s4887_s30 + $0x88] sm:$0xff] %vm2878_vm1, %v2868_v22 }
 0x614 PF: > { %s27_s20 = sadd.s32 1, %s3398_s20  }
 0x615   : > { %p24_p4 = scmp.ge.s32.totalorder %s27_s20, 4  }
 0x617   :  { %26 = sbr.rel (!%p24_p4) target bundleno = 3 (0x3), region = 110 }

</bundles_post_ra>
